<compile_context>
chip_gen: v5e
topology: v5e:2x2
jax: 0.10.0
libtpu: 0.0.40
codegen_flags: <defaults>
</compile_context>

<pallas_src>
import math

import jax
import jax.numpy as jnp
from jax.experimental import pallas as pl
from jax.experimental.pallas import tpu as pltpu

# ---- small, forward-consistent configuration (ViT hyperparameters) ----------
IMAGE_SIZE = 32          # stands in for 224
PATCH_SIZE = 8           # stands in for 16
HIDDEN = 128             # stands in for 768 (kept lane-dense: multiple of 128)
NUM_LAYERS = 2           # stands in for 12
NUM_HEADS = 4            # stands in for 12
HEAD_DIM = HIDDEN // NUM_HEADS
INTERMEDIATE = 4 * HIDDEN
NUM_CHANNELS = 3
GRID_PATCHES = IMAGE_SIZE // PATCH_SIZE
NUM_PATCHES = GRID_PATCHES * GRID_PATCHES
SEQ = NUM_PATCHES + 1                      # 17
SEQ_PAD = ((SEQ + 7) // 8) * 8             # 24 (multiple of 8 sublanes)
PATCH_DIM = NUM_CHANNELS * PATCH_SIZE * PATCH_SIZE
LN_EPS = 1e-12                             # ViTConfig default layer_norm_eps
ATTN_SCALE = 1.0 / math.sqrt(HEAD_DIM)
NEG_BIG = -1e30


# ----------------------------- kernel helpers ---------------------------------
def _ln(x, g, b):
    # LayerNorm in f32 on a [rows, D] tile already resident in VMEM.
    mu = jnp.mean(x, axis=-1, keepdims=True)
    var = jnp.mean((x - mu) ** 2, axis=-1, keepdims=True)
    return (x - mu) * jax.lax.rsqrt(var + LN_EPS) * g + b


def _gelu_exact(x):
    # exact (erf) GELU in f32, matching torch.nn.functional.gelu default.
    return 0.5 * x * (1.0 + jax.lax.erf(x * (1.0 / math.sqrt(2.0))))


# ----------------------------- Pallas kernels ---------------------------------
def _patch_embed_kernel(p_ref, w_ref, b_ref, o_ref):
    # p: [B*NP, C*P*P] f32, w: [C*P*P, D] bf16, b: [1, D] f32 -> [B*NP, D] f32
    o_ref[...] = (
        jnp.dot(p_ref[...].astype(jnp.bfloat16), w_ref[...],
                preferred_element_type=jnp.float32)
        + b_ref[...]
    )


def _layer_kernel(x_ref, ln1g_ref, ln1b_ref, wqkv_ref, bqkv_ref,
                  wo_ref, bo_ref, ln2g_ref, ln2b_ref,
                  w1_ref, b1_ref, w2_ref, b2_ref, o_ref):
    # One full transformer encoder layer for one batch element, fully fused.
    x = x_ref[0]                                        # [S_PAD, D] f32 residual

    # --- LN1 + fused QKV projection (one MXU pass, N = 3D) ---
    h1 = _ln(x, ln1g_ref[...], ln1b_ref[...])
    qkv = (jnp.dot(h1.astype(jnp.bfloat16), wqkv_ref[...],
                   preferred_element_type=jnp.float32)
           + bqkv_ref[...])                             # [S_PAD, 3D] f32

    # --- multi-head self-attention (all heads in this single invocation) ---
    key_valid = jax.lax.broadcasted_iota(
        jnp.int32, (SEQ_PAD, SEQ_PAD), 1) < SEQ         # mask padded key cols
    ctx_parts = []
    for h in range(NUM_HEADS):
        lo = h * HEAD_DIM
        qh = qkv[:, lo:lo + HEAD_DIM]
        kh = qkv[:, HIDDEN + lo:HIDDEN + lo + HEAD_DIM]
        vh = qkv[:, 2 * HIDDEN + lo:2 * HIDDEN + lo + HEAD_DIM]
        # Q @ K^T via dot_general contracting Dh (no in-kernel transpose).
        s = jax.lax.dot_general(
            qh.astype(jnp.bfloat16), kh.astype(jnp.bfloat16),
            (((1,), (1,)), ((), ())),
            preferred_element_type=jnp.float32) * ATTN_SCALE
        s = jnp.where(key_valid, s, NEG_BIG)
        m = jnp.max(s, axis=-1, keepdims=True)
        p = jnp.exp(s - m)                              # softmax in f32
        denom = jnp.sum(p, axis=-1, keepdims=True)
        p = p * pl.reciprocal(denom, approx=True)       # divide on EUP slot
        ctx_parts.append(
            jnp.dot(p.astype(jnp.bfloat16), vh.astype(jnp.bfloat16),
                    preferred_element_type=jnp.float32))
    ctx = jnp.concatenate(ctx_parts, axis=-1)           # [S_PAD, D] f32

    # --- output projection + residual (fused, no HBM round trip) ---
    attn = (jnp.dot(ctx.astype(jnp.bfloat16), wo_ref[...],
                    preferred_element_type=jnp.float32)
            + bo_ref[...])
    x1 = x + attn                                       # f32 residual stream

    # --- LN2 + MLP (w1 -> exact GELU -> w2) + residual ---
    h2 = _ln(x1, ln2g_ref[...], ln2b_ref[...])
    u = (jnp.dot(h2.astype(jnp.bfloat16), w1_ref[...],
                 preferred_element_type=jnp.float32)
         + b1_ref[...])
    u = _gelu_exact(u)
    mlp = (jnp.dot(u.astype(jnp.bfloat16), w2_ref[...],
                   preferred_element_type=jnp.float32)
           + b2_ref[...])
    o_ref[0] = x1 + mlp


def _final_ln_kernel(x_ref, g_ref, b_ref, o_ref):
    # Final LayerNorm applied only to the [CLS] rows: [B, D].
    o_ref[...] = _ln(x_ref[...], g_ref[...], b_ref[...])


# ----------------------------- kernel wrappers --------------------------------
def patch_embed(patches, w, b):
    M = patches.shape[0]
    return pl.pallas_call(
        _patch_embed_kernel,
        out_shape=jax.ShapeDtypeStruct((M, HIDDEN), jnp.float32),
        grid=(1,),
        in_specs=[
            pl.BlockSpec((M, PATCH_DIM), lambda i: (0, 0)),
            pl.BlockSpec((PATCH_DIM, HIDDEN), lambda i: (0, 0)),
            pl.BlockSpec((1, HIDDEN), lambda i: (0, 0)),
        ],
        out_specs=pl.BlockSpec((M, HIDDEN), lambda i: (0, 0)),
    )(patches, w, b)


def encoder_layer(x, layer):
    """x: [B, SEQ_PAD, HIDDEN] f32 -> same shape, one fused kernel per layer."""
    B = x.shape[0]
    D, D3, I = HIDDEN, 3 * HIDDEN, INTERMEDIATE

    def wspec(shape):
        return pl.BlockSpec(shape, lambda b: (0, 0))

    return pl.pallas_call(
        _layer_kernel,
        out_shape=jax.ShapeDtypeStruct((B, SEQ_PAD, D), jnp.float32),
        grid=(B,),
        in_specs=[
            pl.BlockSpec((1, SEQ_PAD, D), lambda b: (b, 0, 0)),   # x (per batch)
            wspec((1, D)), wspec((1, D)),                         # ln1 g/b
            wspec((D, D3)), wspec((1, D3)),                       # wqkv / bqkv
            wspec((D, D)), wspec((1, D)),                         # wo / bo
            wspec((1, D)), wspec((1, D)),                         # ln2 g/b
            wspec((D, I)), wspec((1, I)),                         # w1 / b1
            wspec((I, D)), wspec((1, D)),                         # w2 / b2
        ],
        out_specs=pl.BlockSpec((1, SEQ_PAD, D), lambda b: (b, 0, 0)),
        compiler_params=pltpu.CompilerParams(
            dimension_semantics=("parallel",)),   # shard batch over v7x cores
    )(x,
      layer["ln1_g"], layer["ln1_b"],
      layer["wqkv"], layer["bqkv"],
      layer["wo"], layer["bo"],
      layer["ln2_g"], layer["ln2_b"],
      layer["w1"], layer["b1"],
      layer["w2"], layer["b2"])


def final_layernorm(cls_tok, g, b):
    B = cls_tok.shape[0]
    return pl.pallas_call(
        _final_ln_kernel,
        out_shape=jax.ShapeDtypeStruct((B, HIDDEN), jnp.float32),
        grid=(1,),
        in_specs=[
            pl.BlockSpec((B, HIDDEN), lambda i: (0, 0)),
            pl.BlockSpec((1, HIDDEN), lambda i: (0, 0)),
            pl.BlockSpec((1, HIDDEN), lambda i: (0, 0)),
        ],
        out_specs=pl.BlockSpec((B, HIDDEN), lambda i: (0, 0)),
    )(cls_tok, g, b)


# ----------------------------- parameter init --------------------------------
def init_params(key):
    def normal(k, shape, std=0.02, dtype=jnp.float32):
        return (std * jax.random.normal(k, shape)).astype(dtype)

    keys = iter(jax.random.split(key, 8 + 8 * NUM_LAYERS))
    params = {
        # weight matrices stored bf16 (MXU-native); everything else f32
        "patch_w": normal(next(keys), (PATCH_DIM, HIDDEN), dtype=jnp.bfloat16),
        "patch_b": jnp.zeros((1, HIDDEN), jnp.float32),
        "cls": normal(next(keys), (1, 1, HIDDEN)),
        "pos": normal(next(keys), (1, SEQ, HIDDEN)),
        "lnf_g": jnp.ones((1, HIDDEN), jnp.float32),
        "lnf_b": jnp.zeros((1, HIDDEN), jnp.float32),
        "layers": [],
    }
    for _ in range(NUM_LAYERS):
        layer = {
            "ln1_g": jnp.ones((1, HIDDEN), jnp.float32),
            "ln1_b": jnp.zeros((1, HIDDEN), jnp.float32),
            # Q, K, V projections concatenated along N: [D, 3D]
            "wqkv": normal(next(keys), (HIDDEN, 3 * HIDDEN), dtype=jnp.bfloat16),
            "bqkv": jnp.zeros((1, 3 * HIDDEN), jnp.float32),
            "wo": normal(next(keys), (HIDDEN, HIDDEN), dtype=jnp.bfloat16),
            "bo": jnp.zeros((1, HIDDEN), jnp.float32),
            "ln2_g": jnp.ones((1, HIDDEN), jnp.float32),
            "ln2_b": jnp.zeros((1, HIDDEN), jnp.float32),
            "w1": normal(next(keys), (HIDDEN, INTERMEDIATE), dtype=jnp.bfloat16),
            "b1": jnp.zeros((1, INTERMEDIATE), jnp.float32),
            "w2": normal(next(keys), (INTERMEDIATE, HIDDEN), dtype=jnp.bfloat16),
            "b2": jnp.zeros((1, HIDDEN), jnp.float32),
        }
        params["layers"].append(layer)
    return params


# ----------------------------- full forward pass ------------------------------
def image_encoder_forward(image, params):
    """image: [B, C, H, W] uint8-range floats (0..255). Returns [B, HIDDEN]."""
    B = image.shape[0]
    # ViTImageProcessor: rescale (1/255) + normalize (mean=0.5, std=0.5)
    pixel = ((image.astype(jnp.float32) / 255.0) - 0.5) / 0.5        # [B,C,H,W]

    # Patch embedding: conv(kernel=stride=P) == per-patch flatten + matmul
    gh = gw = GRID_PATCHES
    patches = pixel.reshape(B, NUM_CHANNELS, gh, PATCH_SIZE, gw, PATCH_SIZE)
    patches = patches.transpose(0, 2, 4, 1, 3, 5)                    # [B,gh,gw,C,P,P]
    patches = patches.reshape(B * NUM_PATCHES, PATCH_DIM)
    emb = patch_embed(patches, params["patch_w"], params["patch_b"])  # [B*NP, D]
    emb = emb.reshape(B, NUM_PATCHES, HIDDEN)

    cls = jnp.broadcast_to(params["cls"], (B, 1, HIDDEN))
    x = jnp.concatenate([cls, emb], axis=1) + params["pos"]          # [B, S, D]
    # pad sequence to a multiple of 8 sublanes; padded rows are masked in attn
    x = jnp.pad(x, ((0, 0), (0, SEQ_PAD - SEQ), (0, 0)))             # [B,S_PAD,D]

    for layer in params["layers"]:
        x = encoder_layer(x, layer)          # one fused pallas_call per layer

    # final LayerNorm on the [CLS] token only (row-wise LN commutes with slice)
    return final_layernorm(x[:, 0, :], params["lnf_g"], params["lnf_b"])


# ------------------------------------ main ------------------------------------
if __name__ == "__main__":
    key = jax.random.PRNGKey(0)
    k_img, k_params = jax.random.split(key)

    # synthetic image in 0..255 (NCHW, matching PyTorch conv input convention)
    image = jax.random.uniform(
        k_img, (2, NUM_CHANNELS, IMAGE_SIZE, IMAGE_SIZE),
        minval=0.0, maxval=255.0, dtype=jnp.float32)

    params = init_params(k_params)

    forward = jax.jit(image_encoder_forward)
    out = forward(image, params)
    out = jax.block_until_ready(out)

    assert out.shape == (2, HIDDEN), out.shape
    assert out.dtype == jnp.float32
    assert bool(jnp.all(jnp.isfinite(out)))
    print("KERNEL_OK")
</pallas_src>

<mosaic_0001>
module attributes {stable_mosaic.version = 11 : i64} {
  func.func @_patch_embed_kernel(%arg0: i32, %arg1: memref<32x192xf32, #tpu.memory_space<vmem>>, %arg2: memref<192x128xbf16, #tpu.memory_space<vmem>>, %arg3: memref<1x128xf32, #tpu.memory_space<vmem>>, %arg4: memref<32x128xf32, #tpu.memory_space<vmem>>) attributes {dimension_semantics = [#tpu.dimension_semantics<arbitrary>], iteration_bounds = array<i64: 1>, scalar_prefetch = 0 : i64, scratch_operands = 0 : i64, tpu.core_type = #tpu.core_type<tc>, window_params = [{pipeline_mode = #tpu.pipeline_mode<synchronous>, transform_indices = @transform_0, window_bounds = array<i64: 32, 192>}, {pipeline_mode = #tpu.pipeline_mode<synchronous>, transform_indices = @transform_1, window_bounds = array<i64: 192, 128>}, {pipeline_mode = #tpu.pipeline_mode<synchronous>, transform_indices = @transform_2, window_bounds = array<i64: 1, 128>}, {pipeline_mode = #tpu.pipeline_mode<synchronous>, transform_indices = @transform_3, window_bounds = array<i64: 32, 128>}]} {
    %c0 = arith.constant 0 : index
    %c0_0 = arith.constant 0 : index
    %0 = vector.load %arg1[%c0, %c0_0] : memref<32x192xf32, #tpu.memory_space<vmem>>, vector<32x192xf32>
    %1 = arith.truncf %0 : vector<32x192xf32> to vector<32x192xbf16>
    %c0_1 = arith.constant 0 : index
    %c0_2 = arith.constant 0 : index
    %2 = vector.load %arg2[%c0_1, %c0_2] : memref<192x128xbf16, #tpu.memory_space<vmem>>, vector<192x128xbf16>
    %cst = arith.constant dense<0.000000e+00> : vector<32x128xf32>
    %3 = tpu.matmul %1, %2, %cst {dimension_numbers = #tpu.dot_dimension_numbers<[1], [0], [0], [1], [0, 0, 1, 1], [], []>} : vector<32x192xbf16>, vector<192x128xbf16>, vector<32x128xf32> -> vector<32x128xf32>
    %c0_3 = arith.constant 0 : index
    %c0_4 = arith.constant 0 : index
    %4 = vector.load %arg3[%c0_3, %c0_4] : memref<1x128xf32, #tpu.memory_space<vmem>>, vector<1x128xf32>
    %5 = vector.broadcast %4 : vector<1x128xf32> to vector<32x128xf32>
    %6 = arith.addf %3, %5 : vector<32x128xf32>
    %c0_5 = arith.constant 0 : index
    %c0_6 = arith.constant 0 : index
    %7 = vector.load %arg4[%c0_5, %c0_6] : memref<32x128xf32, #tpu.memory_space<vmem>>, vector<32x128xf32>
    tpu.vector_store %arg4[%c0_5, %c0_6], %6 {strides = array<i32>} : memref<32x128xf32, #tpu.memory_space<vmem>>, vector<32x128xf32>,
    return
  }
  func.func @transform_0(%arg0: i32) -> (i32, i32) {
    %c0_i32 = arith.constant 0 : i32
    %c0_i32_0 = arith.constant 0 : i32
    %c0_i32_1 = arith.constant 0 : i32
    return %c0_i32, %c0_i32_0 : i32, i32
  }
  func.func @transform_1(%arg0: i32) -> (i32, i32) {
    %c0_i32 = arith.constant 0 : i32
    %c0_i32_0 = arith.constant 0 : i32
    %c0_i32_1 = arith.constant 0 : i32
    return %c0_i32, %c0_i32_0 : i32, i32
  }
  func.func @transform_2(%arg0: i32) -> (i32, i32) {
    %c0_i32 = arith.constant 0 : i32
    %c0_i32_0 = arith.constant 0 : i32
    %c0_i32_1 = arith.constant 0 : i32
    return %c0_i32, %c0_i32_0 : i32, i32
  }
  func.func @transform_3(%arg0: i32) -> (i32, i32) {
    %c0_i32 = arith.constant 0 : i32
    %c0_i32_0 = arith.constant 0 : i32
    %c0_i32_1 = arith.constant 0 : i32
    return %c0_i32, %c0_i32_0 : i32, i32
  }
}

module attributes {stable_mosaic.version = 11 : i64} {
  func.func @_final_ln_kernel(%arg0: i32, %arg1: memref<2x128xf32, #tpu.memory_space<vmem>>, %arg2: memref<1x128xf32, #tpu.memory_space<vmem>>, %arg3: memref<1x128xf32, #tpu.memory_space<vmem>>, %arg4: memref<2x128xf32, #tpu.memory_space<vmem>>) attributes {dimension_semantics = [#tpu.dimension_semantics<arbitrary>], iteration_bounds = array<i64: 1>, scalar_prefetch = 0 : i64, scratch_operands = 0 : i64, tpu.core_type = #tpu.core_type<tc>, window_params = [{pipeline_mode = #tpu.pipeline_mode<synchronous>, transform_indices = @transform_0, window_bounds = array<i64: 2, 128>}, {pipeline_mode = #tpu.pipeline_mode<synchronous>, transform_indices = @transform_1, window_bounds = array<i64: 1, 128>}, {pipeline_mode = #tpu.pipeline_mode<synchronous>, transform_indices = @transform_2, window_bounds = array<i64: 1, 128>}, {pipeline_mode = #tpu.pipeline_mode<synchronous>, transform_indices = @transform_3, window_bounds = array<i64: 2, 128>}]} {
    %c0 = arith.constant 0 : index
    %c0_0 = arith.constant 0 : index
    %0 = vector.load %arg1[%c0, %c0_0] : memref<2x128xf32, #tpu.memory_space<vmem>>, vector<2x128xf32>
    %c0_1 = arith.constant 0 : index
    %c0_2 = arith.constant 0 : index
    %1 = vector.load %arg2[%c0_1, %c0_2] : memref<1x128xf32, #tpu.memory_space<vmem>>, vector<1x128xf32>
    %c0_3 = arith.constant 0 : index
    %c0_4 = arith.constant 0 : index
    %2 = vector.load %arg3[%c0_3, %c0_4] : memref<1x128xf32, #tpu.memory_space<vmem>>, vector<1x128xf32>
    %cst = arith.constant dense<0.000000e+00> : vector<2xf32>
    %3 = vector.multi_reduction <add>, %0, %cst [1] : vector<2x128xf32> to vector<2xf32>
    %4 = vector.shape_cast %3 : vector<2xf32> to vector<2x1xf32>
    %cst_5 = arith.constant 1.280000e+02 : f32
    %5 = vector.broadcast %cst_5 : f32 to vector<2x1xf32>
    %6 = arith.divf %4, %5 : vector<2x1xf32>
    %7 = vector.broadcast %6 : vector<2x1xf32> to vector<2x128xf32>
    %8 = arith.subf %0, %7 : vector<2x128xf32>
    %9 = arith.mulf %8, %8 : vector<2x128xf32>
    %cst_6 = arith.constant dense<0.000000e+00> : vector<2xf32>
    %10 = vector.multi_reduction <add>, %9, %cst_6 [1] : vector<2x128xf32> to vector<2xf32>
    %11 = vector.shape_cast %10 : vector<2xf32> to vector<2x1xf32>
    %cst_7 = arith.constant 1.280000e+02 : f32
    %12 = vector.broadcast %cst_7 : f32 to vector<2x1xf32>
    %13 = arith.divf %11, %12 : vector<2x1xf32>
    %14 = vector.broadcast %6 : vector<2x1xf32> to vector<2x128xf32>
    %15 = arith.subf %0, %14 : vector<2x128xf32>
    %cst_8 = arith.constant 9.99999996E-13 : f32
    %16 = vector.broadcast %cst_8 : f32 to vector<2x1xf32>
    %17 = arith.addf %13, %16 : vector<2x1xf32>
    %18 = math.rsqrt %17 : vector<2x1xf32>
    %19 = vector.broadcast %18 : vector<2x1xf32> to vector<2x128xf32>
    %20 = arith.mulf %15, %19 : vector<2x128xf32>
    %21 = vector.broadcast %1 : vector<1x128xf32> to vector<2x128xf32>
    %22 = arith.mulf %20, %21 : vector<2x128xf32>
    %23 = vector.broadcast %2 : vector<1x128xf32> to vector<2x128xf32>
    %24 = arith.addf %22, %23 : vector<2x128xf32>
    %c0_9 = arith.constant 0 : index
    %c0_10 = arith.constant 0 : index
    %25 = vector.load %arg4[%c0_9, %c0_10] : memref<2x128xf32, #tpu.memory_space<vmem>>, vector<2x128xf32>
    tpu.vector_store %arg4[%c0_9, %c0_10], %24 {strides = array<i32>} : memref<2x128xf32, #tpu.memory_space<vmem>>, vector<2x128xf32>,
    return
  }
  func.func @transform_0(%arg0: i32) -> (i32, i32) {
    %c0_i32 = arith.constant 0 : i32
    %c0_i32_0 = arith.constant 0 : i32
    %c0_i32_1 = arith.constant 0 : i32
    return %c0_i32, %c0_i32_0 : i32, i32
  }
  func.func @transform_1(%arg0: i32) -> (i32, i32) {
    %c0_i32 = arith.constant 0 : i32
    %c0_i32_0 = arith.constant 0 : i32
    %c0_i32_1 = arith.constant 0 : i32
    return %c0_i32, %c0_i32_0 : i32, i32
  }
  func.func @transform_2(%arg0: i32) -> (i32, i32) {
    %c0_i32 = arith.constant 0 : i32
    %c0_i32_0 = arith.constant 0 : i32
    %c0_i32_1 = arith.constant 0 : i32
    return %c0_i32, %c0_i32_0 : i32, i32
  }
  func.func @transform_3(%arg0: i32) -> (i32, i32) {
    %c0_i32 = arith.constant 0 : i32
    %c0_i32_0 = arith.constant 0 : i32
    %c0_i32_1 = arith.constant 0 : i32
    return %c0_i32, %c0_i32_0 : i32, i32
  }
}

module attributes {stable_mosaic.version = 11 : i64} {
  func.func @_layer_kernel(%arg0: i32, %arg1: memref<1x24x128xf32, #tpu.memory_space<vmem>>, %arg2: memref<1x128xf32, #tpu.memory_space<vmem>>, %arg3: memref<1x128xf32, #tpu.memory_space<vmem>>, %arg4: memref<128x384xbf16, #tpu.memory_space<vmem>>, %arg5: memref<1x384xf32, #tpu.memory_space<vmem>>, %arg6: memref<128x128xbf16, #tpu.memory_space<vmem>>, %arg7: memref<1x128xf32, #tpu.memory_space<vmem>>, %arg8: memref<1x128xf32, #tpu.memory_space<vmem>>, %arg9: memref<1x128xf32, #tpu.memory_space<vmem>>, %arg10: memref<128x512xbf16, #tpu.memory_space<vmem>>, %arg11: memref<1x512xf32, #tpu.memory_space<vmem>>, %arg12: memref<512x128xbf16, #tpu.memory_space<vmem>>, %arg13: memref<1x128xf32, #tpu.memory_space<vmem>>, %arg14: memref<1x24x128xf32, #tpu.memory_space<vmem>>) attributes {dimension_semantics = [#tpu.dimension_semantics<parallel>], iteration_bounds = array<i64: 2>, scalar_prefetch = 0 : i64, scratch_operands = 0 : i64, tpu.core_type = #tpu.core_type<tc>, window_params = [{transform_indices = @transform_0, window_bounds = array<i64: 1, 24, 128>}, {pipeline_mode = #tpu.pipeline_mode<synchronous>, transform_indices = @transform_1, window_bounds = array<i64: 1, 128>}, {pipeline_mode = #tpu.pipeline_mode<synchronous>, transform_indices = @transform_2, window_bounds = array<i64: 1, 128>}, {pipeline_mode = #tpu.pipeline_mode<synchronous>, transform_indices = @transform_3, window_bounds = array<i64: 128, 384>}, {pipeline_mode = #tpu.pipeline_mode<synchronous>, transform_indices = @transform_4, window_bounds = array<i64: 1, 384>}, {pipeline_mode = #tpu.pipeline_mode<synchronous>, transform_indices = @transform_5, window_bounds = array<i64: 128, 128>}, {pipeline_mode = #tpu.pipeline_mode<synchronous>, transform_indices = @transform_6, window_bounds = array<i64: 1, 128>}, {pipeline_mode = #tpu.pipeline_mode<synchronous>, transform_indices = @transform_7, window_bounds = array<i64: 1, 128>}, {pipeline_mode = #tpu.pipeline_mode<synchronous>, transform_indices = @transform_8, window_bounds = array<i64: 1, 128>}, {pipeline_mode = #tpu.pipeline_mode<synchronous>, transform_indices = @transform_9, window_bounds = array<i64: 128, 512>}, {pipeline_mode = #tpu.pipeline_mode<synchronous>, transform_indices = @transform_10, window_bounds = array<i64: 1, 512>}, {pipeline_mode = #tpu.pipeline_mode<synchronous>, transform_indices = @transform_11, window_bounds = array<i64: 512, 128>}, {pipeline_mode = #tpu.pipeline_mode<synchronous>, transform_indices = @transform_12, window_bounds = array<i64: 1, 128>}, {transform_indices = @transform_13, window_bounds = array<i64: 1, 24, 128>}]} {
    %c0 = arith.constant 0 : index
    %c0_0 = arith.constant 0 : index
    %c0_1 = arith.constant 0 : index
    %0 = vector.load %arg1[%c0, %c0_0, %c0_1] : memref<1x24x128xf32, #tpu.memory_space<vmem>>, vector<1x24x128xf32>
    %1 = vector.shape_cast %0 : vector<1x24x128xf32> to vector<24x128xf32>
    %c0_2 = arith.constant 0 : index
    %c0_3 = arith.constant 0 : index
    %2 = vector.load %arg2[%c0_2, %c0_3] : memref<1x128xf32, #tpu.memory_space<vmem>>, vector<1x128xf32>
    %c0_4 = arith.constant 0 : index
    %c0_5 = arith.constant 0 : index
    %3 = vector.load %arg3[%c0_4, %c0_5] : memref<1x128xf32, #tpu.memory_space<vmem>>, vector<1x128xf32>
    %cst = arith.constant dense<0.000000e+00> : vector<24xf32>
    %4 = vector.multi_reduction <add>, %1, %cst [1] : vector<24x128xf32> to vector<24xf32>
    %5 = vector.shape_cast %4 : vector<24xf32> to vector<24x1xf32>
    %cst_6 = arith.constant 1.280000e+02 : f32
    %6 = vector.broadcast %cst_6 : f32 to vector<24x1xf32>
    %7 = arith.divf %5, %6 : vector<24x1xf32>
    %8 = vector.broadcast %7 : vector<24x1xf32> to vector<24x128xf32>
    %9 = arith.subf %1, %8 : vector<24x128xf32>
    %10 = arith.mulf %9, %9 : vector<24x128xf32>
    %cst_7 = arith.constant dense<0.000000e+00> : vector<24xf32>
    %11 = vector.multi_reduction <add>, %10, %cst_7 [1] : vector<24x128xf32> to vector<24xf32>
    %12 = vector.shape_cast %11 : vector<24xf32> to vector<24x1xf32>
    %cst_8 = arith.constant 1.280000e+02 : f32
    %13 = vector.broadcast %cst_8 : f32 to vector<24x1xf32>
    %14 = arith.divf %12, %13 : vector<24x1xf32>
    %15 = vector.broadcast %7 : vector<24x1xf32> to vector<24x128xf32>
    %16 = arith.subf %1, %15 : vector<24x128xf32>
    %cst_9 = arith.constant 9.99999996E-13 : f32
    %17 = vector.broadcast %cst_9 : f32 to vector<24x1xf32>
    %18 = arith.addf %14, %17 : vector<24x1xf32>
    %19 = math.rsqrt %18 : vector<24x1xf32>
    %20 = vector.broadcast %19 : vector<24x1xf32> to vector<24x128xf32>
    %21 = arith.mulf %16, %20 : vector<24x128xf32>
    %22 = vector.broadcast %2 : vector<1x128xf32> to vector<24x128xf32>
    %23 = arith.mulf %21, %22 : vector<24x128xf32>
    %24 = vector.broadcast %3 : vector<1x128xf32> to vector<24x128xf32>
    %25 = arith.addf %23, %24 : vector<24x128xf32>
    %26 = arith.truncf %25 : vector<24x128xf32> to vector<24x128xbf16>
    %c0_10 = arith.constant 0 : index
    %c0_11 = arith.constant 0 : index
    %27 = vector.load %arg4[%c0_10, %c0_11] : memref<128x384xbf16, #tpu.memory_space<vmem>>, vector<128x384xbf16>
    %cst_12 = arith.constant dense<0.000000e+00> : vector<24x384xf32>
    %28 = tpu.matmul %26, %27, %cst_12 {dimension_numbers = #tpu.dot_dimension_numbers<[1], [0], [0], [1], [0, 0, 1, 1], [], []>} : vector<24x128xbf16>, vector<128x384xbf16>, vector<24x384xf32> -> vector<24x384xf32>
    %c0_13 = arith.constant 0 : index
    %c0_14 = arith.constant 0 : index
    %29 = vector.load %arg5[%c0_13, %c0_14] : memref<1x384xf32, #tpu.memory_space<vmem>>, vector<1x384xf32>
    %30 = vector.broadcast %29 : vector<1x384xf32> to vector<24x384xf32>
    %31 = arith.addf %28, %30 : vector<24x384xf32>
    %32 = tpu.iota {dimensions = array<i32: 1>} : vector<24x24xi32>
    %c17_i32 = arith.constant 17 : i32
    %33 = vector.broadcast %c17_i32 : i32 to vector<24x24xi32>
    %34 = arith.cmpi slt, %32, %33 : vector<24x24xi32>
    %35 = vector.extract_strided_slice %31 {offsets = [0, 0], sizes = [24, 32], strides = [1, 1]} : vector<24x384xf32> to vector<24x32xf32>
    %36 = vector.extract_strided_slice %31 {offsets = [0, 128], sizes = [24, 32], strides = [1, 1]} : vector<24x384xf32> to vector<24x32xf32>
    %37 = vector.extract_strided_slice %31 {offsets = [0, 256], sizes = [24, 32], strides = [1, 1]} : vector<24x384xf32> to vector<24x32xf32>
    %38 = arith.truncf %35 : vector<24x32xf32> to vector<24x32xbf16>
    %39 = arith.truncf %36 : vector<24x32xf32> to vector<24x32xbf16>
    %cst_15 = arith.constant dense<0.000000e+00> : vector<24x24xf32>
    %40 = tpu.matmul %38, %39, %cst_15 {dimension_numbers = #tpu.dot_dimension_numbers<[1], [1], [0], [0], [0, 0, 1, 0], [], []>} : vector<24x32xbf16>, vector<24x32xbf16>, vector<24x24xf32> -> vector<24x24xf32>
    %cst_16 = arith.constant 0.176776692 : f32
    %41 = vector.broadcast %cst_16 : f32 to vector<24x24xf32>
    %42 = arith.mulf %40, %41 : vector<24x24xf32>
    %cst_17 = arith.constant -1.000000e+30 : f32
    %43 = vector.broadcast %cst_17 : f32 to vector<24x24xf32>
    %44 = arith.select %34, %42, %43 : vector<24x24xi1>, vector<24x24xf32>
    %cst_18 = arith.constant dense<0xFF800000> : vector<24xf32>
    %45 = vector.multi_reduction <maximumf>, %44, %cst_18 [1] : vector<24x24xf32> to vector<24xf32>
    %46 = vector.shape_cast %45 : vector<24xf32> to vector<24x1xf32>
    %47 = vector.broadcast %46 : vector<24x1xf32> to vector<24x24xf32>
    %48 = arith.subf %44, %47 : vector<24x24xf32>
    %49 = math.exp %48 : vector<24x24xf32>
    %cst_19 = arith.constant dense<0.000000e+00> : vector<24xf32>
    %50 = vector.multi_reduction <add>, %49, %cst_19 [1] : vector<24x24xf32> to vector<24xf32>
    %51 = vector.shape_cast %50 : vector<24xf32> to vector<24x1xf32>
    %52 = tpu.reciprocal %51 {approx = true} : vector<24x1xf32> -> vector<24x1xf32>
    %53 = vector.broadcast %52 : vector<24x1xf32> to vector<24x24xf32>
    %54 = arith.mulf %49, %53 : vector<24x24xf32>
    %55 = arith.truncf %54 : vector<24x24xf32> to vector<24x24xbf16>
    %56 = arith.truncf %37 : vector<24x32xf32> to vector<24x32xbf16>
    %cst_20 = arith.constant dense<0.000000e+00> : vector<24x32xf32>
    %57 = tpu.matmul %55, %56, %cst_20 {dimension_numbers = #tpu.dot_dimension_numbers<[1], [0], [0], [1], [0, 0, 1, 1], [], []>} : vector<24x24xbf16>, vector<24x32xbf16>, vector<24x32xf32> -> vector<24x32xf32>
    %58 = vector.extract_strided_slice %31 {offsets = [0, 32], sizes = [24, 32], strides = [1, 1]} : vector<24x384xf32> to vector<24x32xf32>
    %59 = vector.extract_strided_slice %31 {offsets = [0, 160], sizes = [24, 32], strides = [1, 1]} : vector<24x384xf32> to vector<24x32xf32>
    %60 = vector.extract_strided_slice %31 {offsets = [0, 288], sizes = [24, 32], strides = [1, 1]} : vector<24x384xf32> to vector<24x32xf32>
    %61 = arith.truncf %58 : vector<24x32xf32> to vector<24x32xbf16>
    %62 = arith.truncf %59 : vector<24x32xf32> to vector<24x32xbf16>
    %cst_21 = arith.constant dense<0.000000e+00> : vector<24x24xf32>
    %63 = tpu.matmul %61, %62, %cst_21 {dimension_numbers = #tpu.dot_dimension_numbers<[1], [1], [0], [0], [0, 0, 1, 0], [], []>} : vector<24x32xbf16>, vector<24x32xbf16>, vector<24x24xf32> -> vector<24x24xf32>
    %cst_22 = arith.constant 0.176776692 : f32
    %64 = vector.broadcast %cst_22 : f32 to vector<24x24xf32>
    %65 = arith.mulf %63, %64 : vector<24x24xf32>
    %cst_23 = arith.constant -1.000000e+30 : f32
    %66 = vector.broadcast %cst_23 : f32 to vector<24x24xf32>
    %67 = arith.select %34, %65, %66 : vector<24x24xi1>, vector<24x24xf32>
    %cst_24 = arith.constant dense<0xFF800000> : vector<24xf32>
    %68 = vector.multi_reduction <maximumf>, %67, %cst_24 [1] : vector<24x24xf32> to vector<24xf32>
    %69 = vector.shape_cast %68 : vector<24xf32> to vector<24x1xf32>
    %70 = vector.broadcast %69 : vector<24x1xf32> to vector<24x24xf32>
    %71 = arith.subf %67, %70 : vector<24x24xf32>
    %72 = math.exp %71 : vector<24x24xf32>
    %cst_25 = arith.constant dense<0.000000e+00> : vector<24xf32>
    %73 = vector.multi_reduction <add>, %72, %cst_25 [1] : vector<24x24xf32> to vector<24xf32>
    %74 = vector.shape_cast %73 : vector<24xf32> to vector<24x1xf32>
    %75 = tpu.reciprocal %74 {approx = true} : vector<24x1xf32> -> vector<24x1xf32>
    %76 = vector.broadcast %75 : vector<24x1xf32> to vector<24x24xf32>
    %77 = arith.mulf %72, %76 : vector<24x24xf32>
    %78 = arith.truncf %77 : vector<24x24xf32> to vector<24x24xbf16>
    %79 = arith.truncf %60 : vector<24x32xf32> to vector<24x32xbf16>
    %cst_26 = arith.constant dense<0.000000e+00> : vector<24x32xf32>
    %80 = tpu.matmul %78, %79, %cst_26 {dimension_numbers = #tpu.dot_dimension_numbers<[1], [0], [0], [1], [0, 0, 1, 1], [], []>} : vector<24x24xbf16>, vector<24x32xbf16>, vector<24x32xf32> -> vector<24x32xf32>
    %81 = vector.extract_strided_slice %31 {offsets = [0, 64], sizes = [24, 32], strides = [1, 1]} : vector<24x384xf32> to vector<24x32xf32>
    %82 = vector.extract_strided_slice %31 {offsets = [0, 192], sizes = [24, 32], strides = [1, 1]} : vector<24x384xf32> to vector<24x32xf32>
    %83 = vector.extract_strided_slice %31 {offsets = [0, 320], sizes = [24, 32], strides = [1, 1]} : vector<24x384xf32> to vector<24x32xf32>
    %84 = arith.truncf %81 : vector<24x32xf32> to vector<24x32xbf16>
    %85 = arith.truncf %82 : vector<24x32xf32> to vector<24x32xbf16>
    %cst_27 = arith.constant dense<0.000000e+00> : vector<24x24xf32>
    %86 = tpu.matmul %84, %85, %cst_27 {dimension_numbers = #tpu.dot_dimension_numbers<[1], [1], [0], [0], [0, 0, 1, 0], [], []>} : vector<24x32xbf16>, vector<24x32xbf16>, vector<24x24xf32> -> vector<24x24xf32>
    %cst_28 = arith.constant 0.176776692 : f32
    %87 = vector.broadcast %cst_28 : f32 to vector<24x24xf32>
    %88 = arith.mulf %86, %87 : vector<24x24xf32>
    %cst_29 = arith.constant -1.000000e+30 : f32
    %89 = vector.broadcast %cst_29 : f32 to vector<24x24xf32>
    %90 = arith.select %34, %88, %89 : vector<24x24xi1>, vector<24x24xf32>
    %cst_30 = arith.constant dense<0xFF800000> : vector<24xf32>
    %91 = vector.multi_reduction <maximumf>, %90, %cst_30 [1] : vector<24x24xf32> to vector<24xf32>
    %92 = vector.shape_cast %91 : vector<24xf32> to vector<24x1xf32>
    %93 = vector.broadcast %92 : vector<24x1xf32> to vector<24x24xf32>
    %94 = arith.subf %90, %93 : vector<24x24xf32>
    %95 = math.exp %94 : vector<24x24xf32>
    %cst_31 = arith.constant dense<0.000000e+00> : vector<24xf32>
    %96 = vector.multi_reduction <add>, %95, %cst_31 [1] : vector<24x24xf32> to vector<24xf32>
    %97 = vector.shape_cast %96 : vector<24xf32> to vector<24x1xf32>
    %98 = tpu.reciprocal %97 {approx = true} : vector<24x1xf32> -> vector<24x1xf32>
    %99 = vector.broadcast %98 : vector<24x1xf32> to vector<24x24xf32>
    %100 = arith.mulf %95, %99 : vector<24x24xf32>
    %101 = arith.truncf %100 : vector<24x24xf32> to vector<24x24xbf16>
    %102 = arith.truncf %83 : vector<24x32xf32> to vector<24x32xbf16>
    %cst_32 = arith.constant dense<0.000000e+00> : vector<24x32xf32>
    %103 = tpu.matmul %101, %102, %cst_32 {dimension_numbers = #tpu.dot_dimension_numbers<[1], [0], [0], [1], [0, 0, 1, 1], [], []>} : vector<24x24xbf16>, vector<24x32xbf16>, vector<24x32xf32> -> vector<24x32xf32>
    %104 = vector.extract_strided_slice %31 {offsets = [0, 96], sizes = [24, 32], strides = [1, 1]} : vector<24x384xf32> to vector<24x32xf32>
    %105 = vector.extract_strided_slice %31 {offsets = [0, 224], sizes = [24, 32], strides = [1, 1]} : vector<24x384xf32> to vector<24x32xf32>
    %106 = vector.extract_strided_slice %31 {offsets = [0, 352], sizes = [24, 32], strides = [1, 1]} : vector<24x384xf32> to vector<24x32xf32>
    %107 = arith.truncf %104 : vector<24x32xf32> to vector<24x32xbf16>
    %108 = arith.truncf %105 : vector<24x32xf32> to vector<24x32xbf16>
    %cst_33 = arith.constant dense<0.000000e+00> : vector<24x24xf32>
    %109 = tpu.matmul %107, %108, %cst_33 {dimension_numbers = #tpu.dot_dimension_numbers<[1], [1], [0], [0], [0, 0, 1, 0], [], []>} : vector<24x32xbf16>, vector<24x32xbf16>, vector<24x24xf32> -> vector<24x24xf32>
    %cst_34 = arith.constant 0.176776692 : f32
    %110 = vector.broadcast %cst_34 : f32 to vector<24x24xf32>
    %111 = arith.mulf %109, %110 : vector<24x24xf32>
    %cst_35 = arith.constant -1.000000e+30 : f32
    %112 = vector.broadcast %cst_35 : f32 to vector<24x24xf32>
    %113 = arith.select %34, %111, %112 : vector<24x24xi1>, vector<24x24xf32>
    %cst_36 = arith.constant dense<0xFF800000> : vector<24xf32>
    %114 = vector.multi_reduction <maximumf>, %113, %cst_36 [1] : vector<24x24xf32> to vector<24xf32>
    %115 = vector.shape_cast %114 : vector<24xf32> to vector<24x1xf32>
    %116 = vector.broadcast %115 : vector<24x1xf32> to vector<24x24xf32>
    %117 = arith.subf %113, %116 : vector<24x24xf32>
    %118 = math.exp %117 : vector<24x24xf32>
    %cst_37 = arith.constant dense<0.000000e+00> : vector<24xf32>
    %119 = vector.multi_reduction <add>, %118, %cst_37 [1] : vector<24x24xf32> to vector<24xf32>
    %120 = vector.shape_cast %119 : vector<24xf32> to vector<24x1xf32>
    %121 = tpu.reciprocal %120 {approx = true} : vector<24x1xf32> -> vector<24x1xf32>
    %122 = vector.broadcast %121 : vector<24x1xf32> to vector<24x24xf32>
    %123 = arith.mulf %118, %122 : vector<24x24xf32>
    %124 = arith.truncf %123 : vector<24x24xf32> to vector<24x24xbf16>
    %125 = arith.truncf %106 : vector<24x32xf32> to vector<24x32xbf16>
    %cst_38 = arith.constant dense<0.000000e+00> : vector<24x32xf32>
    %126 = tpu.matmul %124, %125, %cst_38 {dimension_numbers = #tpu.dot_dimension_numbers<[1], [0], [0], [1], [0, 0, 1, 1], [], []>} : vector<24x24xbf16>, vector<24x32xbf16>, vector<24x32xf32> -> vector<24x32xf32>
    %127 = tpu.concatenate %57, %80, %103, %126 in 1 : vector<24x32xf32>, vector<24x32xf32>, vector<24x32xf32>, vector<24x32xf32> -> vector<24x128xf32>
    %128 = arith.truncf %127 : vector<24x128xf32> to vector<24x128xbf16>
    %c0_39 = arith.constant 0 : index
    %c0_40 = arith.constant 0 : index
    %129 = vector.load %arg6[%c0_39, %c0_40] : memref<128x128xbf16, #tpu.memory_space<vmem>>, vector<128x128xbf16>
    %cst_41 = arith.constant dense<0.000000e+00> : vector<24x128xf32>
    %130 = tpu.matmul %128, %129, %cst_41 {dimension_numbers = #tpu.dot_dimension_numbers<[1], [0], [0], [1], [0, 0, 1, 1], [], []>} : vector<24x128xbf16>, vector<128x128xbf16>, vector<24x128xf32> -> vector<24x128xf32>
    %c0_42 = arith.constant 0 : index
    %c0_43 = arith.constant 0 : index
    %131 = vector.load %arg7[%c0_42, %c0_43] : memref<1x128xf32, #tpu.memory_space<vmem>>, vector<1x128xf32>
    %132 = vector.broadcast %131 : vector<1x128xf32> to vector<24x128xf32>
    %133 = arith.addf %130, %132 : vector<24x128xf32>
    %134 = arith.addf %1, %133 : vector<24x128xf32>
    %c0_44 = arith.constant 0 : index
    %c0_45 = arith.constant 0 : index
    %135 = vector.load %arg8[%c0_44, %c0_45] : memref<1x128xf32, #tpu.memory_space<vmem>>, vector<1x128xf32>
    %c0_46 = arith.constant 0 : index
    %c0_47 = arith.constant 0 : index
    %136 = vector.load %arg9[%c0_46, %c0_47] : memref<1x128xf32, #tpu.memory_space<vmem>>, vector<1x128xf32>
    %cst_48 = arith.constant dense<0.000000e+00> : vector<24xf32>
    %137 = vector.multi_reduction <add>, %134, %cst_48 [1] : vector<24x128xf32> to vector<24xf32>
    %138 = vector.shape_cast %137 : vector<24xf32> to vector<24x1xf32>
    %cst_49 = arith.constant 1.280000e+02 : f32
    %139 = vector.broadcast %cst_49 : f32 to vector<24x1xf32>
    %140 = arith.divf %138, %139 : vector<24x1xf32>
    %141 = vector.broadcast %140 : vector<24x1xf32> to vector<24x128xf32>
    %142 = arith.subf %134, %141 : vector<24x128xf32>
    %143 = arith.mulf %142, %142 : vector<24x128xf32>
    %cst_50 = arith.constant dense<0.000000e+00> : vector<24xf32>
    %144 = vector.multi_reduction <add>, %143, %cst_50 [1] : vector<24x128xf32> to vector<24xf32>
    %145 = vector.shape_cast %144 : vector<24xf32> to vector<24x1xf32>
    %cst_51 = arith.constant 1.280000e+02 : f32
    %146 = vector.broadcast %cst_51 : f32 to vector<24x1xf32>
    %147 = arith.divf %145, %146 : vector<24x1xf32>
    %148 = vector.broadcast %140 : vector<24x1xf32> to vector<24x128xf32>
    %149 = arith.subf %134, %148 : vector<24x128xf32>
    %cst_52 = arith.constant 9.99999996E-13 : f32
    %150 = vector.broadcast %cst_52 : f32 to vector<24x1xf32>
    %151 = arith.addf %147, %150 : vector<24x1xf32>
    %152 = math.rsqrt %151 : vector<24x1xf32>
    %153 = vector.broadcast %152 : vector<24x1xf32> to vector<24x128xf32>
    %154 = arith.mulf %149, %153 : vector<24x128xf32>
    %155 = vector.broadcast %135 : vector<1x128xf32> to vector<24x128xf32>
    %156 = arith.mulf %154, %155 : vector<24x128xf32>
    %157 = vector.broadcast %136 : vector<1x128xf32> to vector<24x128xf32>
    %158 = arith.addf %156, %157 : vector<24x128xf32>
    %159 = arith.truncf %158 : vector<24x128xf32> to vector<24x128xbf16>
    %c0_53 = arith.constant 0 : index
    %c0_54 = arith.constant 0 : index
    %160 = vector.load %arg10[%c0_53, %c0_54] : memref<128x512xbf16, #tpu.memory_space<vmem>>, vector<128x512xbf16>
    %cst_55 = arith.constant dense<0.000000e+00> : vector<24x512xf32>
    %161 = tpu.matmul %159, %160, %cst_55 {dimension_numbers = #tpu.dot_dimension_numbers<[1], [0], [0], [1], [0, 0, 1, 1], [], []>} : vector<24x128xbf16>, vector<128x512xbf16>, vector<24x512xf32> -> vector<24x512xf32>
    %c0_56 = arith.constant 0 : index
    %c0_57 = arith.constant 0 : index
    %162 = vector.load %arg11[%c0_56, %c0_57] : memref<1x512xf32, #tpu.memory_space<vmem>>, vector<1x512xf32>
    %163 = vector.broadcast %162 : vector<1x512xf32> to vector<24x512xf32>
    %164 = arith.addf %161, %163 : vector<24x512xf32>
    %cst_58 = arith.constant 5.000000e-01 : f32
    %165 = vector.broadcast %cst_58 : f32 to vector<24x512xf32>
    %166 = arith.mulf %165, %164 : vector<24x512xf32>
    %cst_59 = arith.constant 0.707106769 : f32
    %167 = vector.broadcast %cst_59 : f32 to vector<24x512xf32>
    %168 = arith.mulf %164, %167 : vector<24x512xf32>
    %169 = math.erf %168 : vector<24x512xf32>
    %cst_60 = arith.constant 1.000000e+00 : f32
    %170 = vector.broadcast %cst_60 : f32 to vector<24x512xf32>
    %171 = arith.addf %170, %169 : vector<24x512xf32>
    %172 = arith.mulf %166, %171 : vector<24x512xf32>
    %173 = arith.truncf %172 : vector<24x512xf32> to vector<24x512xbf16>
    %c0_61 = arith.constant 0 : index
    %c0_62 = arith.constant 0 : index
    %174 = vector.load %arg12[%c0_61, %c0_62] : memref<512x128xbf16, #tpu.memory_space<vmem>>, vector<512x128xbf16>
    %cst_63 = arith.constant dense<0.000000e+00> : vector<24x128xf32>
    %175 = tpu.matmul %173, %174, %cst_63 {dimension_numbers = #tpu.dot_dimension_numbers<[1], [0], [0], [1], [0, 0, 1, 1], [], []>} : vector<24x512xbf16>, vector<512x128xbf16>, vector<24x128xf32> -> vector<24x128xf32>
    %c0_64 = arith.constant 0 : index
    %c0_65 = arith.constant 0 : index
    %176 = vector.load %arg13[%c0_64, %c0_65] : memref<1x128xf32, #tpu.memory_space<vmem>>, vector<1x128xf32>
    %177 = vector.broadcast %176 : vector<1x128xf32> to vector<24x128xf32>
    %178 = arith.addf %175, %177 : vector<24x128xf32>
    %179 = arith.addf %134, %178 : vector<24x128xf32>
    %c0_66 = arith.constant 0 : index
    %c0_67 = arith.constant 0 : index
    %c0_68 = arith.constant 0 : index
    %180 = vector.load %arg14[%c0_66, %c0_67, %c0_68] : memref<1x24x128xf32, #tpu.memory_space<vmem>>, vector<1x24x128xf32>
    %181 = vector.shape_cast %180 : vector<1x24x128xf32> to vector<24x128xf32>
    %182 = vector.shape_cast %179 : vector<24x128xf32> to vector<1x24x128xf32>
    tpu.vector_store %arg14[%c0_66, %c0_67, %c0_68], %182 {strides = array<i32>} : memref<1x24x128xf32, #tpu.memory_space<vmem>>, vector<1x24x128xf32>,
    return
  }
  func.func @transform_0(%arg0: i32) -> (i32, i32, i32) {
    %c0_i32 = arith.constant 0 : i32
    %c0_i32_0 = arith.constant 0 : i32
    %c0_i32_1 = arith.constant 0 : i32
    return %arg0, %c0_i32, %c0_i32_0 : i32, i32, i32
  }
  func.func @transform_1(%arg0: i32) -> (i32, i32) {
    %c0_i32 = arith.constant 0 : i32
    %c0_i32_0 = arith.constant 0 : i32
    %c0_i32_1 = arith.constant 0 : i32
    return %c0_i32, %c0_i32_0 : i32, i32
  }
  func.func @transform_2(%arg0: i32) -> (i32, i32) {
    %c0_i32 = arith.constant 0 : i32
    %c0_i32_0 = arith.constant 0 : i32
    %c0_i32_1 = arith.constant 0 : i32
    return %c0_i32, %c0_i32_0 : i32, i32
  }
  func.func @transform_3(%arg0: i32) -> (i32, i32) {
    %c0_i32 = arith.constant 0 : i32
    %c0_i32_0 = arith.constant 0 : i32
    %c0_i32_1 = arith.constant 0 : i32
    return %c0_i32, %c0_i32_0 : i32, i32
  }
  func.func @transform_4(%arg0: i32) -> (i32, i32) {
    %c0_i32 = arith.constant 0 : i32
    %c0_i32_0 = arith.constant 0 : i32
    %c0_i32_1 = arith.constant 0 : i32
    return %c0_i32, %c0_i32_0 : i32, i32
  }
  func.func @transform_5(%arg0: i32) -> (i32, i32) {
    %c0_i32 = arith.constant 0 : i32
    %c0_i32_0 = arith.constant 0 : i32
    %c0_i32_1 = arith.constant 0 : i32
    return %c0_i32, %c0_i32_0 : i32, i32
  }
  func.func @transform_6(%arg0: i32) -> (i32, i32) {
    %c0_i32 = arith.constant 0 : i32
    %c0_i32_0 = arith.constant 0 : i32
    %c0_i32_1 = arith.constant 0 : i32
    return %c0_i32, %c0_i32_0 : i32, i32
  }
  func.func @transform_7(%arg0: i32) -> (i32, i32) {
    %c0_i32 = arith.constant 0 : i32
    %c0_i32_0 = arith.constant 0 : i32
    %c0_i32_1 = arith.constant 0 : i32
    return %c0_i32, %c0_i32_0 : i32, i32
  }
  func.func @transform_8(%arg0: i32) -> (i32, i32) {
    %c0_i32 = arith.constant 0 : i32
    %c0_i32_0 = arith.constant 0 : i32
    %c0_i32_1 = arith.constant 0 : i32
    return %c0_i32, %c0_i32_0 : i32, i32
  }
  func.func @transform_9(%arg0: i32) -> (i32, i32) {
    %c0_i32 = arith.constant 0 : i32
    %c0_i32_0 = arith.constant 0 : i32
    %c0_i32_1 = arith.constant 0 : i32
    return %c0_i32, %c0_i32_0 : i32, i32
  }
  func.func @transform_10(%arg0: i32) -> (i32, i32) {
    %c0_i32 = arith.constant 0 : i32
    %c0_i32_0 = arith.constant 0 : i32
    %c0_i32_1 = arith.constant 0 : i32
    return %c0_i32, %c0_i32_0 : i32, i32
  }
  func.func @transform_11(%arg0: i32) -> (i32, i32) {
    %c0_i32 = arith.constant 0 : i32
    %c0_i32_0 = arith.constant 0 : i32
    %c0_i32_1 = arith.constant 0 : i32
    return %c0_i32, %c0_i32_0 : i32, i32
  }
  func.func @transform_12(%arg0: i32) -> (i32, i32) {
    %c0_i32 = arith.constant 0 : i32
    %c0_i32_0 = arith.constant 0 : i32
    %c0_i32_1 = arith.constant 0 : i32
    return %c0_i32, %c0_i32_0 : i32, i32
  }
  func.func @transform_13(%arg0: i32) -> (i32, i32, i32) {
    %c0_i32 = arith.constant 0 : i32
    %c0_i32_0 = arith.constant 0 : i32
    %c0_i32_1 = arith.constant 0 : i32
    return %arg0, %c0_i32, %c0_i32_0 : i32, i32, i32
  }
}

</mosaic_0001>

<bundles_post_ra>
// kernel: image_encoder_forward.7
= control target key start
LH: loop header
LB: loop body
LE: loop exit
PB: predicated region body
PF: predicated region fallthrough
CT: control target
= control target key end

     0   :  { %vm18_vm0 = vcmask 1041408   ;;  %s143_s0 = inlined_call_operand.vmem [shape: f32[2,128], index: 0, kind: input, shape index: {}]   ;;  %s144_s1 = inlined_call_operand.vmem [shape: f32[1,128], index: 1, kind: input, shape index: {}]   ;;  %s145_s2 = inlined_call_operand.vmem [shape: f32[1,128], index: 2, kind: input, shape index: {}]   ;;  %s146_s3 = inlined_call_operand.hbm [shape: f32[2,128], index: 3, kind: output, shape index: {}]  }
   0x1   :  { %v15_v0 = vld [vmem:[%s143_s0] sm:$0x3] }
   0x2   :  { %8 = vsyncpa [#allocation3], 0  ;;  %v19_v1 = vsel %vm18_vm0, %v15_v0, 0.0  ;;  %v107_v2 = vmov 128.0   ;;  %v75_v23 = vld [vmem:[%s144_s1] ss:$0 sm:$0xff] }
   0x3   :  { %20 = vadd.xlane.f32.xlu0 %v19_v1  ;;  %77 = vrcp.f32 %v107_v2  ;;  %v76_v26 = vld [vmem:[%s145_s2] ss:$0 sm:$0xff]  ;;  %s108_s17 = smov [#allocation2]   ;;  %s64_s21 = sshll.u32 %s146_s3, 4  ;;  %s65_s21 = int_to_ptr.hbm [resolvable:$true] %s64_s21 }
   0x4   :  { %s62_s18 = sshll.u32 %s108_s17, 4  ;;  %s63_s18 = int_to_ptr.vmem [resolvable:$true] %s62_s18 }
   0x9   :  { %v78_v3 = vpop.eup %77 }
   0xa   :  { %v23_v4 = vmul.f32 128.0, %v78_v3  ;;  %vm27_vm1 = vweird.f32 %v78_v3 }
   0xc   :  { %v24_v5 = vsub.f32 1.0, %v23_v4 }
   0xe   :  { %v25_v6 = vmul.f32 %v78_v3, %v24_v5 }
  0x10   :  { %v26_v7 = vadd.f32 %v78_v3, %v25_v6 }
  0x12   :  { %v28_v8 = vsel %vm27_vm1, %v78_v3, %v26_v7 }
  0x76   :  { %v21_v9 = vpop.xlane.xlu0 %20 }
  0x77   :  { %v29_v10 = vmul.f32 %v28_v8, %v21_v9 }
  0x79   :  { %v30_v11 = vsub.f32 %v15_v0, %v29_v10 }
  0x7b   :  { %v31_v12 = vmul.f32 %v30_v11, %v30_v11 }
  0x7d   :  { %v32_v13 = vsel %vm18_vm0, %v31_v12, 0.0 }
  0x7e   :  { %33 = vadd.xlane.f32.xlu0 %v32_v13 }
  0xf1   :  { %v34_v14 = vpop.xlane.xlu0 %33 }
  0xf2   :  { %v35_v15 = vmul.f32 %v34_v14, %v28_v8 }
  0xf4   :  { %v36_v16 = vadd.f32 1e-12, %v35_v15 }
  0xf6   :  { %79 = vrsqrt.f32 %v36_v16  ;;  %vm43_vm3 = vweird.f32 %v36_v16 }
  0xfc   :  { %v80_v17 = vpop.eup %79 }
  0xfd   :  { %v38_v18 = vmul.f32 %v80_v17, %v36_v16  ;;  %vm44_vm2 = vweird.f32 %v80_v17 }
  0xfe   :  { %vm45_vm4 = vmor %vm43_vm3, %vm44_vm2 }
  0xff   :  { %v39_v19 = vmul.f32 %v80_v17, %v38_v18 }
 0x101   :  { %v40_v20 = vmul.f32 0.5, %v39_v19 }
 0x103   :  { %v41_v21 = vsub.f32 1.5, %v40_v20 }
 0x105   :  { %v42_v22 = vmul.f32 %v80_v17, %v41_v21 }
 0x107   :  { %v46_v24 = vsel %vm45_vm4, %v80_v17, %v42_v22 }
 0x108   :  { %v47_v25 = vmul.f32 %v46_v24, %v30_v11 }
 0x10a   :  { %v51_v27 = vmul.f32 %v75_v23, %v47_v25 }
 0x10c   :  { %v55_v28 = vadd.f32 %v76_v26, %v51_v27 }
 0x10e   :  { %56 = vst [vmem:[#allocation2] sm:$0x3] %v55_v28 }
 0x10f   :  { %67 = dma.vmem_to_hbm [thread:$0]  %s63_s18, 32, %s65_s21, [#allocation3]  }
 0x110   :  { %105 = dma.done.wait [#allocation3], 32  }
 0x111   :  { %106 = vsyncadd [#allocation3], 4294967264 }
 0x112   :  { %72 = vsyncpa [#allocation3], 1 }

// kernel: image_encoder_forward.4
= control target key start
LH: loop header
LB: loop body
LE: loop exit
PB: predicated region body
PF: predicated region fallthrough
CT: control target
= control target key end

     0   :  { %vm127_vm0 = vcmask 523264   ;;  %s348_s1 = inlined_call_operand.vmem [shape: bf16[192,128], index: 1, kind: input, shape index: {}]   ;;  %s349_s0 = inlined_call_operand.vmem [shape: f32[32,192], index: 0, kind: input, shape index: {}]   ;;  %s350_s2 = inlined_call_operand.vmem [shape: f32[1,128], index: 2, kind: input, shape index: {}]   ;;  %s351_s3 = inlined_call_operand.vmem [shape: f32[32,128], index: 3, kind: output, shape index: {}]  }
   0x1   :  { %v237_v0 = vld [vmem:[%s348_s1 + $0x38] sm:$0xff]  ;;  %v236_v2 = vld [vmem:[%s348_s1 + $0x30] sm:$0xff]  ;;  %v235_v4 = vld [vmem:[%s348_s1 + $0x28] sm:$0xff] }
   0x2   :  { %v241_v1 = vld [vmem:[%s348_s1 + $0x58] sm:$0xff]  ;;  %134 = vmatpush.bf16.msra.mxu0 %v237_v0  ;;  %242 = vmatpush.bf16.msra.mxu2 %v237_v0  ;;  %v240_v3 = vld [vmem:[%s348_s1 + $0x50] sm:$0xff]  ;;  %v239_v5 = vld [vmem:[%s348_s1 + $0x48] sm:$0xff] }
   0x3   :  { %157 = vmatpush.bf16.msra.mxu1 %v241_v1  ;;  %v234_v6 = vld [vmem:[%s348_s1 + $0x20] sm:$0xff]  ;;  %v16_v8 = vld [vmem:[%s349_s0 + $0x8] sm:$0xff]  ;;  %v18_v9 = vld [vmem:[%s349_s0 + $0x18] sm:$0xff] }
   0x4   :  { %v238_v7 = vld [vmem:[%s348_s1 + $0x40] sm:$0xff]  ;;  %v24_v10 = vpack.c.bf16 %v18_v9, %v16_v8  ;;  %v233_v11 = vld [vmem:[%s348_s1 + $0x18] sm:$0xff]  ;;  %v232_v12 = vld [vmem:[%s348_s1 + $0x10] sm:$0xff] }
   0x5   :  { %v231_v13 = vld [vmem:[%s348_s1 + $0x8] sm:$0xff]  ;;  %v230_v14 = vld [vmem:[%s348_s1] sm:$0xff]  ;;  %v17_v16 = vld [vmem:[%s349_s0 + $0x10] sm:$0xff] }
   0x6   :  { %135 = vmatpush.bf16.msra.mxu0 %v236_v2  ;;  %243 = vmatpush.bf16.msra.mxu2 %v236_v2  ;;  %v15_v15 = vld [vmem:[%s349_s0] sm:$0xff]  ;;  %v21_v18 = vld [vmem:[%s349_s0 + $0x30] sm:$0xff]  ;;  %v20_v19 = vld [vmem:[%s349_s0 + $0x28] sm:$0xff] }
   0x7   :  { %158 = vmatpush.bf16.msra.mxu1 %v240_v3  ;;  %v19_v17 = vld [vmem:[%s349_s0 + $0x20] sm:$0xff]  ;;  %v22_v20 = vld [vmem:[%s349_s0 + $0x38] sm:$0xff]  ;;  %v23_v21 = vpack.c.bf16 %v17_v16, %v15_v15 }
   0x8   :  { %v25_v22 = vpack.c.bf16 %v21_v18, %v19_v17  ;;  %v26_v23 = vpack.c.bf16 %v22_v20, %v20_v19  ;;  %v250_v26 = vld [vmem:[%s350_s2] ss:$0 sm:$0xff] }
   0xa   :  { %136 = vmatpush.bf16.msra.mxu0 %v235_v4  ;;  %244 = vmatpush.bf16.msra.mxu2 %v235_v4 }
   0xb   :  { %159 = vmatpush.bf16.msra.mxu1 %v239_v5 }
   0xe   :  { %137 = vmatpush.bf16.msra.mxu0 %v234_v6  ;;  %245 = vmatpush.bf16.msra.mxu2 %v234_v6 }
   0xf   :  { %160 = vmatpush.bf16.msra.mxu1 %v238_v7 }
  0x12   :  { %228 = vmatmul.msk.bf16.vlgmr.msra.gmra.mxu1 %vm127_vm0, %v24_v10  ;;  %138 = vmatpush.bf16.msra.mxu0 %v233_v11 }
  0x13   :  { %246 = vmatpush.bf16.msra.mxu2 %v233_v11 }
  0x16   :  { %139 = vmatpush.bf16.msra.mxu0 %v232_v12 }
  0x17   :  { %247 = vmatpush.bf16.msra.mxu2 %v232_v12 }
  0x1a   :  { %140 = vmatpush.bf16.msra.mxu0 %v231_v13 }
  0x1b   :  { %248 = vmatpush.bf16.msra.mxu2 %v231_v13 }
  0x1e   :  { %141 = vmatpush.bf16.msra.mxu0 %v230_v14 }
  0x1f   :  { %249 = vmatpush.bf16.msra.mxu2 %v230_v14 }
  0x21   :  { %142 = vmatmul.bf16.vlgmr.msra.gmra.mxu0 %v23_v21 }
  0x22   :  { %147 = vmatmul.bf16.vlgmr.msra.gmra.mxu2 %v25_v22  ;;  %229 = vmatmul.msk.bf16.gmra.mxu1 %vm127_vm0, %v26_v23 }
  0x8f   :  { %v162_v24 = vpop.f32.mrf.mxu1 }
  0x97   :  { %v164_v25 = vpop.f32.mrf.mxu1 }
  0x9e   :  { %v143_v27 = vpop.f32.mrf.mxu0 }
  0x9f   :  { %v144_v28 = vadd.f32 %v250_v26, %v143_v27  ;;  %v167_v30 = vpop.f32.mrf.mxu1 }
  0xa1   :  { %v163_v29 = vadd.f32 %v162_v24, %v144_v28 }
  0xa3   :  { %172 = vst [vmem:[%s351_s3] sm:$0xff] %v163_v29 }
  0xa5   :  { %v148_v31 = vpop.f32.mrf.mxu2 }
  0xa6   :  { %v149_v32 = vadd.f32 %v250_v26, %v148_v31  ;;  %v145_v33 = vpop.f32.mrf.mxu0 }
  0xa7   :  { %v146_v34 = vadd.f32 %v250_v26, %v145_v33  ;;  %v169_v39 = vpop.f32.mrf.mxu1 }
  0xa8   :  { %v168_v35 = vadd.f32 %v167_v30, %v149_v32 }
  0xa9   :  { %v165_v36 = vadd.f32 %v164_v25, %v146_v34 }
  0xaa   :  { %174 = vst [vmem:[%s351_s3 + $0x10] sm:$0xff] %v168_v35 }
  0xab   :  { %173 = vst [vmem:[%s351_s3 + $0x8] sm:$0xff] %v165_v36 }
  0xad   :  { %v150_v37 = vpop.f32.mrf.mxu2 }
  0xae   :  { %v151_v38 = vadd.f32 %v250_v26, %v150_v37 }
  0xb0   :  { %v170_v40 = vadd.f32 %v169_v39, %v151_v38 }
  0xb2   :  { %175 = vst [vmem:[%s351_s3 + $0x18] sm:$0xff] %v170_v40 }

// kernel: image_encoder_forward.5
= control target key start
LH: loop header
LB: loop body
LE: loop exit
PB: predicated region body
PF: predicated region fallthrough
CT: control target
= control target key end

     0   :  { %s3338_s25 = smov 0   ;;  %s4625_s0 = inlined_call_operand.vmem [shape: f32[2,24,128], index: 0, kind: input, shape index: {}]   ;;  %s4626_s1 = inlined_call_operand.vmem [shape: f32[1,128], index: 1, kind: input, shape index: {}]   ;;  %s4627_s2 = inlined_call_operand.vmem [shape: f32[1,128], index: 2, kind: input, shape index: {}]   ;;  %s4628_s3 = inlined_call_operand.vmem [shape: bf16[128,384], index: 3, kind: input, shape index: {}]   ;;  %s4629_s4 = inlined_call_operand.vmem [shape: f32[1,384], index: 4, kind: input, shape index: {}]   ;;  %s4630_s5 = inlined_call_operand.vmem [shape: bf16[128,128], index: 5, kind: input, shape index: {}]   ;;  %s4631_s6 = inlined_call_operand.vmem [shape: f32[1,128], index: 6, kind: input, shape index: {}]   ;;  %s4632_s7 = inlined_call_operand.vmem [shape: f32[1,128], index: 7, kind: input, shape index: {}]   ;;  %s4633_s8 = inlined_call_operand.vmem [shape: f32[1,128], index: 8, kind: input, shape index: {}]   ;;  %s4634_s9 = inlined_call_operand.vmem [shape: bf16[128,512], index: 9, kind: input, shape index: {}]   ;;  %s4635_s10 = inlined_call_operand.vmem [shape: f32[1,512], index: 10, kind: input, shape index: {}]   ;;  %s4636_s11 = inlined_call_operand.vmem [shape: bf16[512,128], index: 11, kind: input, shape index: {}]   ;;  %s4637_s12 = inlined_call_operand.vmem [shape: f32[1,128], index: 12, kind: input, shape index: {}]   ;;  %s4638_s13 = inlined_call_operand.vmem [shape: f32[2,24,128], index: 13, kind: output, shape index: {}]  }
   0x1 LB: > { %s2616_s26 = sadd.s32 4294967295, %s3262_s25   ;;  %p2620_p0 = scmp.ge.s32.totalorder %s3262_s25, 1  ;;  %s3262_s25 = sphi %s3338_s25, %s23_s25  }
   0x2   : > { %p387_p1 = scmp.lt.s32.totalorder %s3262_s25, 3 }
   0x4   : > { %p388_p2 = pnand %p2620_p0, %p387_p1 }
   0x5   : > { %p431_p3 = scmp.lt.s32.totalorder (!%p388_p2), %s2616_s26, 1  ;;  %s3265_s28 = smov (!%p388_p2), 96  }
   0x6   : > { %391 = sbr.rel (%p388_p2) target bundleno = 2143 (0x85f), region = 72  ;;  %s3266_s29 = smov (!%p388_p2), 64  }
   0x7   : > { %s3267_s14 = smov (!%p388_p2), 32  }
   0xb   : > { %s4656_s26 = smov (!%p431_p3, %s2616_s26), 1  ;;  %v3264_v3 = vmov 128.0   ;;  %v2709_v22 = vld [vmem:[%s4628_s3 + $0xa8] sm:$0xf]  ;;  %v3059_v23 = vld [vmem:[%s4628_s3 + $0xb0] sm:$0xf0] }
   0xc   : > { %s3133_s27 = smul.u32 24, %s4656_s26  ;;  %3167 = vrcp.f32 %v3264_v3  ;;  %v3058_v24 = vld [vmem:[%s4628_s3 + $0xac] sm:$0xf]  ;;  %v2710_v25 = vor.u32 %v3059_v23, %v2709_v22  ;;  %v2711_v26 = vld [vmem:[%s4628_s3 + $0xb4] sm:$0xf0]  ;;  %vm757_vm10 = vcmask 261120  }
   0xd   : > { %v2717_v27 = vld [vmem:[%s4628_s3 + $0xb0] sm:$0xf]  ;;  %v3060_v28 = vld [vmem:[%s4628_s3 + $0xb8] sm:$0xf0]  ;;  %v2714_v29 = vor.u32 %v3058_v24, %v2711_v26  ;;  %v3055_v33 = vld [vmem:[%s4628_s3 + $0x94] sm:$0xf] }
   0xe   : > { %s3354_s30 = scalar_lea.vmem %s4625_s0, %s3133_s27  ;;  %v2718_v30 = vor.u32 %v3060_v28, %v2717_v27  ;;  %696 = vmatpush.bf16.msra.mxu0 %v2710_v25  ;;  %v2697_v31 = vld [vmem:[%s4628_s3 + $0x90] sm:$0xf]  ;;  %v3056_v32 = vld [vmem:[%s4628_s3 + $0x98] sm:$0xf0]  ;;  %v2699_v35 = vld [vmem:[%s4628_s3 + $0x9c] sm:$0xf0]  ;;  %s440_s15 = scalar_lea.vmem %s4638_s13, %s3133_s27 }
   0xf   : > { %v442_v0 = vld [vmem:[%s3354_s30] sm:$0xff]  ;;  %v444_v1 = vld [vmem:[%s3354_s30 + $0x10] sm:$0xff]  ;;  %v443_v2 = vld [vmem:[%s3354_s30 + $0x8] sm:$0xff]  ;;  %714 = vmatpush.bf16.msra.mxu1 %v2714_v29  ;;  %v2698_v34 = vor.u32 %v3056_v32, %v2697_v31  ;;  %v2702_v38 = vor.u32 %v3055_v33, %v2699_v35  ;;  %vm838_vm11 = vcmask 1043456   ;;  %vm794_vm13 = vcmask 195584  }
  0x10   : > { %447 = vadd.xlane.f32.xlu0 %v442_v0  ;;  %451 = vadd.xlane.f32.xlu1 %v444_v1  ;;  %v2705_v36 = vld [vmem:[%s4628_s3 + $0x98] sm:$0xf]  ;;  %v3057_v37 = vld [vmem:[%s4628_s3 + $0xa0] sm:$0xf0]  ;;  %v3052_v42 = vld [vmem:[%s4628_s3 + $0x7c] sm:$0xf] }
  0x11   : > { %732 = vmatpush.bf16.msra.mxu2 %v2718_v30  ;;  %v2706_v39 = vor.u32 %v3057_v37, %v2705_v36  ;;  %v2685_v40 = vld [vmem:[%s4628_s3 + $0x78] sm:$0xf]  ;;  %v3053_v41 = vld [vmem:[%s4628_s3 + $0x80] sm:$0xf0]  ;;  %v2687_v44 = vld [vmem:[%s4628_s3 + $0x84] sm:$0xf0] }
  0x12   : > { %v3168_v4 = vpop.eup %3167  ;;  %697 = vmatpush.bf16.msra.mxu0 %v2698_v34  ;;  %v2686_v43 = vor.u32 %v3053_v41, %v2685_v40  ;;  %v2693_v45 = vld [vmem:[%s4628_s3 + $0x80] sm:$0xf]  ;;  %v3054_v46 = vld [vmem:[%s4628_s3 + $0x88] sm:$0xf0]  ;;  %v2690_v47 = vor.u32 %v3052_v42, %v2687_v44  ;;  %v3049_v51 = vld [vmem:[%s4628_s3 + $0x64] sm:$0xf] }
  0x13   : > { %v454_v5 = vmul.f32 128.0, %v3168_v4  ;;  %vm458_vm0 = vweird.f32 %v3168_v4  ;;  %715 = vmatpush.bf16.msra.mxu1 %v2702_v38  ;;  %v2694_v48 = vor.u32 %v3054_v46, %v2693_v45  ;;  %v2673_v49 = vld [vmem:[%s4628_s3 + $0x60] sm:$0xf]  ;;  %v3050_v50 = vld [vmem:[%s4628_s3 + $0x68] sm:$0xf0]  ;;  %vm1238_vm14 = vcmask 523264  }
  0x14   : > { %v2674_v52 = vor.u32 %v3050_v50, %v2673_v49  ;;  %v2675_v53 = vld [vmem:[%s4628_s3 + $0x6c] sm:$0xf0]  ;;  %v2681_v54 = vld [vmem:[%s4628_s3 + $0x68] sm:$0xf]  ;;  %v3051_v55 = vld [vmem:[%s4628_s3 + $0x70] sm:$0xf0] }
  0x15   : > { %v455_v6 = vsub.f32 1.0, %v454_v5  ;;  %733 = vmatpush.bf16.msra.mxu2 %v2706_v39  ;;  %v2678_v56 = vor.u32 %v3049_v51, %v2675_v53  ;;  %v2682_v57 = vor.u32 %v3051_v55, %v2681_v54  ;;  %v2661_v58 = vld [vmem:[%s4628_s3 + $0x48] sm:$0xf]  ;;  %v3047_v59 = vld [vmem:[%s4628_s3 + $0x50] sm:$0xf0]  ;;  %vm1242_vm15 = vcmask 785408  }
  0x16   : > { %698 = vmatpush.bf16.msra.mxu0 %v2686_v43  ;;  %v3046_v60 = vld [vmem:[%s4628_s3 + $0x4c] sm:$0xf]  ;;  %v2662_v61 = vor.u32 %v3047_v59, %v2661_v58  ;;  %v2663_v62 = vld [vmem:[%s4628_s3 + $0x54] sm:$0xf0]  ;;  %v2669_v63 = vld [vmem:[%s4628_s3 + $0x50] sm:$0xf] }
  0x17   : > { %v456_v7 = vmul.f32 %v3168_v4, %v455_v6  ;;  %716 = vmatpush.bf16.msra.mxu1 %v2690_v47  ;;  %v2649_v3 = vld [vmem:[%s4628_s3 + $0x30] sm:$0xf]  ;;  %v3043_v5 = vld [vmem:[%s4628_s3 + $0x34] sm:$0xf]  ;;  %v3042_v22 = vld [vmem:[%s4628_s3 + $0x28] sm:$0xf0] }
  0x18   : > { %449 = vadd.xlane.f32.xlu0 %v443_v2  ;;  %v2625_v27 = vld [vmem:[%s4628_s3] sm:$0xf]  ;;  %v3038_v28 = vld [vmem:[%s4628_s3 + $0x8] sm:$0xf0]  ;;  %v3037_v29 = vld [vmem:[%s4628_s3 + $0x4] sm:$0xf] }
  0x19   : > { %v457_v8 = vadd.f32 %v3168_v4, %v456_v7  ;;  %734 = vmatpush.bf16.msra.mxu2 %v2694_v48  ;;  %v2651_v7 = vld [vmem:[%s4628_s3 + $0x3c] sm:$0xf0]  ;;  %v2626_v30 = vor.u32 %v3038_v28, %v2625_v27  ;;  %v2627_v31 = vld [vmem:[%s4628_s3 + $0xc] sm:$0xf0]  ;;  %v2633_v32 = vld [vmem:[%s4628_s3 + $0x8] sm:$0xf] }
  0x1a   : > { %699 = vmatpush.bf16.msra.mxu0 %v2674_v52  ;;  %v3039_v33 = vld [vmem:[%s4628_s3 + $0x10] sm:$0xf0]  ;;  %v2630_v35 = vor.u32 %v3037_v29, %v2627_v31 }
  0x1b   : > { %v3359_v9 = vsel %vm458_vm0, %v3168_v4, %v457_v8  ;;  %717 = vmatpush.bf16.msra.mxu1 %v2678_v56  ;;  %v3044_v4 = vld [vmem:[%s4628_s3 + $0x38] sm:$0xf0]  ;;  %v2657_v8 = vld [vmem:[%s4628_s3 + $0x38] sm:$0xf]  ;;  %v2634_v36 = vor.u32 %v3039_v33, %v2633_v32 }
  0x1c   : > { %v2650_v6 = vor.u32 %v3044_v4, %v2649_v3 }
  0x1d   : > { %735 = vmatpush.bf16.msra.mxu2 %v2682_v57  ;;  %v3161_v57 = vld [vmem:[%s4626_s1] ss:$0 sm:$0xff] }
  0x1e   : > { %700 = vmatpush.bf16.msra.mxu0 %v2662_v61 }
  0x22   : > { %701 = vmatpush.bf16.msra.mxu0 %v2650_v6 }
  0x83   : > { %v448_v10 = vpop.xlane.xlu0 %447  ;;  %v452_v15 = vpop.xlane.xlu1 %451 }
  0x84   : > { %v460_v11 = vmul.f32 %v3359_v9, %v448_v10  ;;  %v462_v18 = vmul.f32 %v3359_v9, %v452_v15  ;;  %v3045_v10 = vld [vmem:[%s4628_s3 + $0x40] sm:$0xf0] }
  0x85   : > { %v3041_v15 = vld [vmem:[%s4628_s3 + $0x20] sm:$0xf0] }
  0x86   : > { %v3362_v12 = vsub.f32 %v442_v0, %v460_v11  ;;  %v3372_v20 = vsub.f32 %v444_v1, %v462_v18  ;;  %v3048_v0 = vld [vmem:[%s4628_s3 + $0x58] sm:$0xf0]  ;;  %v2666_v1 = vor.u32 %v3046_v60, %v2663_v62  ;;  %v2654_v11 = vor.u32 %v3043_v5, %v2651_v7 }
  0x88   : > { %v466_v13 = vmul.f32 %v3362_v12, %v3362_v12  ;;  %v468_v21 = vmul.f32 %v3372_v20, %v3372_v20  ;;  %718 = vmatpush.bf16.msra.mxu1 %v2666_v1 }
  0x8a   : > { %469 = vadd.xlane.f32.xlu1 %v466_v13  ;;  %v2658_v13 = vor.u32 %v3045_v10, %v2657_v8 }
  0x8b   : > { %v450_v14 = vpop.xlane.xlu0 %449 }
  0x8c   : > { %v461_v16 = vmul.f32 %v3359_v9, %v450_v14  ;;  %719 = vmatpush.bf16.msra.mxu1 %v2654_v11  ;;  %v2637_v14 = vld [vmem:[%s4628_s3 + $0x18] sm:$0xf] }
  0x8d   : > { %v2638_v18 = vor.u32 %v3041_v15, %v2637_v14  ;;  %v560_v15 = vld [vmem:[%s4629_s4] sm:$0x7] }
  0x8e   : > { %v3367_v17 = vsub.f32 %v443_v2, %v461_v16  ;;  %v2670_v2 = vor.u32 %v3048_v0, %v2669_v63  ;;  %v3040_v16 = vld [vmem:[%s4628_s3 + $0x1c] sm:$0xf]  ;;  %v3162_v0 = vld [vmem:[%s4627_s2] ss:$0 sm:$0xff] }
  0x8f   : > { %702 = vmatpush.bf16.msra.mxu0 %v2638_v18  ;;  %v563_v18 = vperm.slane %v560_v15, 1 }
  0x90   : > { %v467_v19 = vmul.f32 %v3367_v17, %v3367_v17  ;;  %736 = vmatpush.bf16.msra.mxu2 %v2670_v2 }
  0x92   : > { %471 = vadd.xlane.f32.xlu2 %v467_v19  ;;  %v2639_v19 = vld [vmem:[%s4628_s3 + $0x24] sm:$0xf0] }
  0x93   : > { %v2642_v23 = vor.u32 %v3040_v16, %v2639_v19  ;;  %703 = vmatpush.bf16.msra.mxu0 %v2626_v30  ;;  %v562_v16 = vperm.slane %v560_v15, 0 }
  0x94   : > { %737 = vmatpush.bf16.msra.mxu2 %v2658_v13 }
  0x95   : > { %720 = vmatpush.bf16.msra.mxu1 %v2642_v23 }
  0x99   : > { %721 = vmatpush.bf16.msra.mxu1 %v2630_v35 }
  0x9a   : > { %473 = vadd.xlane.f32.xlu2 %v468_v21  ;;  %v2645_v21 = vld [vmem:[%s4628_s3 + $0x20] sm:$0xf] }
  0x9b   : > { %v2646_v24 = vor.u32 %v3042_v22, %v2645_v21 }
  0x9d   : > { %738 = vmatpush.bf16.msra.mxu2 %v2646_v24 }
  0xa1   : > { %739 = vmatpush.bf16.msra.mxu2 %v2634_v36  ;;  %v564_v36 = vperm.slane %v560_v15, 2 }
  0xfd   : > { %v470_v25 = vpop.xlane.xlu1 %469 }
  0xfe   : > { %v475_v26 = vmul.f32 %v470_v25, %v3359_v9 }
 0x100   : > { %v478_v34 = vadd.f32 1e-12, %v475_v26 }
 0x102   : > { %3169 = vrsqrt.f32 %v478_v34  ;;  %vm487_vm2 = vweird.f32 %v478_v34 }
 0x105   : > { %v472_v37 = vpop.xlane.xlu2 %471 }
 0x106   : > { %v476_v38 = vmul.f32 %v472_v37, %v3359_v9 }
 0x108   : > { %v3170_v39 = vpop.eup %3169  ;;  %v479_v40 = vadd.f32 1e-12, %v476_v38 }
 0x109   : > { %v482_v41 = vmul.f32 %v3170_v39, %v478_v34  ;;  %vm488_vm1 = vweird.f32 %v3170_v39 }
 0x10a   : > { %3171 = vrsqrt.f32 %v479_v40  ;;  %vm489_vm3 = vmor %vm487_vm2, %vm488_vm1  ;;  %vm497_vm5 = vweird.f32 %v479_v40 }
 0x10b   : > { %v483_v42 = vmul.f32 %v3170_v39, %v482_v41 }
 0x10d   : > { %v484_v43 = vmul.f32 0.5, %v483_v42  ;;  %v474_v44 = vpop.xlane.xlu2 %473 }
 0x10e   : > { %v477_v45 = vmul.f32 %v474_v44, %v3359_v9 }
 0x10f   : > { %v485_v46 = vsub.f32 1.5, %v484_v43 }
 0x110   : > { %v3172_v47 = vpop.eup %3171  ;;  %v480_v48 = vadd.f32 1e-12, %v477_v45 }
 0x111   : > { %v486_v49 = vmul.f32 %v3170_v39, %v485_v46  ;;  %v492_v50 = vmul.f32 %v3172_v47, %v479_v40  ;;  %vm498_vm4 = vweird.f32 %v3172_v47 }
 0x112   : > { %3173 = vrsqrt.f32 %v480_v48  ;;  %vm499_vm6 = vmor %vm497_vm5, %vm498_vm4  ;;  %vm507_vm7 = vweird.f32 %v480_v48 }
 0x113   : > { %v493_v51 = vmul.f32 %v3172_v47, %v492_v50  ;;  %v490_v52 = vsel %vm489_vm3, %v3170_v39, %v486_v49 }
 0x114   : > { %v511_v56 = vmul.f32 %v490_v52, %v3362_v12 }
 0x115   : > { %v494_v53 = vmul.f32 0.5, %v493_v51 }
 0x116   : > { %v517_v63 = vmul.f32 %v3161_v57, %v511_v56 }
 0x117   : > { %v495_v54 = vsub.f32 1.5, %v494_v53 }
 0x118   : > { %v3174_v55 = vpop.eup %3173  ;;  %v523_v3 = vadd.f32 %v3162_v0, %v517_v63  ;;  %v750_v63 = vlaneseq }
 0x119   : > { %v496_v58 = vmul.f32 %v3172_v47, %v495_v54  ;;  %v502_v59 = vmul.f32 %v3174_v55, %v480_v48  ;;  %vm508_vm8 = vweird.f32 %v3174_v55 }
 0x11a   : > { %vm509_vm9 = vmor %vm507_vm7, %vm508_vm8 }
 0x11b   : > { %v500_v60 = vsel %vm499_vm6, %v3172_v47, %v496_v58  ;;  %v503_v61 = vmul.f32 %v3174_v55, %v502_v59 }
 0x11c   : > { %v512_v62 = vmul.f32 %v500_v60, %v3367_v17 }
 0x11d   : > { %v504_v1 = vmul.f32 0.5, %v503_v61 }
 0x11e   : > { %v518_v2 = vmul.f32 %v3161_v57, %v512_v62 }
 0x11f   : > { %v505_v12 = vsub.f32 1.5, %v504_v1 }
 0x120   : > { %v524_v4 = vadd.f32 %v3162_v0, %v518_v2 }
 0x121   : > { %v506_v5 = vmul.f32 %v3174_v55, %v505_v12 }
 0x122   : > { %v526_v6 = vpack.c.bf16 %v524_v4, %v523_v3 }
 0x123   : > { %v510_v7 = vsel %vm509_vm9, %v3174_v55, %v506_v5 }
 0x124   : > { %704 = vmatmul.bf16.vlgmr.msra.gmra.mxu0 %v526_v6  ;;  %722 = vmatmul.bf16.vlgmr.msra.gmra.mxu1 %v526_v6  ;;  %v513_v17 = vmul.f32 %v510_v7, %v3372_v20 }
 0x125   : > { %740 = vmatmul.bf16.vlgmr.msra.gmra.mxu2 %v526_v6 }
 0x126   : > { %v519_v8 = vmul.f32 %v3161_v57, %v513_v17 }
 0x128   : > { %v525_v10 = vadd.f32 %v3162_v0, %v519_v8  ;;  %v3566_v0 = vand.u32 127, %v750_v63 }
 0x12a   : > { %v527_v11 = vpack.c.bf16 %v525_v10, %v525_v10  ;;  %vm752_vm12 = vcmp.lt.s32.totalorder %v3566_v0, 17 }
 0x134   : > { %709 = vmatmul.bf16.gmra.mxu0 %v527_v11  ;;  %727 = vmatmul.bf16.gmra.mxu1 %v527_v11 }
 0x135   : > { %745 = vmatmul.bf16.gmra.mxu2 %v527_v11 }
 0x1a1   : > { %v705_v13 = vpop.f32.mrf.mxu0  ;;  %v723_v14 = vpop.f32.mrf.mxu1 }
 0x1a2   : > { %v706_v23 = vadd.f32 %v705_v13, %v562_v16  ;;  %v724_v24 = vadd.f32 %v723_v14, %v563_v18 }
 0x1a8   : > { %v741_v19 = vpop.f32.mrf.mxu2 }
 0x1a9   : > { %v707_v21 = vpop.f32.mrf.mxu0  ;;  %v725_v22 = vpop.f32.mrf.mxu1  ;;  %v742_v45 = vadd.f32 %v741_v19, %v564_v36 }
 0x1aa   : > { %v708_v20 = vadd.f32 %v707_v21, %v562_v16  ;;  %v726_v25 = vadd.f32 %v725_v22, %v563_v18 }
 0x1ac   : > { %v753_v26 = vpack.c.bf16 %v708_v20, %v706_v23  ;;  %v755_v27 = vpack.c.bf16 %v726_v25, %v724_v24 }
 0x1ae   : > { %868 = vrot.lane.b32.xlu1 %v755_v27, %s3265_s28  ;;  %862 = vrot.lane.b32.xlu2 %v753_v26, %s3265_s28  ;;  %v765_v43 = vsel %vm757_vm10, %v755_v27, 0 }
 0x1b0   : > { %v743_v28 = vpop.f32.mrf.mxu2 }
 0x1b1   : > { %v710_v29 = vpop.f32.mrf.mxu0  ;;  %v728_v30 = vpop.f32.mrf.mxu1  ;;  %v744_v42 = vadd.f32 %v743_v28, %v564_v36 }
 0x1b2   : > { %v711_v31 = vadd.f32 %v710_v29, %v562_v16  ;;  %v729_v32 = vadd.f32 %v728_v30, %v563_v18 }
 0x1b3   : > { %v3549_v47 = vpack.c.bf16 %v744_v42, %v742_v45 }
 0x1b4   : > { %v754_v33 = vpack.c.bf16 %v711_v31, %v711_v31  ;;  %v756_v34 = vpack.c.bf16 %v729_v32, %v729_v32 }
 0x1b6   : > { %981 = vrot.lane.b32.xlu2 %v755_v27, %s3266_s29  ;;  %870 = vrot.lane.b32.xlu0 %v756_v34, %s3265_s28  ;;  %v768_v35 = vsel %vm757_vm10, %v756_v34, 0 }
 0x1b7   : > { %864 = vrot.lane.b32.xlu1 %v754_v33, %s3265_s28  ;;  %776 = vmatpush.bf16.xpose.msra.mxu3 %v768_v35 }
 0x1b8   : > { %v746_v37 = vpop.f32.mrf.mxu2 }
 0x1b9   : > { %v747_v38 = vadd.f32 %v746_v37, %v564_v36  ;;  %v712_v39 = vpop.f32.mrf.mxu0  ;;  %v730_v40 = vpop.f32.mrf.mxu1 }
 0x1bb   : > { %v3541_v41 = vpack.c.bf16 %v747_v38, %v747_v38 }
 0x1bd   : > { %v840_v44 = vsel %vm838_vm11, %v3541_v41, 0 }
 0x1be   : > { %977 = vrot.lane.b32.xlu2 %v753_v26, %s3266_s29  ;;  %983 = vrot.lane.b32.xlu0 %v756_v34, %s3266_s29 }
 0x1bf   : > { %1092 = vrot.lane.b32.xlu1 %v755_v27, %s3267_s14  ;;  %777 = vmatpush.bf16.xpose.msra.mxu3 %v765_v43 }
 0x1c0   : > { %v748_v46 = vpop.f32.mrf.mxu2 }
 0x1c6   : > { %1094 = vrot.lane.b32.xlu0 %v756_v34, %s3267_s14  ;;  %2719 = vmatmul.msk.bf16.vlgmr.msra.gmra.mxu3 %vm757_vm10, %v753_v26 }
 0x1c7   : > { %848 = vmatpush.bf16.msrb.mxu3 %v840_v44  ;;  %979 = vrot.lane.b32.xlu2 %v754_v33, %s3266_s29 }
 0x1c8   : > { %1090 = vrot.lane.b32.xlu1 %v754_v33, %s3267_s14 }
 0x1cb   : > { %849 = vmatpush.bf16.msrb.mxu3 %v3549_v47 }
 0x1ce   : > { %1088 = vrot.lane.b32.xlu0 %v753_v26, %s3267_s14 }
 0x1d6   : > { %2720 = vmatmul.msk.bf16.gmra.mxu3 %vm757_vm10, %v754_v33 }
 0x208   : > { %v863_v51 = vpop.permute.xlu2 %862 }
 0x210   : > { %v982_v56 = vpop.permute.xlu2 %981 }
 0x211   : > { %v992_v59 = vsel %vm757_vm10, %v982_v56, 0 }
 0x218   : > { %v978_v61 = vpop.permute.xlu2 %977 }
 0x220   : > { %v869_v50 = vpop.permute.xlu1 %868 }
 0x221   : > { %v879_v53 = vsel %vm757_vm10, %v869_v50, 0  ;;  %v980_v4 = vpop.permute.xlu2 %979 }
 0x228   : > { %v871_v48 = vpop.permute.xlu0 %870 }
 0x229   : > { %v882_v49 = vsel %vm757_vm10, %v871_v48, 0  ;;  %v865_v55 = vpop.permute.xlu1 %864 }
 0x22a   : > { %890 = vmatpush.bf16.xpose.msrb.mxu0 %v882_v49 }
 0x230   : > { %v984_v52 = vpop.permute.xlu0 %983 }
 0x231   : > { %v995_v54 = vsel %vm757_vm10, %v984_v52, 0  ;;  %v1093_v60 = vpop.permute.xlu1 %1092 }
 0x232   : > { %891 = vmatpush.bf16.xpose.msrb.mxu0 %v879_v53  ;;  %1003 = vmatpush.bf16.xpose.msrb.mxu2 %v995_v54  ;;  %v1103_v62 = vsel %vm757_vm10, %v1093_v60, 0 }
 0x238   : > { %v1095_v57 = vpop.permute.xlu0 %1094 }
 0x239   : > { %v1106_v58 = vsel %vm757_vm10, %v1095_v57, 0  ;;  %2723 = vmatmul.msk.bf16.vlgmr.msrb.gmra.mxu0 %vm757_vm10, %v863_v51 }
 0x23a   : > { %1004 = vmatpush.bf16.xpose.msrb.mxu2 %v992_v59  ;;  %1114 = vmatpush.bf16.xpose.msra.mxu0 %v1106_v58  ;;  %v1091_v16 = vpop.permute.xlu1 %1090 }
 0x240   : > { %v1089_v8 = vpop.permute.xlu0 %1088 }
 0x241   : > { %2727 = vmatmul.msk.bf16.vlgmr.msrb.gmra.mxu2 %vm757_vm10, %v978_v61 }
 0x242   : > { %1115 = vmatpush.bf16.xpose.msra.mxu0 %v1103_v62 }
 0x249   : > { %v779_v1 = vpop.f32.mrf.mxu3  ;;  %2724 = vmatmul.msk.bf16.gmra.mxu0 %vm757_vm10, %v865_v55 }
 0x24a   : > { %v788_v2 = vmul.f32 0.17677669, %v779_v1 }
 0x24c   : > { %v791_v12 = vsel %vm752_vm12, %v788_v2, -1e+30 }
 0x24d   : > { %v795_v3 = vsel %vm794_vm13, %v791_v12, -inf }
 0x24e   : > { %796 = vmax.xlane.f32.xlu0 %v795_v3 }
 0x251   : > { %v781_v5 = vpop.f32.mrf.mxu3  ;;  %2728 = vmatmul.msk.bf16.gmra.mxu2 %vm757_vm10, %v980_v4 }
 0x252   : > { %v789_v6 = vmul.f32 0.17677669, %v781_v5 }
 0x254   : > { %v3576_v7 = vsel %vm752_vm12, %v789_v6, -1e+30 }
 0x255   : > { %v798_v17 = vsel %vm794_vm13, %v3576_v7, -inf }
 0x256   : > { %799 = vmax.xlane.f32.xlu2 %v798_v17 }
 0x259   : > { %v784_v10 = vpop.f32.mrf.mxu3  ;;  %2731 = vmatmul.msk.bf16.vlgmr.msra.gmra.mxu0 %vm757_vm10, %v1089_v8 }
 0x25a   : > { %v790_v11 = vmul.f32 0.17677669, %v784_v10 }
 0x25c   : > { %v793_v13 = vsel %vm752_vm12, %v790_v11, -1e+30 }
 0x25d   : > { %v801_v14 = vsel %vm794_vm13, %v793_v13, -inf }
 0x25e   : > { %802 = vmax.xlane.f32.xlu2 %v801_v14 }
 0x261   : > { %v786_v15 = vpop.f32.mrf.mxu3 }
 0x269   : > { %2732 = vmatmul.msk.bf16.gmra.mxu0 %vm757_vm10, %v1091_v16 }
 0x276   : > { %945 = vrot.lane.b32.xlu2 %v3549_v47, %s3265_s28 }
 0x2b6   : > { %v893_v18 = vpop.f32.mrf.mxu0 }
 0x2b7   : > { %v902_v19 = vmul.f32 0.17677669, %v893_v18 }
 0x2b9   : > { %v3589_v21 = vsel %vm752_vm12, %v902_v19, -1e+30 }
 0x2ba   : > { %v908_v22 = vsel %vm794_vm13, %v3589_v21, -inf }
 0x2bb   : > { %909 = vmax.xlane.f32.xlu1 %v908_v22 }
 0x2be   : > { %v895_v23 = vpop.f32.mrf.mxu0 }
 0x2bf   : > { %v903_v30 = vmul.f32 0.17677669, %v895_v23 }
 0x2c1   : > { %v797_v24 = vpop.xlane.xlu0 %796  ;;  %v3601_v35 = vsel %vm752_vm12, %v903_v30, -1e+30 }
 0x2c2   : > { %v804_v27 = vsub.f32 %v791_v12, %v797_v24  ;;  %v911_v38 = vsel %vm794_vm13, %v3601_v35, -inf }
 0x2c4   : > { %v1006_v20 = vpop.f32.mrf.mxu2  ;;  %v807_v32 = vmul.f32 1.442695, %v804_v27 }
 0x2c5   : > { %v1015_v25 = vmul.f32 0.17677669, %v1006_v20 }
 0x2c6   : > { %v898_v26 = vpop.f32.mrf.mxu0  ;;  %3175 = vpow2.f32 %v807_v32 }
 0x2c7   : > { %v3595_v28 = vsel %vm752_vm12, %v1015_v25, -1e+30  ;;  %v904_v62 = vmul.f32 0.17677669, %v898_v26 }
 0x2c8   : > { %v1021_v29 = vsel %vm794_vm13, %v3595_v28, -inf }
 0x2c9   : > { %1022 = vmax.xlane.f32.xlu0 %v1021_v29  ;;  %v800_v31 = vpop.xlane.xlu2 %799  ;;  %v907_v1 = vsel %vm752_vm12, %v904_v62, -1e+30 }
 0x2ca   : > { %v805_v61 = vsub.f32 %v3576_v7, %v800_v31  ;;  %v914_v2 = vsel %vm794_vm13, %v907_v1, -inf }
 0x2cc   : > { %v1008_v33 = vpop.f32.mrf.mxu2  ;;  %v3613_v45 = vpop.eup %3175  ;;  %v809_v63 = vmul.f32 1.442695, %v805_v61 }
 0x2cd   : > { %v1016_v34 = vmul.f32 0.17677669, %v1008_v33  ;;  %v813_v50 = vsel %vm794_vm13, %v3613_v45, 0.0 }
 0x2ce   : > { %v900_v36 = vpop.f32.mrf.mxu0 }
 0x2cf   : > { %v3605_v37 = vsel %vm752_vm12, %v1016_v34, -1e+30 }
 0x2d0   : > { %v1024_v39 = vsel %vm794_vm13, %v3605_v37, -inf }
 0x2d1   : > { %912 = vmax.xlane.f32.xlu0 %v911_v38  ;;  %1025 = vmax.xlane.f32.xlu2 %v1024_v39  ;;  %v803_v40 = vpop.xlane.xlu2 %802 }
 0x2d2   : > { %v806_v42 = vsub.f32 %v793_v13, %v803_v40 }
 0x2d4   : > { %v811_v43 = vmul.f32 1.442695, %v806_v42  ;;  %947 = vrot.lane.b32.xlu1 %v3541_v41, %s3265_s28  ;;  %v1011_v44 = vpop.f32.mrf.mxu2 }
 0x2d5   : > { %v1017_v46 = vmul.f32 0.17677669, %v1011_v44 }
 0x2d6   : > { %v1117_v48 = vpop.f32.mrf.mxu0  ;;  %3177 = vpow2.f32 %v811_v43 }
 0x2d7   : > { %v3617_v49 = vsel %vm752_vm12, %v1017_v46, -1e+30  ;;  %3179 = vpow2.f32 %v809_v63  ;;  %v1126_v4 = vmul.f32 0.17677669, %v1117_v48 }
 0x2d8   : > { %v1027_v51 = vsel %vm794_vm13, %v3617_v49, -inf }
 0x2d9   : > { %814 = vadd.xlane.f32.xlu2 %v813_v50  ;;  %1028 = vmax.xlane.f32.xlu0 %v1027_v51  ;;  %v3640_v5 = vsel %vm752_vm12, %v1126_v4, -1e+30  ;;  %v946_v16 = vpop.permute.xlu2 %945 }
 0x2da   : > { %v1132_v6 = vsel %vm794_vm13, %v3640_v5, -inf }
 0x2dc   : > { %v1013_v52 = vpop.f32.mrf.mxu2  ;;  %v3623_v53 = vpop.eup %3177 }
 0x2dd   : > { %v819_v55 = vsel %vm794_vm13, %v3623_v53, 0.0  ;;  %v3634_v12 = vpop.eup %3179 }
 0x2de   : > { %v1119_v54 = vpop.f32.mrf.mxu0  ;;  %v816_v3 = vsel %vm794_vm13, %v3634_v12, 0.0 }
 0x2df   : > { %v1127_v56 = vmul.f32 0.17677669, %v1119_v54 }
 0x2e1   : > { %820 = vadd.xlane.f32.xlu0 %v819_v55  ;;  %v1130_v57 = vsel %vm752_vm12, %v1127_v56, -1e+30 }
 0x2e2   : > { %v1135_v59 = vsel %vm794_vm13, %v1130_v57, -inf }
 0x2e6   : > { %v1122_v58 = vpop.f32.mrf.mxu0 }
 0x2e7   : > { %v1128_v7 = vmul.f32 0.17677669, %v1122_v58 }
 0x2e9   : > { %1136 = vmax.xlane.f32.xlu0 %v1135_v59  ;;  %v3646_v17 = vsel %vm752_vm12, %v1128_v7, -1e+30 }
 0x2ea   : > { %v1138_v8 = vsel %vm794_vm13, %v3646_v17, -inf }
 0x2ee   : > { %v1124_v60 = vpop.f32.mrf.mxu0 }
 0x2fe   : > { %915 = vmax.xlane.f32.xlu1 %v914_v2 }
 0x306   : > { %817 = vadd.xlane.f32.xlu1 %v816_v3 }
 0x30e   : > { %1133 = vmax.xlane.f32.xlu1 %v1132_v6 }
 0x316   : > { %1139 = vmax.xlane.f32.xlu1 %v1138_v8 }
 0x32e   : > { %v910_v10 = vpop.xlane.xlu1 %909 }
 0x32f   : > { %v917_v11 = vsub.f32 %v3589_v21, %v910_v10 }
 0x331   : > { %v920_v13 = vmul.f32 1.442695, %v917_v11 }
 0x333   : > { %3181 = vpow2.f32 %v920_v13 }
 0x339   : > { %v3651_v14 = vpop.eup %3181 }
 0x33a   : > { %v926_v15 = vsel %vm794_vm13, %v3651_v14, 0.0 }
 0x33b   : > { %927 = vadd.xlane.f32.xlu0 %v926_v15 }
 0x33c   : > { %v1023_v18 = vpop.xlane.xlu0 %1022 }
 0x33d   : > { %v1030_v0 = vsub.f32 %v3595_v28, %v1023_v18 }
 0x33f   : > { %v1033_v19 = vmul.f32 1.442695, %v1030_v0 }
 0x341   : > { %3183 = vpow2.f32 %v1033_v19 }
 0x344   : > { %v913_v22 = vpop.xlane.xlu0 %912  ;;  %v1026_v23 = vpop.xlane.xlu2 %1025 }
 0x345   : > { %v918_v24 = vsub.f32 %v3601_v35, %v913_v22  ;;  %v1031_v26 = vsub.f32 %v3605_v37, %v1026_v23 }
 0x346   : > { %v948_v20 = vpop.permute.xlu1 %947 }
 0x347   : > { %v3657_v21 = vpop.eup %3183  ;;  %v922_v25 = vmul.f32 1.442695, %v918_v24  ;;  %v957_v27 = vsel %vm838_vm11, %v948_v20, 0  ;;  %v1035_v28 = vmul.f32 1.442695, %v1031_v26 }
 0x348   : > { %965 = vmatpush.bf16.msrb.mxu1 %v957_v27  ;;  %v1039_v29 = vsel %vm794_vm13, %v3657_v21, 0.0 }
 0x349   : > { %3185 = vpow2.f32 %v922_v25  ;;  %1040 = vadd.xlane.f32.xlu0 %v1039_v29 }
 0x34a   : > { %3187 = vpow2.f32 %v1035_v28 }
 0x34c   : > { %v1029_v30 = vpop.xlane.xlu0 %1028  ;;  %966 = vmatpush.bf16.msrb.mxu1 %v946_v16  ;;  %v815_v46 = vpop.xlane.xlu2 %814 }
 0x34f   : > { %v3663_v31 = vpop.eup %3185 }
 0x350   : > { %v929_v32 = vsel %vm794_vm13, %v3663_v31, 0.0  ;;  %v3667_v34 = vpop.eup %3187 }
 0x351   : > { %930 = vadd.xlane.f32.xlu2 %v929_v32  ;;  %v1042_v35 = vsel %vm794_vm13, %v3667_v34, 0.0 }
 0x354   : > { %v821_v33 = vpop.xlane.xlu0 %820 }
 0x359   : > { %1043 = vadd.xlane.f32.xlu2 %v1042_v35 }
 0x35c   : > { %v1137_v36 = vpop.xlane.xlu0 %1136 }
 0x35d   : > { %v1142_v37 = vsub.f32 %v1130_v57, %v1137_v36 }
 0x35f   : > { %v1146_v38 = vmul.f32 1.442695, %v1142_v37 }
 0x361   : > { %3189 = vpow2.f32 %v1146_v38 }
 0x367   : > { %v3671_v39 = vpop.eup %3189 }
 0x368   : > { %v1153_v40 = vsel %vm794_vm13, %v3671_v39, 0.0 }
 0x369   : > { %1154 = vadd.xlane.f32.xlu1 %v1153_v40 }
 0x371   : > { %v916_v42 = vpop.xlane.xlu1 %915  ;;  %1056 = vrot.lane.b32.xlu2 %v3549_v47, %s3266_s29 }
 0x372   : > { %v919_v43 = vsub.f32 %v907_v1, %v916_v42 }
 0x374   : > { %v924_v44 = vmul.f32 1.442695, %v919_v43 }
 0x376   : > { %3191 = vpow2.f32 %v924_v44 }
 0x377   : > { %3193 = vrcp.f32 %v815_v46 }
 0x379   : > { %v818_v48 = vpop.xlane.xlu1 %817  ;;  %1167 = vrot.lane.b32.xlu2 %v3549_v47, %s3267_s14 }
 0x37a   : > { %3195 = vrcp.f32 %v818_v48 }
 0x37b   : > { %3197 = vrcp.f32 %v821_v33 }
 0x37c   : > { %v3192_v50 = vpop.eup %3191 }
 0x37d   : > { %v932_v51 = vsel %vm794_vm13, %v3192_v50, 0.0  ;;  %v3194_v52 = vpop.eup %3193 }
 0x37e   : > { %933 = vadd.xlane.f32.xlu0 %v932_v51  ;;  %v825_v55 = vmul.f32 %v3194_v52, %v3613_v45 }
 0x380   : > { %v3196_v54 = vpop.eup %3195 }
 0x381   : > { %v826_v56 = vmul.f32 %v3196_v54, %v3634_v12  ;;  %v3198_v58 = vpop.eup %3197  ;;  %v1134_v47 = vpop.xlane.xlu1 %1133  ;;  %v1032_v12 = vsub.f32 %v3617_v49, %v1029_v30 }
 0x382   : > { %1169 = vrot.lane.b32.xlu1 %v3541_v41, %s3267_s14  ;;  %v827_v59 = vmul.f32 %v3198_v58, %v3623_v53  ;;  %v1141_v1 = vsub.f32 %v3640_v5, %v1134_v47 }
 0x383   : > { %v828_v57 = vpack.c.bf16 %v826_v56, %v825_v55 }
 0x384   : > { %v829_v60 = vpack.c.bf16 %v827_v59, %v827_v59  ;;  %v1144_v53 = vmul.f32 1.442695, %v1141_v1  ;;  %v3066_v1 = vld [vmem:[%s4630_s5 + $0x28] sm:$0xff] }
 0x385   : > { %2721 = vmatmul.msk.bf16.vlgmr.msrb.gmra.mxu3 %vm794_vm13, %v828_v57 }
 0x389   : > { %v1140_v45 = vpop.xlane.xlu1 %1139 }
 0x38a   : > { %v1143_v61 = vsub.f32 %v3646_v17, %v1140_v45 }
 0x38c   : > { %v1148_v62 = vmul.f32 1.442695, %v1143_v61  ;;  %v3068_v61 = vld [vmem:[%s4630_s5 + $0x38] sm:$0xff] }
 0x38d   : > { %1316 = vmatpush.bf16.msra.mxu2 %v3068_v61 }
 0x38e   : > { %3199 = vpow2.f32 %v1148_v62  ;;  %v3067_v62 = vld [vmem:[%s4630_s5 + $0x30] sm:$0xff] }
 0x38f   : > { %3201 = vpow2.f32 %v1144_v53 }
 0x391   : > { %1317 = vmatpush.bf16.msra.mxu2 %v3067_v62  ;;  %v2881_v62 = vld [vmem:[%s4634_s9 + $0xe0] sm:$0xf] }
 0x392   : > { %1058 = vrot.lane.b32.xlu0 %v3541_v41, %s3266_s29  ;;  %v1037_v41 = vmul.f32 1.442695, %v1032_v12 }
 0x394   : > { %v3690_v63 = vpop.eup %3199  ;;  %3203 = vpow2.f32 %v1037_v41 }
 0x395   : > { %2722 = vmatmul.msk.bf16.gmra.mxu3 %vm794_vm13, %v829_v60  ;;  %v1156_v2 = vsel %vm794_vm13, %v3690_v63, 0.0  ;;  %v3202_v3 = vpop.eup %3201  ;;  %1318 = vmatpush.bf16.msra.mxu2 %v3066_v1  ;;  %v3097_v1 = vld [vmem:[%s4634_s9 + $0xe4] sm:$0xf] }
 0x396   : > { %v1150_v4 = vsel %vm794_vm13, %v3202_v3, 0.0 }
 0x39a   : > { %v3204_v6 = vpop.eup %3203 }
 0x39b   : > { %v1045_v17 = vsel %vm794_vm13, %v3204_v6, 0.0 }
 0x3ac   : > { %1157 = vadd.xlane.f32.xlu1 %v1156_v2 }
 0x3ae   : > { %v928_v7 = vpop.xlane.xlu0 %927 }
 0x3af   : > { %3205 = vrcp.f32 %v928_v7  ;;  %v3064_v7 = vld [vmem:[%s4630_s5 + $0x18] sm:$0xff] }
 0x3b5   : > { %v3206_v8 = vpop.eup %3205 }
 0x3b6   : > { %v938_v11 = vmul.f32 %v3206_v8, %v3651_v14  ;;  %v3061_v8 = vld [vmem:[%s4630_s5] sm:$0xff] }
 0x3bc   : > { %1151 = vadd.xlane.f32.xlu0 %v1150_v4  ;;  %v1041_v16 = vpop.xlane.xlu0 %1040 }
 0x3c4   : > { %1046 = vadd.xlane.f32.xlu0 %v1045_v17  ;;  %v931_v5 = vpop.xlane.xlu2 %930  ;;  %v3063_v17 = vld [vmem:[%s4630_s5 + $0x10] sm:$0xff] }
 0x3c5   : > { %3207 = vrcp.f32 %v931_v5  ;;  %v3062_v5 = vld [vmem:[%s4630_s5 + $0x8] sm:$0xff] }
 0x3cb   : > { %v3208_v10 = vpop.eup %3207 }
 0x3cc   : > { %v939_v49 = vmul.f32 %v3208_v10, %v3663_v31  ;;  %v1044_v15 = vpop.xlane.xlu2 %1043 }
 0x3ce   : > { %v941_v13 = vpack.c.bf16 %v939_v49, %v938_v11 }
 0x3d0   : > { %2725 = vmatmul.msk.bf16.vlgmr.msrb.gmra.mxu1 %vm794_vm13, %v941_v13 }
 0x3d4   : > { %v1057_v0 = vpop.permute.xlu2 %1056 }
 0x3dc   : > { %v1155_v18 = vpop.xlane.xlu1 %1154  ;;  %v1168_v20 = vpop.permute.xlu2 %1167 }
 0x3f1   : > { %v934_v19 = vpop.xlane.xlu0 %933 }
 0x3f2   : > { %3209 = vrcp.f32 %v934_v19 }
 0x3f3   : > { %3211 = vrcp.f32 %v1044_v15 }
 0x3f4   : > { %v1170_v22 = vpop.permute.xlu1 %1169  ;;  %3213 = vrcp.f32 %v1041_v16 }
 0x3f5   : > { %v1179_v23 = vsel %vm838_vm11, %v1170_v22, 0  ;;  %3215 = vrcp.f32 %v1155_v18 }
 0x3f6   : > { %1187 = vmatpush.bf16.msra.mxu1 %v1179_v23 }
 0x3f8   : > { %v3210_v24 = vpop.eup %3209 }
 0x3f9   : > { %v940_v25 = vmul.f32 %v3210_v24, %v3192_v50  ;;  %v3212_v26 = vpop.eup %3211 }
 0x3fa   : > { %1188 = vmatpush.bf16.msra.mxu1 %v1168_v20  ;;  %v3214_v28 = vpop.eup %3213  ;;  %v1052_v30 = vmul.f32 %v3212_v26, %v3667_v34 }
 0x3fb   : > { %v942_v14 = vpack.c.bf16 %v940_v25, %v940_v25  ;;  %v1051_v32 = vmul.f32 %v3214_v28, %v3657_v21  ;;  %v3216_v40 = vpop.eup %3215 }
 0x3fc   : > { %v1163_v34 = vmul.f32 %v3216_v40, %v3671_v39  ;;  %v3253_v40 = vld [vmem:[%s3354_s30] sm:$0xff] }
 0x3fd   : > { %2726 = vmatmul.msk.bf16.gmra.mxu1 %vm794_vm13, %v942_v14  ;;  %v1054_v33 = vpack.c.bf16 %v1052_v30, %v1051_v32 }
 0x404   : > { %v1059_v27 = vpop.permute.xlu0 %1058 }
 0x405   : > { %v1068_v29 = vsel %vm838_vm11, %v1059_v27, 0 }
 0x406   : > { %1076 = vmatpush.bf16.msra.mxu3 %v1068_v29 }
 0x408   : > { %v3705_v31 = vpop.f32.mrf.mxu3 }
 0x40a   : > { %1077 = vmatpush.bf16.msra.mxu3 %v1057_v0 }
 0x40d   : > { %2729 = vmatmul.msk.bf16.vlgmr.msra.gmra.mxu3 %vm794_vm13, %v1054_v33 }
 0x410   : > { %v3709_v35 = vpop.f32.mrf.mxu3 }
 0x418   : > { %v3711_v36 = vpop.f32.mrf.mxu3 }
 0x41f   : > { %v1158_v21 = vpop.xlane.xlu1 %1157 }
 0x420   : > { %v858_v37 = vpop.f32.mrf.mxu3 }
 0x42f   : > { %v1152_v38 = vpop.xlane.xlu0 %1151 }
 0x430   : > { %3217 = vrcp.f32 %v1152_v38 }
 0x436   : > { %v3218_v42 = vpop.eup %3217 }
 0x437   : > { %v1162_v43 = vmul.f32 %v3218_v42, %v3202_v3  ;;  %v1047_v44 = vpop.xlane.xlu0 %1046 }
 0x438   : > { %3219 = vrcp.f32 %v1047_v44 }
 0x439   : > { %v1165_v46 = vpack.c.bf16 %v1163_v34, %v1162_v43  ;;  %3221 = vrcp.f32 %v1158_v21  ;;  %v3254_v43 = vld [vmem:[%s3354_s30 + $0x8] sm:$0xff] }
 0x43b   : > { %2733 = vmatmul.msk.bf16.vlgmr.msra.gmra.mxu1 %vm794_vm13, %v1165_v46 }
 0x43e   : > { %v3220_v48 = vpop.eup %3219 }
 0x43f   : > { %v1053_v50 = vmul.f32 %v3220_v48, %v3204_v6  ;;  %v3222_v52 = vpop.eup %3221  ;;  %v3065_v6 = vld [vmem:[%s4630_s5 + $0x20] sm:$0xff]  ;;  %v3255_v48 = vld [vmem:[%s3354_s30 + $0x10] sm:$0xff] }
 0x440   : > { %v1164_v54 = vmul.f32 %v3222_v52, %v3690_v63  ;;  %1319 = vmatpush.bf16.msra.mxu2 %v3065_v6  ;;  %v3098_v6 = vld [vmem:[%s4634_s9 + $0xec] sm:$0xf] }
 0x441   : > { %v1055_v51 = vpack.c.bf16 %v1053_v50, %v1053_v50 }
 0x442   : > { %v1166_v55 = vpack.c.bf16 %v1164_v54, %v1164_v54 }
 0x443   : > { %2730 = vmatmul.msk.bf16.gmra.mxu3 %vm794_vm13, %v1055_v51 }
 0x444   : > { %1320 = vmatpush.bf16.msra.mxu2 %v3064_v7  ;;  %v2891_v7 = vld [vmem:[%s4634_s9 + $0xf8] sm:$0xf0] }
 0x448   : > { %1321 = vmatpush.bf16.msra.mxu2 %v3063_v17  ;;  %v2894_v17 = vor.u32 %v3098_v6, %v2891_v7  ;;  %v3080_v6 = vld [vmem:[%s4634_s9 + $0x54] sm:$0xf0] }
 0x44b   : > { %2734 = vmatmul.msk.bf16.gmra.mxu1 %vm794_vm13, %v1166_v55 }
 0x44c   : > { %1322 = vmatpush.bf16.msra.mxu2 %v3062_v5  ;;  %v2865_v5 = vld [vmem:[%s4634_s9 + $0xc0] sm:$0xf] }
 0x44d   : > { %v968_v39 = vpop.f32.mrf.mxu1 }
 0x450   : > { %1323 = vmatpush.bf16.msra.mxu2 %v3061_v8  ;;  %v3095_v8 = vld [vmem:[%s4634_s9 + $0xcc] sm:$0xf0] }
 0x454   : > { %1669 = vmatpush.bf16.msrb.mxu2 %v2894_v17 }
 0x455   : > { %v970_v56 = vpop.f32.mrf.mxu1 }
 0x456   : > { %v3146_v57 = vpack.i.bf16 %v970_v56, %v968_v39 }
 0x458   : > { %3147 = vrot.lane.b32.xlu2 %v3146_v57, %s3267_s14 }
 0x47a   : > { %v973_v58 = vpop.f32.mrf.mxu1 }
 0x482   : > { %v975_v47 = vpop.f32.mrf.mxu1 }
 0x490   : > { %v1079_v59 = vpop.f32.mrf.mxu3 }
 0x498   : > { %v1081_v60 = vpop.f32.mrf.mxu3 }
 0x499   : > { %v3151_v45 = vpack.i.bf16 %v1081_v60, %v1079_v59 }
 0x49b   : > { %3152 = vrot.lane.b32.xlu0 %v3151_v45, %s3266_s29 }
 0x4b2   : > { %v3148_v10 = vpop.permute.xlu2 %3147 }
 0x4b3   : > { %v3150_v49 = vunpack.i.h.bf16 %v3148_v10  ;;  %v3149_v13 = vunpack.i.l.bf16 %v3148_v10  ;;  %v3093_v10 = vld [vmem:[%s4634_s9 + $0xc4] sm:$0xf] }
 0x4b5   : > { %v1236_v0 = vsel %vm757_vm10, %v3709_v35, %v3150_v49  ;;  %v1235_v19 = vsel %vm757_vm10, %v3705_v31, %v3149_v13  ;;  %v3163_v35 = vld [vmem:[%s4631_s6] ss:$0 sm:$0xff]  ;;  %v2867_v49 = vld [vmem:[%s4634_s9 + $0xd0] sm:$0xf0]  ;;  %v2873_v13 = vld [vmem:[%s4634_s9 + $0xc8] sm:$0xf] }
 0x4b8   : > { %v1190_v63 = vpop.f32.mrf.mxu1 }
 0x4c0   : > { %v1192_v2 = vpop.f32.mrf.mxu1 }
 0x4c1   : > { %v3156_v53 = vpack.i.bf16 %v1192_v2, %v1190_v63  ;;  %v3099_v63 = vld [vmem:[%s4634_s9 + $0xec] sm:$0xf0] }
 0x4c2   : > { %v2882_v2 = vor.u32 %v3099_v63, %v2881_v62  ;;  %v3082_v62 = vld [vmem:[%s4634_s9 + $0x6c] sm:$0xf]  ;;  %v2827_v63 = vld [vmem:[%s4634_s9 + $0x78] sm:$0xf0] }
 0x4c3   : > { %3157 = vrot.lane.b32.xlu2 %v3156_v53, %s3265_s28  ;;  %v2883_v53 = vld [vmem:[%s4634_s9 + $0xf0] sm:$0xf0] }
 0x4c4   : > { %1615 = vmatpush.bf16.msrb.mxu3 %v2882_v2  ;;  %v2801_v2 = vld [vmem:[%s4634_s9 + $0x40] sm:$0xf] }
 0x4c6   : > { %v1084_v12 = vpop.f32.mrf.mxu3 }
 0x4c7   : > { %1218 = vrot.lane.b32.xlu0 %v1084_v12, %s3266_s29  ;;  %v2889_v12 = vld [vmem:[%s4634_s9 + $0xe8] sm:$0xf] }
 0x4c8   : > { %v1195_v41 = vpop.f32.mrf.mxu1 }
 0x4cb   : > { %1206 = vrot.lane.b32.xlu2 %v973_v58, %s3267_s14 }
 0x4ce   : > { %v1086_v3 = vpop.f32.mrf.mxu3 }
 0x4cf   : > { %v2886_v3 = vor.u32 %v3097_v1, %v2883_v53  ;;  %v2830_v1 = vor.u32 %v3082_v62, %v2827_v63  ;;  %v3079_v53 = vld [vmem:[%s4634_s9 + $0x4c] sm:$0xf0] }
 0x4d0   : > { %v1197_v4 = vpop.f32.mrf.mxu1 }
 0x4d1   : > { %1633 = vmatpush.bf16.msrb.mxu0 %v2886_v3  ;;  %v2803_v3 = vld [vmem:[%s4634_s9 + $0x50] sm:$0xf0] }
 0x4d3   : > { %1230 = vrot.lane.b32.xlu2 %v1195_v41, %s3265_s28  ;;  %v3100_v41 = vld [vmem:[%s4634_s9 + $0xf4] sm:$0xf0] }
 0x4d4   : > { %v2890_v4 = vor.u32 %v3100_v41, %v2889_v12  ;;  %v3077_v12 = vld [vmem:[%s4634_s9 + $0x44] sm:$0xf]  ;;  %v2802_v41 = vor.u32 %v3079_v53, %v2801_v2 }
 0x4d5   : > { %v2806_v7 = vor.u32 %v3077_v12, %v2803_v3 }
 0x4d6   : > { %1651 = vmatpush.bf16.msrb.mxu1 %v2890_v4  ;;  %v2809_v4 = vld [vmem:[%s4634_s9 + $0x48] sm:$0xf] }
 0x4d7   : > { %v2810_v17 = vor.u32 %v3080_v6, %v2809_v4  ;;  %v3165_v6 = vld [vmem:[%s4633_s8] ss:$0 sm:$0xff] }
 0x50d   : > { %v3153_v11 = vpop.permute.xlu0 %3152 }
 0x50e   : > { %v3155_v15 = vunpack.i.h.bf16 %v3153_v11  ;;  %v3154_v16 = vunpack.i.l.bf16 %v3153_v11  ;;  %v2866_v11 = vor.u32 %v3095_v8, %v2865_v5  ;;  %v3078_v5 = vld [vmem:[%s4634_s9 + $0x4c] sm:$0xf]  ;;  %v2811_v8 = vld [vmem:[%s4634_s9 + $0x58] sm:$0xf0] }
 0x510   : > { %v1239_v24 = vsel %vm1238_vm14, %v1235_v19, %v3154_v16  ;;  %v1240_v20 = vsel %vm1238_vm14, %v1236_v0, %v3155_v15  ;;  %v3096_v15 = vld [vmem:[%s4634_s9 + $0xd4] sm:$0xf0]  ;;  %v2870_v16 = vor.u32 %v3093_v10, %v2867_v49  ;;  %v3094_v0 = vld [vmem:[%s4634_s9 + $0xcc] sm:$0xf]  ;;  %v2875_v19 = vld [vmem:[%s4634_s9 + $0xd8] sm:$0xf0]  ;;  %1616 = vmatpush.bf16.msrb.mxu3 %v2866_v11  ;;  %v2814_v10 = vor.u32 %v3078_v5, %v2811_v8 }
 0x511   : > { %v2785_v11 = vld [vmem:[%s4634_s9 + $0x20] sm:$0xf]  ;;  %v3075_v49 = vld [vmem:[%s4634_s9 + $0x2c] sm:$0xf0] }
 0x512   : > { %1634 = vmatpush.bf16.msrb.mxu0 %v2870_v16  ;;  %v2787_v16 = vld [vmem:[%s4634_s9 + $0x30] sm:$0xf0] }
 0x51d   : > { %v3158_v18 = vpop.permute.xlu2 %3157 }
 0x51e   : > { %v3160_v22 = vunpack.i.h.bf16 %v3158_v18  ;;  %v3159_v23 = vunpack.i.l.bf16 %v3158_v18  ;;  %v2874_v18 = vor.u32 %v3096_v15, %v2873_v13  ;;  %v3073_v13 = vld [vmem:[%s4634_s9 + $0x24] sm:$0xf]  ;;  %v2786_v15 = vor.u32 %v3075_v49, %v2785_v11 }
 0x520   : > { %v1243_v25 = vsel %vm1242_vm15, %v1239_v24, %v3159_v23  ;;  %v1244_v14 = vsel %vm1242_vm15, %v1240_v20, %v3160_v22  ;;  %v2878_v22 = vor.u32 %v3094_v0, %v2875_v19  ;;  %1652 = vmatpush.bf16.msrb.mxu1 %v2874_v18  ;;  %v2849_v23 = vld [vmem:[%s4634_s9 + $0xa0] sm:$0xf]  ;;  %v3091_v24 = vld [vmem:[%s4634_s9 + $0xac] sm:$0xf0]  ;;  %v3089_v20 = vld [vmem:[%s4634_s9 + $0xa4] sm:$0xf] }
 0x521   : > { %v1246_v26 = vpack.c.bf16 %v1244_v14, %v1243_v25  ;;  %v2850_v25 = vor.u32 %v3091_v24, %v2849_v23  ;;  %v2851_v14 = vld [vmem:[%s4634_s9 + $0xb0] sm:$0xf0]  ;;  %v2793_v18 = vld [vmem:[%s4634_s9 + $0x28] sm:$0xf]  ;;  %v3076_v0 = vld [vmem:[%s4634_s9 + $0x34] sm:$0xf0] }
 0x522   : > { %1670 = vmatpush.bf16.msrb.mxu2 %v2878_v22  ;;  %v2790_v22 = vor.u32 %v3073_v13, %v2787_v16  ;;  %v2794_v23 = vor.u32 %v3076_v0, %v2793_v18  ;;  %v3074_v24 = vld [vmem:[%s4634_s9 + $0x2c] sm:$0xf] }
 0x523   : > { %1324 = vmatmul.bf16.vlgmr.msra.gmra.mxu2 %v1246_v26  ;;  %v2857_v26 = vld [vmem:[%s4634_s9 + $0xa8] sm:$0xf]  ;;  %1617 = vmatpush.bf16.msrb.mxu3 %v2850_v25 }
 0x525   : > { %v1207_v27 = vpop.permute.xlu2 %1206 }
 0x526   : > { %v1237_v29 = vsel %vm757_vm10, %v3711_v36, %v1207_v27  ;;  %v3092_v27 = vld [vmem:[%s4634_s9 + $0xb4] sm:$0xf0] }
 0x52d   : > { %v1231_v30 = vpop.permute.xlu2 %1230 }
 0x539   : > { %v1219_v28 = vpop.permute.xlu0 %1218 }
 0x53a   : > { %v1241_v31 = vsel %vm1238_vm14, %v1237_v29, %v1219_v28  ;;  %v2854_v29 = vor.u32 %v3089_v20, %v2851_v14  ;;  %v2858_v28 = vor.u32 %v3092_v27, %v2857_v26  ;;  %v2795_v20 = vld [vmem:[%s4634_s9 + $0x38] sm:$0xf0]  ;;  %v2769_v26 = vld [vmem:[%s4634_s9] sm:$0xf]  ;;  %v3071_v27 = vld [vmem:[%s4634_s9 + $0xc] sm:$0xf0] }
 0x53b   : > { %v1245_v32 = vsel %vm1242_vm15, %v1241_v31, %v1231_v30  ;;  %v3090_v30 = vld [vmem:[%s4634_s9 + $0xac] sm:$0xf]  ;;  %v2859_v31 = vld [vmem:[%s4634_s9 + $0xb8] sm:$0xf0]  ;;  %v2798_v14 = vor.u32 %v3074_v24, %v2795_v20 }
 0x53c   : > { %v1247_v33 = vpack.c.bf16 %v1245_v32, %v1245_v32  ;;  %v2862_v32 = vor.u32 %v3090_v30, %v2859_v31  ;;  %1635 = vmatpush.bf16.msrb.mxu0 %v2854_v29  ;;  %1653 = vmatpush.bf16.msrb.mxu1 %v2858_v28  ;;  %v3069_v29 = vld [vmem:[%s4634_s9 + $0x4] sm:$0xf]  ;;  %v2770_v30 = vor.u32 %v3071_v27, %v2769_v26  ;;  %v2771_v31 = vld [vmem:[%s4634_s9 + $0x10] sm:$0xf0] }
 0x53e   : > { %1329 = vmatmul.bf16.gmra.mxu2 %v1247_v33  ;;  %v2833_v33 = vld [vmem:[%s4634_s9 + $0x80] sm:$0xf] }
 0x53f   : > { %1671 = vmatpush.bf16.msrb.mxu2 %v2862_v32  ;;  %v2777_v32 = vld [vmem:[%s4634_s9 + $0x8] sm:$0xf] }
 0x5a6   : > { %v1325_v37 = vpop.f32.mrf.mxu2 }
 0x5a7   : > { %v1326_v38 = vadd.f32 %v3163_v35, %v1325_v37  ;;  %v3085_v37 = vld [vmem:[%s4634_s9 + $0x84] sm:$0xf] }
 0x5a9   : > { %v3764_v42 = vadd.f32 %v3253_v40, %v1326_v38  ;;  %v2835_v40 = vld [vmem:[%s4634_s9 + $0x90] sm:$0xf0] }
 0x5ab   : > { %1339 = vadd.xlane.f32.xlu0 %v3764_v42 }
 0x5ae   : > { %v1327_v36 = vpop.f32.mrf.mxu2 }
 0x5af   : > { %v1328_v34 = vadd.f32 %v3163_v35, %v1327_v36  ;;  %v2841_v36 = vld [vmem:[%s4634_s9 + $0x88] sm:$0xf] }
 0x5b1   : > { %v3768_v44 = vadd.f32 %v3254_v43, %v1328_v34  ;;  %v3088_v34 = vld [vmem:[%s4634_s9 + $0x94] sm:$0xf0]  ;;  %v2838_v43 = vor.u32 %v3085_v37, %v2835_v40  ;;  %v3070_v37 = vld [vmem:[%s4634_s9 + $0xc] sm:$0xf] }
 0x5b3   : > { %1341 = vadd.xlane.f32.xlu2 %v3768_v44  ;;  %1636 = vmatpush.bf16.msrb.mxu0 %v2838_v43 }
 0x5c1   : > { %v1330_v21 = vpop.f32.mrf.mxu2 }
 0x5c2   : > { %v1331_v46 = vadd.f32 %v3163_v35, %v1330_v21  ;;  %v3087_v35 = vld [vmem:[%s4634_s9 + $0x8c] sm:$0xf0]  ;;  %v2842_v21 = vor.u32 %v3088_v34, %v2841_v36 }
 0x5c3   : > { %v2834_v38 = vor.u32 %v3087_v35, %v2833_v33  ;;  %v2774_v33 = vor.u32 %v3069_v29, %v2771_v31  ;;  %v3072_v35 = vld [vmem:[%s4634_s9 + $0x14] sm:$0xf0] }
 0x5c4   : > { %v3772_v50 = vadd.f32 %v3255_v48, %v1331_v46  ;;  %v3086_v46 = vld [vmem:[%s4634_s9 + $0x8c] sm:$0xf]  ;;  %v2843_v48 = vld [vmem:[%s4634_s9 + $0x98] sm:$0xf0]  ;;  %1654 = vmatpush.bf16.msrb.mxu1 %v2842_v21  ;;  %v2778_v40 = vor.u32 %v3072_v35, %v2777_v32 }
 0x5c5   : > { %1618 = vmatpush.bf16.msrb.mxu3 %v2834_v38  ;;  %v2779_v38 = vld [vmem:[%s4634_s9 + $0x18] sm:$0xf0] }
 0x5c6   : > { %1343 = vadd.xlane.f32.xlu1 %v3772_v50  ;;  %v2782_v36 = vor.u32 %v3070_v37, %v2779_v38 }
 0x5c9   : > { %v1332_v51 = vpop.f32.mrf.mxu2 }
 0x5ca   : > { %v2846_v51 = vor.u32 %v3086_v46, %v2843_v48 }
 0x5cc   : > { %1672 = vmatpush.bf16.msrb.mxu2 %v2846_v51 }
 0x5d0   : > { %1673 = vmatpush.bf16.msrb.mxu2 %v2830_v1  ;;  %v3164_v1 = vld [vmem:[%s4632_s7] ss:$0 sm:$0xff] }
 0x5d4   : > { %1674 = vmatpush.bf16.msrb.mxu2 %v2814_v10 }
 0x5d8   : > { %1675 = vmatpush.bf16.msrb.mxu2 %v2798_v14 }
 0x5dc   : > { %1676 = vmatpush.bf16.msrb.mxu2 %v2782_v36 }
 0x61e   : > { %v1340_v52 = vpop.xlane.xlu0 %1339 }
 0x61f   : > { %v1345_v54 = vmul.f32 %v1340_v52, %v3359_v9  ;;  %v2817_v52 = vld [vmem:[%s4634_s9 + $0x60] sm:$0xf] }
 0x621   : > { %v3777_v55 = vsub.f32 %v3764_v42, %v1345_v54  ;;  %v3083_v54 = vld [vmem:[%s4634_s9 + $0x6c] sm:$0xf0] }
 0x623   : > { %v1351_v39 = vmul.f32 %v3777_v55, %v3777_v55 }
 0x625   : > { %1354 = vadd.xlane.f32.xlu1 %v1351_v39  ;;  %v3081_v39 = vld [vmem:[%s4634_s9 + $0x64] sm:$0xf] }
 0x626   : > { %v1342_v56 = vpop.xlane.xlu2 %1341 }
 0x627   : > { %v1346_v57 = vmul.f32 %v1342_v56, %v3359_v9  ;;  %v2818_v56 = vor.u32 %v3083_v54, %v2817_v52 }
 0x629   : > { %v3783_v58 = vsub.f32 %v3768_v44, %v1346_v57  ;;  %v2819_v57 = vld [vmem:[%s4634_s9 + $0x70] sm:$0xf0]  ;;  %1619 = vmatpush.bf16.msrb.mxu3 %v2818_v56 }
 0x62b   : > { %v1352_v47 = vmul.f32 %v3783_v58, %v3783_v58 }
 0x62d   : > { %1356 = vadd.xlane.f32.xlu1 %v1352_v47  ;;  %v2825_v47 = vld [vmem:[%s4634_s9 + $0x68] sm:$0xf]  ;;  %1620 = vmatpush.bf16.msrb.mxu3 %v2802_v41 }
 0x631   : > { %1621 = vmatpush.bf16.msrb.mxu3 %v2786_v15 }
 0x635   : > { %1622 = vmatpush.bf16.msrb.mxu3 %v2770_v30 }
 0x639   : > { %v1344_v59 = vpop.xlane.xlu1 %1343 }
 0x63a   : > { %v1347_v60 = vmul.f32 %v1344_v59, %v3359_v9  ;;  %v3084_v59 = vld [vmem:[%s4634_s9 + $0x74] sm:$0xf0] }
 0x63c   : > { %v3789_v45 = vsub.f32 %v3772_v50, %v1347_v60  ;;  %v2822_v60 = vor.u32 %v3081_v39, %v2819_v57 }
 0x63e   : > { %v1353_v61 = vmul.f32 %v3789_v45, %v3789_v45  ;;  %1637 = vmatpush.bf16.msrb.mxu0 %v2822_v60 }
 0x640   : > { %1358 = vadd.xlane.f32.xlu1 %v1353_v61  ;;  %v2826_v61 = vor.u32 %v3084_v59, %v2825_v47 }
 0x642   : > { %1655 = vmatpush.bf16.msrb.mxu1 %v2826_v61  ;;  %1638 = vmatpush.bf16.msrb.mxu0 %v2806_v7 }
 0x646   : > { %1656 = vmatpush.bf16.msrb.mxu1 %v2810_v17  ;;  %1639 = vmatpush.bf16.msrb.mxu0 %v2790_v22 }
 0x64a   : > { %1657 = vmatpush.bf16.msrb.mxu1 %v2794_v23  ;;  %1640 = vmatpush.bf16.msrb.mxu0 %v2774_v33 }
 0x64e   : > { %1658 = vmatpush.bf16.msrb.mxu1 %v2778_v40 }
 0x698   : > { %v1355_v19 = vpop.xlane.xlu1 %1354 }
 0x699   : > { %v1360_v25 = vmul.f32 %v1355_v19, %v3359_v9  ;;  %v1445_v19 = vld [vmem:[%s4635_s10] sm:$0xf] }
 0x69a   : > { %v4000_v22 = vperm.slane %v1445_v19, 1  ;;  %v4002_v23 = vperm.slane %v1445_v19, 2  ;;  %v4013_v26 = vperm.slane %v1445_v19, 0  ;;  %v4018_v29 = vperm.slane %v1445_v19, 3 }
 0x69b   : > { %v1363_v28 = vadd.f32 1e-12, %v1360_v25 }
 0x69d   : > { %3223 = vrsqrt.f32 %v1363_v28  ;;  %vm1372_vm1 = vweird.f32 %v1363_v28 }
 0x6a0   : > { %v1357_v34 = vpop.xlane.xlu1 %1356 }
 0x6a1   : > { %v1361_v43 = vmul.f32 %v1357_v34, %v3359_v9 }
 0x6a3   : > { %v3224_v21 = vpop.eup %3223  ;;  %v1364_v46 = vadd.f32 1e-12, %v1361_v43 }
 0x6a4   : > { %v1367_v48 = vmul.f32 %v3224_v21, %v1363_v28  ;;  %vm1373_vm0 = vweird.f32 %v3224_v21 }
 0x6a5   : > { %3225 = vrsqrt.f32 %v1364_v46  ;;  %vm1374_vm2 = vmor %vm1372_vm1, %vm1373_vm0  ;;  %vm1382_vm4 = vweird.f32 %v1364_v46 }
 0x6a6   : > { %v1368_v51 = vmul.f32 %v3224_v21, %v1367_v48 }
 0x6a8   : > { %v1369_v52 = vmul.f32 0.5, %v1368_v51 }
 0x6aa   : > { %v1370_v54 = vsub.f32 1.5, %v1369_v52 }
 0x6ab   : > { %v3226_v39 = vpop.eup %3225 }
 0x6ac   : > { %v1371_v56 = vmul.f32 %v3224_v21, %v1370_v54  ;;  %v1377_v57 = vmul.f32 %v3226_v39, %v1364_v46  ;;  %vm1383_vm3 = vweird.f32 %v3226_v39 }
 0x6ad   : > { %vm1384_vm5 = vmor %vm1382_vm4, %vm1383_vm3 }
 0x6ae   : > { %v1378_v47 = vmul.f32 %v3226_v39, %v1377_v57  ;;  %v1375_v59 = vsel %vm1374_vm2, %v3224_v21, %v1371_v56 }
 0x6af   : > { %v1396_v62 = vmul.f32 %v1375_v59, %v3777_v55 }
 0x6b0   : > { %v1379_v60 = vmul.f32 0.5, %v1378_v47 }
 0x6b1   : > { %v1402_v4 = vmul.f32 %v3164_v1, %v1396_v62 }
 0x6b2   : > { %v1380_v61 = vsub.f32 1.5, %v1379_v60 }
 0x6b3   : > { %v1359_v63 = vpop.xlane.xlu1 %1358  ;;  %v1408_v7 = vadd.f32 %v3165_v6, %v1402_v4 }
 0x6b4   : > { %v1381_v2 = vmul.f32 %v3226_v39, %v1380_v61  ;;  %v1362_v53 = vmul.f32 %v1359_v63, %v3359_v9 }
 0x6b6   : > { %v1385_v12 = vsel %vm1384_vm5, %v3226_v39, %v1381_v2  ;;  %v1365_v41 = vadd.f32 1e-12, %v1362_v53 }
 0x6b7   : > { %v1397_v3 = vmul.f32 %v1385_v12, %v3783_v58 }
 0x6b8   : > { %3227 = vrsqrt.f32 %v1365_v41  ;;  %vm1392_vm7 = vweird.f32 %v1365_v41 }
 0x6b9   : > { %v1403_v55 = vmul.f32 %v3164_v1, %v1397_v3 }
 0x6bb   : > { %v1409_v17 = vadd.f32 %v3165_v6, %v1403_v55 }
 0x6bd   : > { %v1411_v5 = vpack.c.bf16 %v1409_v17, %v1408_v7 }
 0x6be   : > { %v3228_v8 = vpop.eup %3227 }
 0x6bf   : > { %v1387_v10 = vmul.f32 %v3228_v8, %v1365_v41  ;;  %1623 = vmatmul.bf16.vlgmr.msrb.gmra.mxu3 %v1411_v5  ;;  %1641 = vmatmul.bf16.vlgmr.msrb.gmra.mxu0 %v1411_v5  ;;  %vm1393_vm6 = vweird.f32 %v3228_v8 }
 0x6c0   : > { %1659 = vmatmul.bf16.vlgmr.msrb.gmra.mxu1 %v1411_v5  ;;  %1677 = vmatmul.bf16.vlgmr.msrb.gmra.mxu2 %v1411_v5  ;;  %vm1394_vm8 = vmor %vm1392_vm7, %vm1393_vm6 }
 0x6c1   : > { %v1388_v9 = vmul.f32 %v3228_v8, %v1387_v10 }
 0x6c3   : > { %v1389_v11 = vmul.f32 0.5, %v1388_v9 }
 0x6c5   : > { %v1390_v49 = vsub.f32 1.5, %v1389_v11 }
 0x6c7   : > { %v1391_v58 = vmul.f32 %v3228_v8, %v1390_v49 }
 0x6c9   : > { %v1395_v13 = vsel %vm1394_vm8, %v3228_v8, %v1391_v58 }
 0x6ca   : > { %v1398_v15 = vmul.f32 %v1395_v13, %v3789_v45 }
 0x6cc   : > { %v1404_v16 = vmul.f32 %v3164_v1, %v1398_v15 }
 0x6ce   : > { %v1410_v18 = vadd.f32 %v3165_v6, %v1404_v16 }
 0x6d0   : > { %v1412_v0 = vpack.c.bf16 %v1410_v18, %v1410_v18 }
 0x6d2   : > { %1628 = vmatmul.bf16.gmra.mxu3 %v1412_v0  ;;  %1646 = vmatmul.bf16.gmra.mxu0 %v1412_v0 }
 0x6d3   : > { %1664 = vmatmul.bf16.gmra.mxu1 %v1412_v0  ;;  %1682 = vmatmul.bf16.gmra.mxu2 %v1412_v0 }
 0x73c   : > { %v1642_v24 = vpop.f32.mrf.mxu0 }
 0x73d   : > { %v4005_v20 = vadd.f32 %v1642_v24, %v4000_v22  ;;  %v1660_v45 = vpop.f32.mrf.mxu1 }
 0x73e   : > { %v4008_v25 = vadd.f32 %v1660_v45, %v4002_v23 }
 0x73f   : > { %v4011_v14 = vmul.f32 0.70710677, %v4005_v20 }
 0x740   : > { %v4016_v27 = vmul.f32 0.70710677, %v4008_v25 }
 0x741   : > { %v1751_v28 = vmul.f32 %v4011_v14, %v4011_v14 }
 0x742   : > { %v1791_v30 = vmul.f32 %v4016_v27, %v4016_v27  ;;  %v1624_v31 = vpop.f32.mrf.mxu3 }
 0x743   : > { %v4024_v32 = vmin.f32 %v1751_v28, 16.0  ;;  %v4027_v33 = vadd.f32 %v1624_v31, %v4013_v26  ;;  %v1678_v35 = vpop.f32.mrf.mxu2 }
 0x744   : > { %v4029_v37 = vmin.f32 %v1791_v30, 16.0  ;;  %v4032_v38 = vadd.f32 %v1678_v35, %v4018_v29  ;;  %v1644_v56 = vpop.f32.mrf.mxu0 }
 0x745   : > { %v1753_v40 = vmul.f32 2.1237322e-06, %v4024_v32  ;;  %v1764_v36 = vmul.f32 3.8918573e-05, %v4024_v32  ;;  %v4039_v21 = vmul.f32 0.70710677, %v4027_v33  ;;  %v4055_v2 = vadd.f32 %v1644_v56, %v4000_v22  ;;  %v1662_v30 = vpop.f32.mrf.mxu1 }
 0x746   : > { %v1793_v34 = vmul.f32 2.1237322e-06, %v4029_v37  ;;  %v1804_v43 = vmul.f32 3.8918573e-05, %v4029_v37  ;;  %v4044_v39 = vmul.f32 0.70710677, %v4032_v38 }
 0x747   : > { %v1754_v46 = vadd.f32 0.00028619796, %v1753_v40  ;;  %v1765_v48 = vadd.f32 0.001143296, %v1764_v36  ;;  %v1711_v54 = vmul.f32 %v4039_v21, %v4039_v21  ;;  %v4065_v10 = vmul.f32 0.70710677, %v4055_v2 }
 0x748   : > { %v1794_v51 = vadd.f32 0.00028619796, %v1793_v34  ;;  %v1805_v52 = vadd.f32 0.001143296, %v1804_v43  ;;  %v1831_v62 = vmul.f32 %v4044_v39, %v4044_v39 }
 0x749   : > { %v1755_v57 = vmul.f32 %v1754_v46, %v4024_v32  ;;  %v1766_v47 = vmul.f32 %v1765_v48, %v4024_v32  ;;  %v4050_v61 = vmin.f32 %v1711_v54, 16.0  ;;  %v1911_v40 = vmul.f32 %v4065_v10, %v4065_v10 }
 0x74a   : > { %v1795_v59 = vmul.f32 %v1794_v51, %v4029_v37  ;;  %v1806_v60 = vmul.f32 %v1805_v52, %v4029_v37  ;;  %v4061_v55 = vmin.f32 %v1831_v62, 16.0  ;;  %v1663_v51 = vadd.f32 %v1662_v30, %v4002_v23 }
 0x74b   : > { %v1756_v63 = vadd.f32 0.0036580483, %v1755_v57  ;;  %v1767_v1 = vadd.f32 0.014752088, %v1766_v47  ;;  %v1713_v41 = vmul.f32 2.1237322e-06, %v4050_v61 }
 0x74c   : > { %v1796_v53 = vadd.f32 0.0036580483, %v1795_v59  ;;  %v1807_v12 = vadd.f32 0.014752088, %v1806_v60  ;;  %v1724_v6 = vmul.f32 3.8918573e-05, %v4050_v61 }
 0x74d   : > { %v1757_v3 = vmul.f32 %v1756_v63, %v4024_v32  ;;  %v1768_v4 = vmul.f32 %v1767_v1, %v4024_v32  ;;  %v1714_v17 = vadd.f32 0.00028619796, %v1713_v41  ;;  %v1833_v58 = vmul.f32 2.1237322e-06, %v4061_v55 }
 0x74e   : > { %v1808_v7 = vmul.f32 %v1807_v12, %v4029_v37  ;;  %v1725_v8 = vadd.f32 0.001143296, %v1724_v6  ;;  %v1797_v9 = vmul.f32 %v1796_v53, %v4029_v37  ;;  %v1844_v18 = vmul.f32 3.8918573e-05, %v4061_v55 }
 0x74f   : > { %v1769_v5 = vadd.f32 0.112945676, %v1768_v4  ;;  %v1715_v49 = vmul.f32 %v1714_v17, %v4050_v61  ;;  %v1758_v13 = vadd.f32 0.05243302, %v1757_v3  ;;  %v1834_v28 = vadd.f32 0.00028619796, %v1833_v58 }
 0x750   : > { %v1809_v11 = vadd.f32 0.112945676, %v1808_v7  ;;  %v1726_v16 = vmul.f32 %v1725_v8, %v4050_v61  ;;  %v1798_v31 = vadd.f32 0.05243302, %v1797_v9  ;;  %v1845_v46 = vadd.f32 0.001143296, %v1844_v18 }
 0x751   : > { %v1770_v15 = vmul.f32 %v1769_v5, %v4024_v32  ;;  %v1716_v19 = vadd.f32 0.0036580483, %v1715_v49  ;;  %v1759_v36 = vmul.f32 %v1758_v13, %v4024_v32  ;;  %v1835_v56 = vmul.f32 %v1834_v28, %v4061_v55 }
 0x752   : > { %v1810_v0 = vmul.f32 %v1809_v11, %v4029_v37  ;;  %v1727_v45 = vadd.f32 0.014752088, %v1726_v16  ;;  %v1846_v59 = vmul.f32 %v1845_v46, %v4061_v55  ;;  %v1799_v62 = vmul.f32 %v1798_v31, %v4029_v37  ;;  %v4132_v46 = vpop.f32.mrf.mxu0 }
 0x753   : > { %v1771_v24 = vadd.f32 0.4994258, %v1770_v15  ;;  %v1717_v54 = vmul.f32 %v1716_v19, %v4050_v61  ;;  %v1760_v60 = vadd.f32 0.18741608, %v1759_v36  ;;  %v4090_v63 = vmin.f32 %v1911_v40, 16.0 }
 0x754   : > { %v1811_v35 = vadd.f32 0.4994258, %v1810_v0  ;;  %v1728_v43 = vmul.f32 %v1727_v45, %v4050_v61  ;;  %v4093_v1 = vmul.f32 0.70710677, %v1663_v51  ;;  %v1836_v12 = vadd.f32 0.0036580483, %v1835_v56 }
 0x755   : > { %v1772_v34 = vmul.f32 %v1771_v24, %v4024_v32  ;;  %v1718_v53 = vadd.f32 0.05243302, %v1717_v54  ;;  %v1847_v3 = vadd.f32 0.014752088, %v1846_v59  ;;  %v4097_v4 = vmul.f32 0.5, %v4005_v20 }
 0x756   : > { %v1812_v48 = vmul.f32 %v1811_v35, %v4029_v37  ;;  %v1729_v47 = vadd.f32 0.112945676, %v1728_v43  ;;  %v1761_v6 = vmul.f32 %v1760_v60, %v4024_v32  ;;  %v1800_v7 = vadd.f32 0.18741608, %v1799_v62 }
 0x757   : > { %v4081_v52 = vadd.f32 1.0, %v1772_v34  ;;  %v1913_v17 = vmul.f32 2.1237322e-06, %v4090_v63  ;;  %v4102_v5 = vmul.f32 0.5, %v4008_v25  ;;  %v1848_v9 = vmul.f32 %v1847_v3, %v4061_v55 }
 0x758   : > { %v4085_v57 = vadd.f32 1.0, %v1812_v48  ;;  %v1730_v41 = vmul.f32 %v1729_v47, %v4050_v61  ;;  %v1951_v11 = vmul.f32 %v4093_v1, %v4093_v1  ;;  %v1719_v58 = vmul.f32 %v1718_v53, %v4050_v61 }
 0x759   : > { %3229 = vrcp.f32 %v4081_v52  ;;  %v1837_v20 = vmul.f32 %v1836_v12, %v4061_v55  ;;  %v1914_v13 = vadd.f32 0.00028619796, %v1913_v17  ;;  %v1924_v32 = vmul.f32 3.8918573e-05, %v4090_v63 }
 0x75a   : > { %3231 = vrcp.f32 %v4085_v57  ;;  %v1731_v8 = vadd.f32 0.4994258, %v1730_v41  ;;  %v4117_v16 = vmul.f32 0.5, %v4027_v33  ;;  %v4121_v0 = vmul.f32 0.5, %v4032_v38  ;;  %v1626_v33 = vpop.f32.mrf.mxu3 }
 0x75b   : > { %v1762_v19 = vadd.f32 1.1283791, %v1761_v6  ;;  %v1801_v24 = vmul.f32 %v1800_v7, %v4029_v37  ;;  %v1849_v28 = vadd.f32 0.112945676, %v1848_v9  ;;  %v1915_v35 = vmul.f32 %v1914_v13, %v4090_v63  ;;  %v4134_v37 = vpop.f32.mrf.mxu1 }
 0x75c   : > { %v1732_v18 = vmul.f32 %v1731_v8, %v4050_v61  ;;  %v4129_v40 = vmin.f32 %v1951_v11, 16.0  ;;  %v1720_v36 = vadd.f32 0.18741608, %v1719_v58  ;;  %v1838_v34 = vadd.f32 0.05243302, %v1837_v20 }
 0x75d   : > { %v1850_v38 = vmul.f32 %v1849_v28, %v4061_v55  ;;  %v1925_v43 = vadd.f32 0.001143296, %v1924_v32  ;;  %v4138_v54 = vmul.f32 0.5, %v4055_v2  ;;  %v4140_v56 = vmul.f32 0.5, %v1663_v51 }
 0x75e   : > { %v4126_v31 = vadd.f32 1.0, %v1732_v18  ;;  %v1802_v59 = vadd.f32 1.1283791, %v1801_v24  ;;  %v4144_v62 = vadd.f32 %v1626_v33, %v4013_v26  ;;  %v1763_v53 = vmul.f32 %v1762_v19, %v4011_v14  ;;  %v4166_v18 = vpop.f32.mrf.mxu2 }
 0x75f   : > { %v4107_v49 = vpop.eup %3229  ;;  %v1851_v60 = vadd.f32 0.4994258, %v1850_v38  ;;  %v1916_v12 = vadd.f32 0.0036580483, %v1915_v35  ;;  %v1926_v41 = vmul.f32 %v1925_v43, %v4090_v63  ;;  %v1953_v3 = vmul.f32 2.1237322e-06, %v4129_v40 }
 0x760   : > { %v4112_v15 = vpop.eup %3231  ;;  %v1775_v25 = vmul.f32 %v4107_v49, %v4081_v52  ;;  %3233 = vrcp.f32 %v4126_v31  ;;  %vm1779_vm9 = vweird.f32 %v4081_v52  ;;  %v1721_v2 = vmul.f32 %v1720_v36, %v4050_v61 }
 0x761   : > { %v1815_v45 = vmul.f32 %v4112_v15, %v4085_v57  ;;  %v1839_v51 = vmul.f32 %v1838_v34, %v4061_v55  ;;  %v1852_v6 = vmul.f32 %v1851_v60, %v4061_v55  ;;  %v1783_v7 = vand.u32 2147483647, %v4081_v52 }
 0x762   : > { %v1776_v30 = vsub.f32 1.0, %v1775_v25  ;;  %v1917_v8 = vmul.f32 %v1916_v12, %v4090_v63  ;;  %v1927_v14 = vadd.f32 0.014752088, %v1926_v41  ;;  %vm1780_vm10 = vweird.f32 %v4107_v49 }
 0x763   : > { %v1816_v48 = vsub.f32 1.0, %v1815_v45  ;;  %v1785_v11 = vand.u32 2147483648, %v4081_v52  ;;  %v4159_v58 = vadd.f32 1.0, %v1852_v6  ;;  %v1803_v20 = vmul.f32 %v1802_v59, %v4016_v27  ;;  %v1667_v35 = vpop.f32.mrf.mxu1  ;;  %vm4175_vm11 = vmor %vm1779_vm9, %vm1780_vm10 }
 0x764   : > { %v1777_v47 = vmul.f32 %v4107_v49, %v1776_v30  ;;  %v1823_v13 = vand.u32 2147483647, %v4085_v57  ;;  %v1928_v32 = vmul.f32 %v1927_v14, %v4090_v63  ;;  %v1954_v25 = vadd.f32 0.00028619796, %v1953_v3  ;;  %v1649_v30 = vpop.f32.mrf.mxu0 }
 0x765   : > { %v1817_v17 = vmul.f32 %v4112_v15, %v1816_v48  ;;  %v1825_v19 = vand.u32 2147483648, %v4085_v57  ;;  %v1722_v24 = vadd.f32 1.1283791, %v1721_v2  ;;  %v1840_v28 = vadd.f32 0.18741608, %v1839_v51 }
 0x766   : > { %v1778_v9 = vadd.f32 %v4107_v49, %v1777_v47  ;;  %v4161_v61 = vpop.eup %3233  ;;  %vm1820_vm12 = vweird.f32 %v4112_v15  ;;  %v1918_v36 = vadd.f32 0.05243302, %v1917_v8  ;;  %v1964_v34 = vmul.f32 3.8918573e-05, %v4129_v40 }
 0x767   : > { %v1735_v45 = vmul.f32 %v4161_v61, %v4126_v31  ;;  %v1818_v33 = vadd.f32 %v4112_v15, %v1817_v17  ;;  %3235 = vrcp.f32 %v4159_v58  ;;  %v1929_v48 = vadd.f32 0.112945676, %v1928_v32 }
 0x768   : > { %v1782_v38 = vsel %vm4175_vm11, %v4107_v49, %v1778_v9  ;;  %vm1784_vm13 = vcmp.eq.f32.partialorder %v1783_v7, 8.507059e+37  ;;  %v1786_v52 = vor.u32 1.1754944e-38, %v1785_v11  ;;  %vm1819_vm14 = vweird.f32 %v4085_v57  ;;  %v4194_v49 = vpop.f32.mrf.mxu3 }
 0x769   : > { %v1736_v43 = vsub.f32 1.0, %v1735_v45  ;;  %v1955_v47 = vmul.f32 %v1954_v25, %v4129_v40  ;;  %vm4188_vm15 = vcmp.eq.f32.partialorder %v1823_v13, 8.507059e+37  ;;  %v1826_v60 = vor.u32 1.1754944e-38, %v1825_v19  ;;  %vm4198_vm0 = vmor %vm1819_vm14, %vm1820_vm12  ;;  %v4216_v13 = vpop.f32.mrf.mxu2 }
 0x76a   : > { %v1841_v12 = vmul.f32 %v1840_v28, %v4061_v55  ;;  %v1930_v41 = vmul.f32 %v1929_v48, %v4090_v63  ;;  %v1787_v3 = vsel %vm1784_vm13, %v1786_v52, %v1782_v38  ;;  %v1919_v57 = vmul.f32 %v1918_v36, %v4090_v63 }
 0x76b   : > { %v1965_v51 = vadd.f32 0.001143296, %v1964_v34  ;;  %v4204_v6 = vmul.f32 0.70710677, %v4144_v62  ;;  %v1822_v55 = vsel %vm4198_vm0, %v4112_v15, %v1818_v33  ;;  %v4210_v7 = vmul.f32 %v1722_v24, %v4039_v21 }
 0x76c   : > { %v1737_v17 = vmul.f32 %v4161_v61, %v1736_v43  ;;  %v1931_v8 = vadd.f32 0.4994258, %v1930_v41  ;;  %vm1739_vm1 = vweird.f32 %v4126_v31  ;;  %v1743_v14 = vand.u32 2147483647, %v4126_v31 }
 0x76d   : > { %v1956_v9 = vadd.f32 0.0036580483, %v1955_v47  ;;  %v1966_v11 = vmul.f32 %v1965_v51, %v4129_v40  ;;  %v4218_v32 = vpop.eup %3235  ;;  %v1788_v25 = vmul.f32 %v1787_v3, %v1763_v53  ;;  %v1745_v15 = vand.u32 2147483648, %v4126_v31 }
 0x76e   : > { %v1932_v21 = vmul.f32 %v1931_v8, %v4090_v63  ;;  %v1871_v19 = vmul.f32 %v4204_v6, %v4204_v6  ;;  %v1827_v24 = vsel %vm4188_vm15, %v1826_v60, %v1822_v55  ;;  %v1842_v45 = vadd.f32 1.1283791, %v1841_v12 }
 0x76f   : > { %v1920_v28 = vadd.f32 0.18741608, %v1919_v57  ;;  %v1967_v30 = vadd.f32 0.014752088, %v1966_v11  ;;  %v1738_v35 = vadd.f32 %v4161_v61, %v1737_v17  ;;  %vm1740_vm2 = vweird.f32 %v4161_v61 }
 0x770   : > { %v4228_v27 = vadd.f32 1.0, %v1932_v21  ;;  %v4230_v53 = vmin.f32 %v1871_v19, 16.0  ;;  %vm4232_vm3 = vcmp.eq.f32.partialorder %v1743_v14, 8.507059e+37  ;;  %v1855_v36 = vmul.f32 %v4218_v32, %v4159_v58  ;;  %v1631_v47 = vpop.f32.mrf.mxu3  ;;  %vm4245_vm4 = vmor %vm1739_vm1, %vm1740_vm2 }
 0x771   : > { %v1957_v34 = vmul.f32 %v1956_v9, %v4129_v40  ;;  %v1968_v38 = vmul.f32 %v1967_v30, %v4129_v40  ;;  %v2896_v43 = vclamps-f32 %v1788_v25, 1.0  ;;  %v4240_v48 = vmul.f32 %v1827_v24, %v1803_v20 }
 0x772   : > { %v1746_v52 = vor.u32 1.1754944e-38, %v1745_v15  ;;  %3237 = vrcp.f32 %v4228_v27  ;;  %v4250_v60 = vmul.f32 %v1842_v45, %v4044_v39  ;;  %v1865_v12 = vand.u32 2147483648, %v4159_v58 }
 0x773   : > { %v1921_v41 = vmul.f32 %v1920_v28, %v4090_v63  ;;  %v1969_v3 = vadd.f32 0.112945676, %v1968_v38  ;;  %v1742_v20 = vsel %vm4245_vm4, %v4161_v61, %v1738_v35  ;;  %v1873_v2 = vmul.f32 2.1237322e-06, %v4230_v53  ;;  %v1685_v63 = vpop.f32.mrf.mxu2  ;;  %v3124_v38 = vld [vmem:[%s4636_s11 + $0xb8] sm:$0xff] }
 0x774   : > { %v1884_v31 = vmul.f32 3.8918573e-05, %v4230_v53  ;;  %v4261_v57 = vadd.f32 %v4166_v18, %v4018_v29  ;;  %v1856_v51 = vsub.f32 1.0, %v1855_v36  ;;  %v1863_v39 = vand.u32 2147483647, %v4159_v58  ;;  %2519 = vmatpush.bf16.msra.mxu1 %v3124_v38  ;;  %v3123_v63 = vld [vmem:[%s4636_s11 + $0xb0] sm:$0xff] }
 0x775   : > { %v1958_v55 = vadd.f32 0.05243302, %v1957_v34  ;;  %v1970_v17 = vmul.f32 %v1969_v3, %v4129_v40  ;;  %v4265_v8 = vadd.f32 1.0, %v2896_v43  ;;  %v2897_v14 = vclamps-f32 %v4240_v48, 1.0  ;;  %v3116_v34 = vld [vmem:[%s4636_s11 + $0x78] sm:$0xff] }
 0x776   : > { %v1874_v61 = vadd.f32 0.00028619796, %v1873_v2  ;;  %v1885_v9 = vadd.f32 0.001143296, %v1884_v31  ;;  %v1747_v11 = vsel %vm4232_vm3, %v1746_v52, %v1742_v20  ;;  %v4270_v25 = vor.u32 1.1754944e-38, %v1865_v12  ;;  %2501 = vmatpush.bf16.msra.mxu0 %v3116_v34 }
 0x777   : > { %v1922_v18 = vadd.f32 1.1283791, %v1921_v41  ;;  %v1971_v15 = vadd.f32 0.4994258, %v1970_v17  ;;  %v4275_v45 = vmul.f32 0.70710677, %v4261_v57  ;;  %v4279_v28 = vadd.f32 %v4132_v46, %v4000_v22 }
 0x778   : > { %v3238_v21 = vpop.eup %3237  ;;  %v1875_v19 = vmul.f32 %v1874_v61, %v4230_v53  ;;  %v1886_v24 = vmul.f32 %v1885_v9, %v4230_v53  ;;  %v1857_v30 = vmul.f32 %v4218_v32, %v1856_v51  ;;  %vm1860_vm5 = vweird.f32 %v4218_v32  ;;  %v3115_v17 = vld [vmem:[%s4636_s11 + $0x70] sm:$0xff]  ;;  %2520 = vmatpush.bf16.msra.mxu1 %v3123_v63 }
 0x779   : > { %v1935_v35 = vmul.f32 %v3238_v21, %v4228_v27  ;;  %v1943_v33 = vand.u32 2147483647, %v4228_v27  ;;  %v1959_v36 = vmul.f32 %v1958_v55, %v4129_v40  ;;  %v1972_v22 = vmul.f32 %v1971_v15, %v4129_v40 }
 0x77a   : > { %v1876_v46 = vadd.f32 0.0036580483, %v1875_v19  ;;  %v1887_v43 = vadd.f32 0.014752088, %v1886_v24  ;;  %v1991_v52 = vmul.f32 %v4275_v45, %v4275_v45  ;;  %v4296_v47 = vmul.f32 %v1747_v11, %v4210_v7  ;;  %2502 = vmatpush.bf16.msra.mxu0 %v3115_v17 }
 0x77b   : > { %vm1859_vm6 = vweird.f32 %v4159_v58  ;;  %v1936_v59 = vsub.f32 1.0, %v1935_v35  ;;  %v1945_v12 = vand.u32 2147483648, %v4228_v27  ;;  %v4301_v41 = vmul.f32 0.70710677, %v4279_v28  ;;  %v3130_v58 = vld [vmem:[%s4636_s11 + $0xe8] sm:$0xff] }
 0x77c   : > { %v4303_v3 = vadd.f32 1.0, %v1972_v22  ;;  %v1877_v20 = vmul.f32 %v1876_v46, %v4230_v53  ;;  %v1888_v2 = vmul.f32 %v1887_v43, %v4230_v53  ;;  %v4307_v31 = vmin.f32 %v1991_v52, 16.0  ;;  %v3132_v43 = vld [vmem:[%s4636_s11 + $0xf8] sm:$0xff]  ;;  %v3114_v52 = vld [vmem:[%s4636_s11 + $0x68] sm:$0xff]  ;;  %vm4375_vm11 = vmor %vm1859_vm6, %vm1860_vm5 }
 0x77d   : > { %v1937_v7 = vmul.f32 %v3238_v21, %v1936_v59  ;;  %vm1940_vm7 = vweird.f32 %v3238_v21  ;;  %v1960_v51 = vadd.f32 0.18741608, %v1959_v36  ;;  %v2071_v55 = vmul.f32 %v4301_v41, %v4301_v41  ;;  %2537 = vmatpush.bf16.msra.mxu2 %v3132_v43  ;;  %v3106_v43 = vld [vmem:[%s4636_s11 + $0x28] sm:$0xff] }
 0x77e   : > { %v4318_v61 = vadd.f32 %v4218_v32, %v1857_v30  ;;  %vm1939_vm8 = vweird.f32 %v4228_v27  ;;  %vm4321_vm9 = vcmp.eq.f32.partialorder %v1943_v33, 8.507059e+37  ;;  %3239 = vrcp.f32 %v4303_v3  ;;  %v3108_v33 = vld [vmem:[%s4636_s11 + $0x38] sm:$0xff]  ;;  %2503 = vmatpush.bf16.msra.mxu0 %v3114_v52 }
 0x77f   : > { %v1938_v11 = vadd.f32 %v3238_v21, %v1937_v7  ;;  %v1878_v15 = vadd.f32 0.05243302, %v1877_v20  ;;  %v1889_v19 = vadd.f32 0.112945676, %v1888_v2  ;;  %v1993_v24 = vmul.f32 2.1237322e-06, %v4307_v31  ;;  %vm1941_vm10 = vmor %vm1939_vm8, %vm1940_vm7  ;;  %2483 = vmatpush.bf16.msra.mxu3 %v3108_v33 }
 0x780   : > { %v1946_v35 = vor.u32 1.1754944e-38, %v1945_v12  ;;  %v2004_v30 = vmul.f32 3.8918573e-05, %v4307_v31  ;;  %v4329_v36 = vmin.f32 %v2071_v55, 16.0  ;;  %v4333_v27 = vadd.f32 %v4134_v37, %v4002_v23  ;;  %v3122_v23 = vld [vmem:[%s4636_s11 + $0xa8] sm:$0xff] }
 0x781   : > { %v1942_v34 = vsel %vm1941_vm10, %v3238_v21, %v1938_v11  ;;  %v1961_v38 = vmul.f32 %v1960_v51, %v4129_v40  ;;  %v1890_v22 = vmul.f32 %v1889_v19, %v4230_v53  ;;  %v1994_v46 = vadd.f32 0.00028619796, %v1993_v24  ;;  %2521 = vmatpush.bf16.msra.mxu1 %v3122_v23  ;;  %v3121_v19 = vld [vmem:[%s4636_s11 + $0xa0] sm:$0xff] }
 0x782   : > { %v1923_v37 = vmul.f32 %v1922_v18, %v4065_v10  ;;  %v1947_v40 = vsel %vm4321_vm9, %v1946_v35, %v1942_v34  ;;  %v2005_v21 = vadd.f32 0.001143296, %v2004_v30  ;;  %v2073_v59 = vmul.f32 2.1237322e-06, %v4329_v36  ;;  %v3107_v10 = vld [vmem:[%s4636_s11 + $0x30] sm:$0xff] }
 0x783   : > { %v4355_v12 = vadd.f32 1.0, %v2897_v14  ;;  %v1879_v20 = vmul.f32 %v1878_v15, %v4230_v53  ;;  %v1891_v2 = vadd.f32 0.4994258, %v1890_v22  ;;  %v1995_v7 = vmul.f32 %v1994_v46, %v4307_v31  ;;  %v3131_v18 = vld [vmem:[%s4636_s11 + $0xf0] sm:$0xff]  ;;  %v3113_v15 = vld [vmem:[%s4636_s11 + $0x60] sm:$0xff]  ;;  %2484 = vmatpush.bf16.msra.mxu3 %v3107_v10  ;;  %v3118_v14 = vld [vmem:[%s4636_s11 + $0x88] sm:$0xff] }
 0x784   : > { %v4365_v51 = vpop.eup %3239  ;;  %v4369_v48 = vmul.f32 %v4265_v8, %v4097_v4  ;;  %v1948_v55 = vmul.f32 %v1947_v40, %v1923_v37  ;;  %v2006_v17 = vmul.f32 %v2005_v21, %v4307_v31  ;;  %v4381_v63 = vmul.f32 0.70710677, %v4333_v27  ;;  %2538 = vmatpush.bf16.msra.mxu2 %v3131_v18  ;;  %2504 = vmatpush.bf16.msra.mxu0 %v3113_v15 }
 0x785   : > { %v2895_v9 = vclamps-f32 %v4296_v47, 1.0  ;;  %v1862_v4 = vsel %vm4375_vm11, %v4218_v32, %v4318_v61  ;;  %v1962_v8 = vadd.f32 1.1283791, %v1961_v38  ;;  %v1975_v11 = vmul.f32 %v4365_v51, %v4303_v3  ;;  %2522 = vmatpush.bf16.msra.mxu1 %v3121_v19 }
 0x786   : > { %v1892_v24 = vmul.f32 %v1891_v2, %v4230_v53  ;;  %v1996_v47 = vadd.f32 0.0036580483, %v1995_v7  ;;  %v2007_v35 = vadd.f32 0.014752088, %v2006_v17  ;;  %v2074_v30 = vadd.f32 0.00028619796, %v2073_v59 }
 0x787   : > { %vm4399_vm12 = vcmp.eq.f32.partialorder %v1863_v39, 8.507059e+37  ;;  %v1976_v34 = vsub.f32 1.0, %v1975_v11  ;;  %v1985_v38 = vand.u32 2147483648, %v4303_v3  ;;  %v1880_v22 = vadd.f32 0.18741608, %v1879_v20  ;;  %v3112_v20 = vld [vmem:[%s4636_s11 + $0x58] sm:$0xff]  ;;  %2485 = vmatpush.bf16.msra.mxu3 %v3106_v43 }
 0x788   : > { %v2111_v46 = vmul.f32 %v4381_v63, %v4381_v63  ;;  %v2900_v39 = vclamps-f32 %v1948_v55, 1.0  ;;  %v4412_v52 = vadd.f32 1.0, %v1892_v24  ;;  %v1997_v23 = vmul.f32 %v1996_v47, %v4307_v31  ;;  %v3120_v2 = vld [vmem:[%s4636_s11 + $0x98] sm:$0xff]  ;;  %2539 = vmatpush.bf16.msra.mxu2 %v3130_v58  ;;  %2505 = vmatpush.bf16.msra.mxu0 %v3112_v20 }
 0x789   : > { %v2008_v37 = vmul.f32 %v2007_v35, %v4307_v31  ;;  %v1977_v40 = vmul.f32 %v4365_v51, %v1976_v34  ;;  %vm1980_vm13 = vweird.f32 %v4365_v51  ;;  %v1983_v21 = vand.u32 2147483647, %v4303_v3  ;;  %2523 = vmatpush.bf16.msra.mxu1 %v3120_v2  ;;  %v3111_v35 = vld [vmem:[%s4636_s11 + $0x50] sm:$0xff] }
 0x78a   : > { %v4419_v59 = vmin.f32 %v2111_v46, 16.0  ;;  %v1963_v7 = vmul.f32 %v1962_v8, %v4093_v1  ;;  %3241 = vrcp.f32 %v4412_v52  ;;  %v2075_v10 = vmul.f32 %v2074_v30, %v4329_v36  ;;  %v3105_v1 = vld [vmem:[%s4636_s11 + $0x20] sm:$0xff]  ;;  %v3119_v30 = vld [vmem:[%s4636_s11 + $0x90] sm:$0xff] }
 0x78b   : > { %v4432_v18 = vadd.f32 %v4194_v49, %v4013_v26  ;;  %v1978_v55 = vadd.f32 %v4365_v51, %v1977_v40  ;;  %vm1979_vm14 = vweird.f32 %v4303_v3  ;;  %v1998_v17 = vadd.f32 0.05243302, %v1997_v23  ;;  %v3129_v8 = vld [vmem:[%s4636_s11 + $0xe0] sm:$0xff]  ;;  %2486 = vmatpush.bf16.msra.mxu3 %v3105_v1 }
 0x78c   : > { %v2009_v11 = vadd.f32 0.112945676, %v2008_v37  ;;  %v2196_v15 = vadd.f32 1.0, %v2900_v39  ;;  %vm1981_vm15 = vmor %vm1979_vm14, %vm1980_vm13  ;;  %v1986_v26 = vor.u32 1.1754944e-38, %v1985_v38  ;;  %v1881_v49 = vmul.f32 %v1880_v22, %v4230_v53  ;;  %2540 = vmatpush.bf16.msra.mxu2 %v3129_v8  ;;  %2506 = vmatpush.bf16.msra.mxu0 %v3111_v35  ;;  %v3128_v39 = vld [vmem:[%s4636_s11 + $0xd8] sm:$0xff] }
 0x78d   : > { %v2113_v3 = vmul.f32 2.1237322e-06, %v4419_v59  ;;  %v1982_v19 = vsel %vm1981_vm15, %v4365_v51, %v1978_v55  ;;  %vm1984_vm0 = vcmp.eq.f32.partialorder %v1983_v21, 8.507059e+37  ;;  %v1999_v24 = vmul.f32 %v1998_v17, %v4307_v31  ;;  %2524 = vmatpush.bf16.msra.mxu1 %v3119_v30  ;;  %v3110_v21 = vld [vmem:[%s4636_s11 + $0x48] sm:$0xff] }
 0x78e   : > { %v2010_v47 = vmul.f32 %v2009_v11, %v4307_v31  ;;  %v4455_v34 = vadd.f32 1.0, %v2895_v9  ;;  %v1987_v53 = vsel %vm1984_vm0, %v1986_v26, %v1982_v19  ;;  %v2076_v38 = vadd.f32 0.0036580483, %v2075_v10  ;;  %v3104_v9 = vld [vmem:[%s4636_s11 + $0x18] sm:$0xff]  ;;  %v3109_v11 = vld [vmem:[%s4636_s11 + $0x40] sm:$0xff] }
 0x78f   : > { %v4458_v22 = vmul.f32 0.70710677, %v4432_v18  ;;  %v4462_v51 = vmul.f32 %v4355_v12, %v4102_v5  ;;  %v1988_v46 = vmul.f32 %v1987_v53, %v1963_v7  ;;  %v2114_v58 = vadd.f32 0.00028619796, %v2113_v3  ;;  %2487 = vmatpush.bf16.msra.mxu3 %v3104_v9  ;;  %v3103_v7 = vld [vmem:[%s4636_s11 + $0x10] sm:$0xff] }
 0x790   : > { %v2011_v43 = vadd.f32 0.4994258, %v2010_v47  ;;  %v3242_v23 = vpop.eup %3241  ;;  %v1867_v5 = vsel %vm4399_vm12, %v4270_v25, %v1862_v4  ;;  %v2208_v12 = vmul.f32 %v2196_v15, %v4138_v54  ;;  %v1882_v37 = vadd.f32 1.1283791, %v1881_v49  ;;  %2541 = vmatpush.bf16.msra.mxu2 %v3128_v39  ;;  %2507 = vmatpush.bf16.msra.mxu0 %v3110_v21  ;;  %v3117_v15 = vld [vmem:[%s4636_s11 + $0x80] sm:$0xff] }
 0x791   : > { %v2031_v40 = vmul.f32 %v4458_v22, %v4458_v22  ;;  %v2901_v32 = vclamps-f32 %v1988_v46, 1.0  ;;  %v1895_v61 = vmul.f32 %v3242_v23, %v4412_v52  ;;  %v2000_v33 = vadd.f32 0.18741608, %v1999_v24  ;;  %2525 = vmatpush.bf16.msra.mxu1 %v3118_v14 }
 0x792   : > { %v4490_v54 = vadd.f32 %v4216_v13, %v4018_v29  ;;  %v1903_v25 = vand.u32 2147483647, %v4412_v52  ;;  %v1905_v4 = vand.u32 2147483648, %v4412_v52  ;;  %v2012_v20 = vmul.f32 %v2011_v43, %v4307_v31  ;;  %v3127_v13 = vld [vmem:[%s4636_s11 + $0xd0] sm:$0xff] }
 0x793   : > { %v4495_v2 = vmin.f32 %v2031_v40, 16.0  ;;  %v2197_v10 = vadd.f32 1.0, %v2901_v32  ;;  %v1896_v55 = vsub.f32 1.0, %v1895_v61  ;;  %v2077_v17 = vmul.f32 %v2076_v38, %v4329_v36  ;;  %2488 = vmatpush.bf16.msra.mxu3 %v3103_v7 }
 0x794   : > { %v2115_v29 = vmul.f32 %v2114_v58, %v4419_v59  ;;  %vm1900_vm1 = vweird.f32 %v3242_v23  ;;  %v4508_v1 = vadd.f32 1.0, %v2012_v20  ;;  %v2084_v26 = vmul.f32 3.8918573e-05, %v4329_v36  ;;  %2542 = vmatpush.bf16.msra.mxu2 %v3127_v13  ;;  %2508 = vmatpush.bf16.msra.mxu0 %v3109_v11 }
 0x795   : > { %v2033_v8 = vmul.f32 2.1237322e-06, %v4495_v2  ;;  %v2209_v49 = vmul.f32 %v2197_v10, %v4140_v56  ;;  %v1897_v3 = vmul.f32 %v3242_v23, %v1896_v55  ;;  %v2001_v19 = vmul.f32 %v2000_v33, %v4307_v31  ;;  %v3102_v56 = vld [vmem:[%s4636_s11 + $0x8] sm:$0xff]  ;;  %2526 = vmatpush.bf16.msra.mxu1 %v3117_v15 }
 0x796   : > { %v4518_v24 = vmul.f32 0.70710677, %v4490_v54  ;;  %v4521_v47 = vmul.f32 %v1867_v5, %v4250_v60  ;;  %v2216_v35 = vpack.c.bf16 %v2208_v12, %v4369_v48  ;;  %v1883_v30 = vmul.f32 %v1882_v37, %v4204_v6  ;;  %v3126_v60 = vld [vmem:[%s4636_s11 + $0xc8] sm:$0xff]  ;;  %v3101_v12 = vld [vmem:[%s4636_s11] sm:$0xff] }
 0x797   : > { %3243 = vrcp.f32 %v4508_v1  ;;  %v2217_v53 = vpack.c.bf16 %v2209_v49, %v4462_v51  ;;  %v1898_v31 = vadd.f32 %v3242_v23, %v1897_v3  ;;  %vm1899_vm2 = vweird.f32 %v4412_v52  ;;  %2489 = vmatpush.bf16.msra.mxu3 %v3102_v56 }
 0x798   : > { %vm1904_vm3 = vcmp.eq.f32.partialorder %v1903_v25, 8.507059e+37  ;;  %vm1901_vm4 = vmor %vm1899_vm2, %vm1900_vm1  ;;  %v1906_v6 = vor.u32 1.1754944e-38, %v1905_v4  ;;  %v2078_v48 = vadd.f32 0.05243302, %v2077_v17  ;;  %v2034_v38 = vadd.f32 0.00028619796, %v2033_v8  ;;  %2509 = vmatmul.bf16.vlgmr.msra.gmra.mxu0 %v2216_v35  ;;  %2543 = vmatpush.bf16.msra.mxu2 %v3126_v60 }
 0x799   : > { %v2151_v46 = vmul.f32 %v4518_v24, %v4518_v24  ;;  %v1902_v51 = vsel %vm1901_vm4, %v3242_v23, %v1898_v31  ;;  %v2002_v43 = vadd.f32 1.1283791, %v2001_v19  ;;  %v2116_v58 = vadd.f32 0.0036580483, %v2115_v29  ;;  %2527 = vmatmul.bf16.vlgmr.msra.gmra.mxu1 %v2217_v53  ;;  %v3125_v23 = vld [vmem:[%s4636_s11 + $0xc0] sm:$0xff] }
 0x79a   : > { %v2085_v52 = vadd.f32 0.001143296, %v2084_v26  ;;  %v1907_v9 = vsel %vm1904_vm3, %v1906_v6, %v1902_v51  ;;  %v2035_v39 = vmul.f32 %v2034_v38, %v4495_v2  ;;  %v2124_v37 = vmul.f32 3.8918573e-05, %v4419_v59 }
 0x79b   : > { %v4538_v5 = vmin.f32 %v2151_v46, 16.0  ;;  %v1691_v40 = vmul.f32 0.5, %v4144_v62  ;;  %v1908_v21 = vmul.f32 %v1907_v9, %v1883_v30  ;;  %v2044_v32 = vmul.f32 3.8918573e-05, %v4495_v2  ;;  %2490 = vmatpush.bf16.msra.mxu3 %v3101_v12 }
 0x79c   : > { %v2086_v14 = vmul.f32 %v2085_v52, %v4329_v36  ;;  %v2203_v33 = vmul.f32 %v4455_v34, %v4117_v16  ;;  %v2898_v25 = vclamps-f32 %v4521_v47, 1.0  ;;  %v2125_v62 = vadd.f32 0.001143296, %v2124_v37  ;;  %2544 = vmatpush.bf16.msra.mxu2 %v3125_v23 }
 0x79d   : > { %v3244_v61 = vpop.eup %3243  ;;  %v2153_v4 = vmul.f32 2.1237322e-06, %v4538_v5  ;;  %v2899_v20 = vclamps-f32 %v1908_v21, 1.0  ;;  %v2079_v10 = vmul.f32 %v2078_v48, %v4329_v36  ;;  %v2117_v55 = vmul.f32 %v2116_v58, %v4419_v59 }
 0x79e   : > { %v2015_v7 = vmul.f32 %v3244_v61, %v4508_v1  ;;  %v2003_v17 = vmul.f32 %v2002_v43, %v4275_v45  ;;  %v2036_v29 = vadd.f32 0.0036580483, %v2035_v39  ;;  %v2087_v13 = vadd.f32 0.014752088, %v2086_v14 }
 0x79f   : > { %v2126_v11 = vmul.f32 %v2125_v62, %v4419_v59  ;;  %v2195_v16 = vadd.f32 1.0, %v2899_v20  ;;  %v2023_v8 = vand.u32 2147483647, %v4508_v1  ;;  %v2045_v15 = vadd.f32 0.001143296, %v2044_v32 }
 0x7a0   : > { %v2016_v34 = vsub.f32 1.0, %v2015_v7  ;;  %v2025_v26 = vand.u32 2147483648, %v4508_v1  ;;  %v2154_v49 = vadd.f32 0.00028619796, %v2153_v4  ;;  %v2088_v3 = vmul.f32 %v2087_v13, %v4329_v36 }
 0x7a1   : > { %v2127_v19 = vadd.f32 0.014752088, %v2126_v11  ;;  %v2207_v47 = vmul.f32 %v2195_v16, %v1691_v40  ;;  %vm2020_vm5 = vweird.f32 %v3244_v61  ;;  %v2046_v45 = vmul.f32 %v2045_v15, %v4495_v2 }
 0x7a2   : > { %v2017_v35 = vmul.f32 %v3244_v61, %v2016_v34  ;;  %vm2019_vm6 = vweird.f32 %v4508_v1  ;;  %v2037_v30 = vmul.f32 %v2036_v29, %v4495_v2  ;;  %v2089_v56 = vadd.f32 0.112945676, %v2088_v3 }
 0x7a3   : > { %v2128_v53 = vmul.f32 %v2127_v19, %v4419_v59  ;;  %v2215_v31 = vpack.c.bf16 %v2207_v47, %v2203_v33  ;;  %v2047_v6 = vadd.f32 0.014752088, %v2046_v45  ;;  %v2164_v48 = vmul.f32 3.8918573e-05, %v4538_v5  ;;  %vm2021_vm7 = vmor %vm2019_vm6, %vm2020_vm5 }
 0x7a4   : > { %v2018_v60 = vadd.f32 %v3244_v61, %v2017_v35  ;;  %v2026_v38 = vor.u32 1.1754944e-38, %v2025_v26  ;;  %v2155_v46 = vmul.f32 %v2154_v49, %v4538_v5  ;;  %v2090_v51 = vmul.f32 %v2089_v56, %v4329_v36 }
 0x7a5   : > { %v2129_v43 = vadd.f32 0.112945676, %v2128_v53  ;;  %vm2024_vm8 = vcmp.eq.f32.partialorder %v2023_v8, 8.507059e+37  ;;  %2491 = vmatmul.bf16.vlgmr.msra.gmra.mxu3 %v2215_v31  ;;  %v2048_v1 = vmul.f32 %v2047_v6, %v4495_v2  ;;  %v2165_v52 = vadd.f32 0.001143296, %v2164_v48 }
 0x7a6   : > { %v2022_v58 = vsel %vm2021_vm7, %v3244_v61, %v2018_v60  ;;  %v2118_v39 = vadd.f32 0.05243302, %v2117_v55  ;;  %v2038_v12 = vadd.f32 0.05243302, %v2037_v30  ;;  %v2091_v37 = vadd.f32 0.4994258, %v2090_v51 }
 0x7a7   : > { %v2027_v9 = vsel %vm2024_vm8, %v2026_v38, %v2022_v58  ;;  %v2130_v21 = vmul.f32 %v2129_v43, %v4419_v59  ;;  %v2049_v23 = vadd.f32 0.112945676, %v2048_v1  ;;  %v2166_v14 = vmul.f32 %v2165_v52, %v4538_v5 }
 0x7a8   : > { %v2028_v40 = vmul.f32 %v2027_v9, %v2003_v17  ;;  %v2194_v32 = vadd.f32 1.0, %v2898_v25  ;;  %v1694_v33 = vmul.f32 0.5, %v4261_v57  ;;  %v2156_v4 = vadd.f32 0.0036580483, %v2155_v46 }
 0x7a9   : > { %v2092_v61 = vmul.f32 %v2091_v37, %v4329_v36  ;;  %v2131_v20 = vadd.f32 0.4994258, %v2130_v21  ;;  %v2050_v7 = vmul.f32 %v2049_v23, %v4495_v2  ;;  %v2167_v29 = vadd.f32 0.014752088, %v2166_v14 }
 0x7aa   : > { %v2902_v62 = vclamps-f32 %v2028_v40, 1.0  ;;  %v2080_v55 = vadd.f32 0.18741608, %v2079_v10  ;;  %v2119_v13 = vmul.f32 %v2118_v39, %v4419_v59  ;;  %v2039_v17 = vmul.f32 %v2038_v12, %v4495_v2 }
 0x7ab   : > { %v2093_v11 = vadd.f32 1.0, %v2092_v61  ;;  %v2132_v34 = vmul.f32 %v2131_v20, %v4419_v59  ;;  %v2051_v25 = vadd.f32 0.4994258, %v2050_v7  ;;  %v2168_v57 = vmul.f32 %v2167_v29, %v4538_v5 }
 0x7ac   : > { %v2198_v16 = vadd.f32 1.0, %v2902_v62  ;;  %v2157_v8 = vmul.f32 %v2156_v4, %v4538_v5  ;;  %v2206_v15 = vmul.f32 %v2194_v32, %v4121_v0  ;;  %v2081_v3 = vmul.f32 %v2080_v55, %v4329_v36 }
 0x7ad   : > { %3245 = vrcp.f32 %v2093_v11  ;;  %v2133_v49 = vadd.f32 1.0, %v2132_v34  ;;  %v2052_v10 = vmul.f32 %v2051_v25, %v4495_v2  ;;  %v2120_v19 = vadd.f32 0.18741608, %v2119_v13 }
 0x7ae   : > { %v2210_v26 = vmul.f32 %v2198_v16, %v1694_v33  ;;  %v2169_v47 = vadd.f32 0.112945676, %v2168_v57  ;;  %v2040_v45 = vadd.f32 0.18741608, %v2039_v17  ;;  %v2158_v30 = vadd.f32 0.05243302, %v2157_v8 }
 0x7af   : > { %3247 = vrcp.f32 %v2133_v49  ;;  %v4583_v56 = vadd.f32 1.0, %v2052_v10  ;;  %v2082_v60 = vadd.f32 1.1283791, %v2081_v3  ;;  %v2121_v0 = vmul.f32 %v2120_v19, %v4419_v59 }
 0x7b0   : > { %v2218_v35 = vpack.c.bf16 %v2210_v26, %v2206_v15  ;;  %v2170_v53 = vmul.f32 %v2169_v47, %v4538_v5  ;;  %v2041_v6 = vmul.f32 %v2040_v45, %v4495_v2  ;;  %v2159_v48 = vmul.f32 %v2158_v30, %v4538_v5 }
 0x7b1   : > { %3249 = vrcp.f32 %v4583_v56  ;;  %v2105_v43 = vand.u32 2147483648, %v2093_v11  ;;  %v2083_v58 = vmul.f32 %v2082_v60, %v4301_v41  ;;  %v2122_v1 = vadd.f32 1.1283791, %v2121_v0 }
 0x7b2   : > { %2545 = vmatmul.bf16.vlgmr.msra.gmra.mxu2 %v2218_v35  ;;  %v2171_v38 = vadd.f32 0.4994258, %v2170_v53  ;;  %v2042_v39 = vadd.f32 1.1283791, %v2041_v6  ;;  %v2103_v59 = vand.u32 2147483647, %v2093_v11  ;;  %vm2099_vm10 = vweird.f32 %v2093_v11 }
 0x7b3   : > { %v3246_v31 = vpop.eup %3245  ;;  %v2160_v40 = vadd.f32 0.18741608, %v2159_v48  ;;  %v2145_v21 = vand.u32 2147483648, %v2133_v49  ;;  %v2106_v32 = vor.u32 1.1754944e-38, %v2105_v43  ;;  %v2143_v4 = vand.u32 2147483647, %v2133_v49 }
 0x7b4   : > { %v2095_v36 = vmul.f32 %v3246_v31, %v2093_v11  ;;  %v2172_v9 = vmul.f32 %v2171_v38, %v4538_v5  ;;  %vm2100_vm9 = vweird.f32 %v3246_v31  ;;  %vm2104_vm13 = vcmp.eq.f32.partialorder %v2103_v59, 8.507059e+37 }
 0x7b5   : > { %v3248_v46 = vpop.eup %3247  ;;  %vm2101_vm11 = vmor %vm2099_vm10, %vm2100_vm9  ;;  %vm2139_vm14 = vweird.f32 %v2133_v49  ;;  %v2146_v29 = vor.u32 1.1754944e-38, %v2145_v21  ;;  %v2065_v55 = vand.u32 2147483648, %v4583_v56  ;;  %v2063_v11 = vand.u32 2147483647, %v4583_v56 }
 0x7b6   : > { %v2096_v51 = vsub.f32 1.0, %v2095_v36  ;;  %v2135_v52 = vmul.f32 %v3248_v46, %v2133_v49  ;;  %v4592_v23 = vadd.f32 1.0, %v2172_v9  ;;  %vm2140_vm12 = vweird.f32 %v3248_v46 }
 0x7b7   : > { %v3250_v37 = vpop.eup %3249  ;;  %vm2141_vm15 = vmor %vm2139_vm14, %vm2140_vm12  ;;  %v1696_v16 = vmul.f32 0.5, %v4279_v28  ;;  %v2123_v34 = vmul.f32 %v2122_v1, %v4381_v63  ;;  %vm2144_vm1 = vcmp.eq.f32.partialorder %v2143_v4, 8.507059e+37  ;;  %vm2059_vm2 = vweird.f32 %v4583_v56 }
 0x7b8   : > { %v2097_v12 = vmul.f32 %v3246_v31, %v2096_v51  ;;  %v2136_v2 = vsub.f32 1.0, %v2135_v52  ;;  %v2055_v33 = vmul.f32 %v3250_v37, %v4583_v56  ;;  %3251 = vrcp.f32 %v4592_v23 }
 0x7b9   : > { %vm2060_vm0 = vweird.f32 %v3250_v37  ;;  %v2043_v49 = vmul.f32 %v2042_v39, %v4458_v22  ;;  %v2161_v10 = vmul.f32 %v2160_v40, %v4538_v5  ;;  %v2066_v19 = vor.u32 1.1754944e-38, %v2065_v55 }
 0x7ba   : > { %v2098_v14 = vadd.f32 %v3246_v31, %v2097_v12  ;;  %v2137_v41 = vmul.f32 %v3248_v46, %v2136_v2  ;;  %v2056_v62 = vsub.f32 1.0, %v2055_v33  ;;  %vm2061_vm3 = vmor %vm2059_vm2, %vm2060_vm0  ;;  %vm2064_vm4 = vcmp.eq.f32.partialorder %v2063_v11, 8.507059e+37 }
 0x7bb   : > { %v1697_v30 = vmul.f32 0.5, %v4333_v27  ;;  %v2162_v60 = vadd.f32 1.1283791, %v2161_v10  ;;  %v2183_v22 = vand.u32 2147483647, %v4592_v23  ;;  %v2185_v5 = vand.u32 2147483648, %v4592_v23 }
 0x7bc   : > { %v2102_v61 = vsel %vm2101_vm11, %v3246_v31, %v2098_v14  ;;  %v2138_v7 = vadd.f32 %v3248_v46, %v2137_v41  ;;  %v2057_v17 = vmul.f32 %v3250_v37, %v2056_v62  ;;  %vm2179_vm6 = vweird.f32 %v4592_v23 }
 0x7bd   : > { %v2107_v20 = vsel %vm2104_vm13, %v2106_v32, %v2102_v61  ;;  %v2163_v1 = vmul.f32 %v2162_v60, %v4518_v24  ;;  %vm2184_vm8 = vcmp.eq.f32.partialorder %v2183_v22, 8.507059e+37  ;;  %v3166_v24 = vld [vmem:[%s4637_s12] ss:$0 sm:$0xff] }
 0x7be   : > { %v2108_v13 = vmul.f32 %v2107_v20, %v2083_v58  ;;  %v2142_v25 = vsel %vm2141_vm15, %v3248_v46, %v2138_v7  ;;  %v2058_v15 = vadd.f32 %v3250_v37, %v2057_v17  ;;  %v3252_v26 = vpop.eup %3251  ;;  %v1695_v46 = vmul.f32 0.5, %v4432_v18 }
 0x7bf   : > { %v2147_v8 = vsel %vm2144_vm1, %v2146_v29, %v2142_v25  ;;  %v2175_v28 = vmul.f32 %v3252_v26, %v4592_v23  ;;  %vm2180_vm5 = vweird.f32 %v3252_v26  ;;  %v2186_v58 = vor.u32 1.1754944e-38, %v2185_v5 }
 0x7c0   : > { %v2904_v57 = vclamps-f32 %v2108_v13, 1.0  ;;  %v2148_v3 = vmul.f32 %v2147_v8, %v2123_v34  ;;  %v2062_v35 = vsel %vm2061_vm3, %v3250_v37, %v2058_v15  ;;  %vm2181_vm7 = vmor %vm2179_vm6, %vm2180_vm5  ;;  %v1698_v18 = vmul.f32 0.5, %v4490_v54 }
 0x7c1   : > { %v2067_v45 = vsel %vm2064_vm4, %v2066_v19, %v2062_v35  ;;  %v2176_v56 = vsub.f32 1.0, %v2175_v28 }
 0x7c2   : > { %v2200_v47 = vadd.f32 1.0, %v2904_v57  ;;  %v2905_v63 = vclamps-f32 %v2148_v3, 1.0  ;;  %v2068_v31 = vmul.f32 %v2067_v45, %v2043_v49 }
 0x7c3   : > { %v2177_v48 = vmul.f32 %v3252_v26, %v2176_v56 }
 0x7c4   : > { %v2212_v53 = vmul.f32 %v2200_v47, %v1696_v16  ;;  %v2201_v0 = vadd.f32 1.0, %v2905_v63  ;;  %v2903_v36 = vclamps-f32 %v2068_v31, 1.0 }
 0x7c5   : > { %v2178_v43 = vadd.f32 %v3252_v26, %v2177_v48 }
 0x7c6   : > { %v2220_v6 = vpack.c.bf16 %v2212_v53, %v2212_v53  ;;  %v2213_v38 = vmul.f32 %v2201_v0, %v1697_v30  ;;  %v2199_v51 = vadd.f32 1.0, %v2903_v36 }
 0x7c7   : > { %v2182_v9 = vsel %vm2181_vm7, %v3252_v26, %v2178_v43 }
 0x7c8   : > { %2514 = vmatmul.bf16.gmra.mxu0 %v2220_v6  ;;  %v2221_v27 = vpack.c.bf16 %v2213_v38, %v2213_v38  ;;  %v2211_v52 = vmul.f32 %v2199_v51, %v1695_v46  ;;  %v2187_v39 = vsel %vm2184_vm8, %v2186_v58, %v2182_v9 }
 0x7c9   : > { %v2188_v59 = vmul.f32 %v2187_v39, %v2163_v1 }
 0x7ca   : > { %2532 = vmatmul.bf16.gmra.mxu1 %v2221_v27  ;;  %v2219_v12 = vpack.c.bf16 %v2211_v52, %v2211_v52 }
 0x7cb   : > { %v2906_v37 = vclamps-f32 %v2188_v59, 1.0 }
 0x7cc   : > { %2496 = vmatmul.bf16.gmra.mxu3 %v2219_v12 }
 0x7cd   : > { %v2202_v40 = vadd.f32 1.0, %v2906_v37 }
 0x7cf   : > { %v2214_v2 = vmul.f32 %v2202_v40, %v1698_v18 }
 0x7d1   : > { %v2222_v21 = vpack.c.bf16 %v2214_v2, %v2214_v2 }
 0x7d3   : > { %2550 = vmatmul.bf16.gmra.mxu2 %v2222_v21 }
 0x815   : > { %v2510_v32 = vpop.f32.mrf.mxu0 }
 0x816   : > { %v2528_v41 = vpop.f32.mrf.mxu1 }
 0x81d   : > { %v2512_v20 = vpop.f32.mrf.mxu0 }
 0x81e   : > { %v2530_v13 = vpop.f32.mrf.mxu1 }
 0x828   : > { %v2492_v23 = vpop.f32.mrf.mxu3 }
 0x829   : > { %v2493_v14 = vadd.f32 %v3166_v24, %v2492_v23 }
 0x82b   : > { %v2511_v33 = vadd.f32 %v2510_v32, %v2493_v14 }
 0x82d   : > { %v2529_v61 = vadd.f32 %v2528_v41, %v2511_v33 }
 0x830   : > { %v2494_v4 = vpop.f32.mrf.mxu3 }
 0x831   : > { %v2495_v62 = vadd.f32 %v3166_v24, %v2494_v4 }
 0x833   : > { %v2513_v29 = vadd.f32 %v2512_v20, %v2495_v62 }
 0x835   : > { %v2546_v7 = vpop.f32.mrf.mxu2  ;;  %v2531_v17 = vadd.f32 %v2530_v13, %v2513_v29 }
 0x836   : > { %v2547_v54 = vadd.f32 %v2546_v7, %v2529_v61 }
 0x838   : > { %v2555_v55 = vadd.f32 %v2547_v54, %v3764_v42 }
 0x83a   : > { %2558 = vst [vmem:[%s440_s15] sm:$0xff] %v2555_v55 }
 0x83d   : > { %v2548_v11 = vpop.f32.mrf.mxu2 }
 0x83e   : > { %v2549_v16 = vadd.f32 %v2548_v11, %v2531_v17 }
 0x840   : > { %v2556_v34 = vadd.f32 %v2549_v16, %v3768_v44 }
 0x842   : > { %2559 = vst [vmem:[%s440_s15 + $0x8] sm:$0xff] %v2556_v34 }
 0x845   : > { %v2515_v25 = vpop.f32.mrf.mxu0 }
 0x847   : > { %v2533_v57 = vpop.f32.mrf.mxu1 }
 0x84d   : > { %v2517_v8 = vpop.f32.mrf.mxu0 }
 0x84f   : > { %v2535_v15 = vpop.f32.mrf.mxu1  ;;  %v2497_v26 = vpop.f32.mrf.mxu3 }
 0x850   : > { %v2498_v49 = vadd.f32 %v3166_v24, %v2497_v26 }
 0x852   : > { %v2516_v10 = vadd.f32 %v2515_v25, %v2498_v49 }
 0x854   : > { %v2534_v3 = vadd.f32 %v2533_v57, %v2516_v10 }
 0x856   : > { %v2551_v19 = vpop.f32.mrf.mxu2 }
 0x857   : > { %v2499_v47 = vpop.f32.mrf.mxu3  ;;  %v2552_v35 = vadd.f32 %v2551_v19, %v2534_v3 }
 0x859   : > { %v2557_v42 = vadd.f32 %v2552_v35, %v3772_v50 }
 0x85b   : > { %2560 = vst [vmem:[%s440_s15 + $0x10] sm:$0xff] %v2557_v42 }
 0x85e   : > { %v2553_v28 = vpop.f32.mrf.mxu2 }
 0x85f PF: > { %s23_s25 = sadd.s32 1, %s3262_s25  }
 0x860   : > { %p20_p4 = scmp.ge.s32.totalorder %s23_s25, 4  }
 0x862   :  { %22 = sbr.rel (!%p20_p4) target bundleno = 1 (0x1), region = 102 }

</bundles_post_ra>
